<compile_context>
chip_gen: v7x
topology: tpu7x:2x2x1
jax: 0.10.0
libtpu: 0.0.40
codegen_flags: <defaults>
</compile_context>

<pallas_src>
import functools

import jax
import jax.numpy as jnp
from jax.experimental import pallas as pl
from jax.experimental.pallas import tpu as pltpu

_BN_EPS = 1e-5


def _round_up(x, m):
    return (x + m - 1) // m * m


# ------------------------------ Pallas kernel -------------------------------


def _basic_block_kernel(
    hpos_ref, wpos_ref,                     # (1, P) int32 spatial coordinates
    x_ref,                                  # (nb, Cin, P) bf16
    wf_ref, bf_ref,                         # fused 1x1 weights (C1p+C2a+C3a, Cin) bf16 / bias f32
    w2b_ref, b2b_ref,                       # (9, C2p, C2a) bf16, (C2p, 1) f32
    w3b_ref, b3b_ref,                       # (25, C3p, C3a) bf16, (C3p, 1) f32
    w4_ref, b4_ref,                         # (C4p, Cin) bf16, (C4p, 1) f32
    o_ref,                                  # (nb, C1p+C2p+C3p+C4p, P) f32
    *, H, W, nb, c1p, c2a, c3a,
):
    P = H * W
    hpos = hpos_ref[...]                    # (1, P) int32
    wpos = wpos_ref[...]

    def valid(oy, ox):
        # Positions p=(h, w) whose neighbour (h+oy, w+ox) lies inside the image.
        return ((hpos >= -oy) & (hpos < H - oy)
                & (wpos >= -ox) & (wpos < W - ox))

    def tap(arr_f32, oy, ox):
        # result[:, p] == arr[:, p + oy*W + ox]  (circular wrap; masked later).
        s = oy * W + ox
        if s == 0:
            return arr_f32
        return pltpu.roll(arr_f32, shift=(-s) % P, axis=1)

    def spatial_conv(src_f32, w_ref, b_ref, K):
        # KxK conv (stride 1, pad K//2) as K*K rolled-tap matmuls, f32 accum.
        pad = K // 2
        cout = w_ref.shape[1]
        acc = jnp.zeros((cout, P), jnp.float32)
        for dy in range(K):
            for dx in range(K):
                oy, ox = dy - pad, dx - pad
                t = jnp.where(valid(oy, ox), tap(src_f32, oy, ox), 0.0)
                acc = acc + jnp.dot(
                    w_ref[dy * K + dx], t.astype(jnp.bfloat16),
                    preferred_element_type=jnp.float32)
        return jnp.maximum(acc + b_ref[...], 0.0)

    c2p = w2b_ref.shape[1]
    c3p = w3b_ref.shape[1]
    c4p = w4_ref.shape[0]

    for b in range(nb):                     # static unroll over images in block
        xb = x_ref[b]                       # (Cin, P) bf16

        # ---- fused 1x1 projections (paths 1, 2a, 3a share the x contraction) --
        z = jnp.dot(wf_ref[...], xb, preferred_element_type=jnp.float32)
        z = jnp.maximum(z + bf_ref[...], 0.0)              # (C1p+C2a+C3a, P) f32
        y1 = z[0:c1p]                                      # padded rows are 0
        y2a = z[c1p:c1p + c2a]
        y3a = z[c1p + c2a:c1p + c2a + c3a]

        # ---- path 2: 3x3 ConvBlock (pad 1) on y2a ------------------------------
        y2 = spatial_conv(y2a, w2b_ref, b2b_ref, 3)

        # ---- path 3: 5x5 ConvBlock (pad 2) on y3a ------------------------------
        y3 = spatial_conv(y3a, w3b_ref, b3b_ref, 5)

        # ---- path 4: MaxPool(3, s1, p1) -> 1x1 ConvBlock -----------------------
        xf = xb.astype(jnp.float32)
        m = xf                                              # centre tap
        for dy in range(3):
            for dx in range(3):
                oy, ox = dy - 1, dx - 1
                if oy == 0 and ox == 0:
                    continue
                # invalid neighbours fall back to the (always valid) centre value
                cand = jnp.where(valid(oy, ox), tap(xf, oy, ox), xf)
                m = jnp.maximum(m, cand)
        y4 = jnp.dot(w4_ref[...], m.astype(jnp.bfloat16),
                     preferred_element_type=jnp.float32)
        y4 = jnp.maximum(y4 + b4_ref[...], 0.0)

        # ---- 8-sublane-aligned, unmasked stores into the padded output slab ----
        o_ref[b, 0:c1p, :] = y1
        o_ref[b, c1p:c1p + c2p, :] = y2
        o_ref[b, c1p + c2p:c1p + c2p + c3p, :] = y3
        o_ref[b, c1p + c2p + c3p:c1p + c2p + c3p + c4p, :] = y4


# ------------------------- weight / BN preparation ---------------------------


def _fold_bn(params):
    w, b, gamma, beta, mean, var = params
    scale = gamma / jnp.sqrt(var + _BN_EPS)
    bias = (b - mean) * scale + beta
    return w * scale[:, None, None, None], bias


def _prep_1x1(params, cout_pad):
    """1x1 ConvBlock -> (W (Cout_pad, Cin) bf16, bias (Cout_pad, 1) f32)."""
    wf, bias = _fold_bn(params)                      # (Cout, Cin, 1, 1), (Cout,)
    cout, cin = wf.shape[0], wf.shape[1]
    w2 = wf.reshape(cout, cin)
    if cout_pad > cout:
        w2 = jnp.concatenate([w2, jnp.zeros((cout_pad - cout, cin), w2.dtype)], 0)
        bias = jnp.concatenate([bias, jnp.zeros((cout_pad - cout,), bias.dtype)], 0)
    return w2.astype(jnp.bfloat16), bias.reshape(cout_pad, 1).astype(jnp.float32)


def _prep_spatial(params, K, cout_pad):
    """KxK ConvBlock -> (W (K*K, Cout_pad, Cin) bf16, bias (Cout_pad, 1) f32)."""
    wf, bias = _fold_bn(params)                      # (Cout, Cin, K, K), (Cout,)
    cout, cin = wf.shape[0], wf.shape[1]
    w = jnp.transpose(wf, (2, 3, 0, 1)).reshape(K * K, cout, cin)  # t = dy*K + dx
    if cout_pad > cout:
        w = jnp.concatenate(
            [w, jnp.zeros((K * K, cout_pad - cout, cin), w.dtype)], axis=1)
        bias = jnp.concatenate([bias, jnp.zeros((cout_pad - cout,), bias.dtype)], 0)
    return w.astype(jnp.bfloat16), bias.reshape(cout_pad, 1).astype(jnp.float32)


# --------------------------------- forward -----------------------------------


def basic_block_forward(x_nchw, params, *, images_per_block=1):
    """Inception BasicBlock forward. Input/output are NCHW like PyTorch."""
    N, Cin, H, W = x_nchw.shape
    P = H * W
    nb = images_per_block
    assert N % nb == 0, "batch must be divisible by images_per_block"

    c1, c2a = params["p1"][0].shape[0], params["p2a"][0].shape[0]
    c2, c3a = params["p2b"][0].shape[0], params["p3a"][0].shape[0]
    c3, c4 = params["p3b"][0].shape[0], params["p4"][0].shape[0]
    c1p, c2p, c3p, c4p = (_round_up(c, 8) for c in (c1, c2, c3, c4))
    c_pad_total = c1p + c2p + c3p + c4p
    c_total = c1 + c2 + c3 + c4

    # Fused 1x1 projection weights: [path1 (padded to 8 rows); path2a; path3a].
    w1p, b1p = _prep_1x1(params["p1"], c1p)
    w2a, b2a = _prep_1x1(params["p2a"], c2a)
    w3a, b3a = _prep_1x1(params["p3a"], c3a)
    wf = jnp.concatenate([w1p, w2a, w3a], axis=0)
    bfv = jnp.concatenate([b1p, b2a, b3a], axis=0)
    w2b, b2b = _prep_spatial(params["p2b"], 3, c2p)
    w3b, b3b = _prep_spatial(params["p3b"], 5, c3p)
    w4, b4 = _prep_1x1(params["p4"], c4p)

    # NCHW is already lane-dense channels-first: just flatten spatial, no transpose.
    x = x_nchw.reshape(N, Cin, P).astype(jnp.bfloat16)

    # Per-lane spatial coordinates (host-built; works for any H, W).
    hpos = jnp.repeat(jnp.arange(H, dtype=jnp.int32), W).reshape(1, P)
    wpos = jnp.tile(jnp.arange(W, dtype=jnp.int32), H).reshape(1, P)

    kernel = functools.partial(
        _basic_block_kernel, H=H, W=W, nb=nb, c1p=c1p, c2a=c2a, c3a=c3a)

    def full_spec(a):
        ndim = a.ndim
        return pl.BlockSpec(a.shape, lambda n: (0,) * ndim)

    out_padded = pl.pallas_call(
        kernel,
        out_shape=jax.ShapeDtypeStruct((N, c_pad_total, P), jnp.float32),
        grid=(N // nb,),
        in_specs=[
            full_spec(hpos), full_spec(wpos),
            pl.BlockSpec((nb, Cin, P), lambda n: (n, 0, 0)),
            full_spec(wf), full_spec(bfv),
            full_spec(w2b), full_spec(b2b),
            full_spec(w3b), full_spec(b3b),
            full_spec(w4), full_spec(b4),
        ],
        out_specs=pl.BlockSpec((nb, c_pad_total, P), lambda n: (n, 0, 0)),
        compiler_params=pltpu.CompilerParams(
            dimension_semantics=("parallel",),
        ),
    )(hpos, wpos, x, wf, bfv, w2b, b2b, w3b, b3b, w4, b4)

    # Drop per-path Cout padding; (N, C, H*W) is already NCHW with flat spatial.
    parts = [
        out_padded[:, 0:c1],
        out_padded[:, c1p:c1p + c2],
        out_padded[:, c1p + c2p:c1p + c2p + c3],
        out_padded[:, c1p + c2p + c3p:c1p + c2p + c3p + c4],
    ]
    return jnp.concatenate(parts, axis=1).reshape(N, c_total, H, W)


# --------------------------- pure-JAX reference ------------------------------
# Mirrors the kernel's quantization points (bf16 weights/conv inputs, f32 accum)
# so the comparison only sees accumulation-order noise.


def _conv_bn_relu_ref(x_nhwc, params, K, pad):
    w, b, gamma, beta, mean, var = params
    scale = gamma / jnp.sqrt(var + _BN_EPS)
    bias = (b - mean) * scale + beta
    wf = (w * scale[:, None, None, None]).astype(jnp.bfloat16).astype(jnp.float32)
    xq = x_nhwc.astype(jnp.bfloat16).astype(jnp.float32)
    y = jax.lax.conv_general_dilated(
        xq, jnp.transpose(wf, (2, 3, 1, 0)),
        window_strides=(1, 1), padding=[(pad, pad), (pad, pad)],
        dimension_numbers=("NHWC", "HWIO", "NHWC"))
    return jnp.maximum(y + bias, 0.0)


def _reference_forward(x_nchw, params):
    x = jnp.transpose(x_nchw, (0, 2, 3, 1)).astype(jnp.float32)
    x1 = _conv_bn_relu_ref(x, params["p1"], 1, 0)
    x2 = _conv_bn_relu_ref(x, params["p2a"], 1, 0)
    x2 = _conv_bn_relu_ref(x2, params["p2b"], 3, 1)
    x3 = _conv_bn_relu_ref(x, params["p3a"], 1, 0)
    x3 = _conv_bn_relu_ref(x3, params["p3b"], 5, 2)
    xq = x.astype(jnp.bfloat16).astype(jnp.float32)
    x4 = jax.lax.reduce_window(
        xq, -jnp.inf, jax.lax.max,
        window_dimensions=(1, 3, 3, 1), window_strides=(1, 1, 1, 1),
        padding=((0, 0), (1, 1), (1, 1), (0, 0)))
    x4 = _conv_bn_relu_ref(x4, params["p4"], 1, 0)
    out = jnp.concatenate([x1, x2, x3, x4], axis=-1)
    return jnp.transpose(out, (0, 3, 1, 2))


# ------------------------------- parameters ----------------------------------


def init_conv_block_params(key, cin, cout, K):
    """Deterministic params for Conv2d(cin, cout, K) + BatchNorm2d(cout)."""
    kw, kb, kg, kbt, km, kv = jax.random.split(key, 6)
    fan_in = cin * K * K
    bound = 1.0 / (fan_in ** 0.5)
    w = jax.random.uniform(kw, (cout, cin, K, K), jnp.float32, -bound, bound)
    b = jax.random.uniform(kb, (cout,), jnp.float32, -bound, bound)
    gamma = jax.random.uniform(kg, (cout,), jnp.float32, 0.5, 1.5)
    beta = jax.random.uniform(kbt, (cout,), jnp.float32, -0.1, 0.1)
    running_mean = 0.1 * jax.random.normal(km, (cout,), jnp.float32)
    running_var = jax.random.uniform(kv, (cout,), jnp.float32, 0.5, 1.5)
    return (w, b, gamma, beta, running_mean, running_var)


def init_basic_block_params(key, in_channels, inner_channels):
    keys = jax.random.split(key, 6)
    ic = inner_channels
    return {
        "p1":  init_conv_block_params(keys[0], in_channels, ic[0], 1),
        "p2a": init_conv_block_params(keys[1], in_channels, ic[1], 1),
        "p2b": init_conv_block_params(keys[2], ic[1],        ic[2], 3),
        "p3a": init_conv_block_params(keys[3], in_channels, ic[3], 1),
        "p3b": init_conv_block_params(keys[4], ic[3],        ic[4], 5),
        "p4":  init_conv_block_params(keys[5], in_channels, ic[5], 1),
    }


# ---------------------------------- main --------------------------------------

if __name__ == "__main__":
    key = jax.random.PRNGKey(0)
    kx, kp = jax.random.split(key)

    N, Cin, H, W = 2, 4, 16, 16
    inner_channels = (4, 4, 6, 4, 6, 4)

    x = jax.random.normal(kx, (N, Cin, H, W), jnp.float32)
    params = init_basic_block_params(kp, Cin, inner_channels)

    out = jax.jit(basic_block_forward)(x, params)
    out = jax.block_until_ready(out)

    expected_c = (inner_channels[0] + inner_channels[2]
                  + inner_channels[4] + inner_channels[5])
    assert out.shape == (N, expected_c, H, W), out.shape
    assert bool(jnp.all(jnp.isfinite(out)))

    ref = _reference_forward(x, params)
    assert bool(jnp.allclose(out, ref, atol=1e-2, rtol=1e-2)), \
        float(jnp.max(jnp.abs(out - ref)))

    print("KERNEL_OK")
</pallas_src>

<mosaic_0001>
module attributes {stable_mosaic.version = 11 : i64} {
  func.func @_basic_block_kernel(%arg0: i32, %arg1: memref<1x256xi32, #tpu.memory_space<vmem>>, %arg2: memref<1x256xi32, #tpu.memory_space<vmem>>, %arg3: memref<1x4x256xbf16, #tpu.memory_space<vmem>>, %arg4: memref<16x4xbf16, #tpu.memory_space<vmem>>, %arg5: memref<16x1xf32, #tpu.memory_space<vmem>>, %arg6: memref<9x8x4xbf16, #tpu.memory_space<vmem>>, %arg7: memref<8x1xf32, #tpu.memory_space<vmem>>, %arg8: memref<25x8x4xbf16, #tpu.memory_space<vmem>>, %arg9: memref<8x1xf32, #tpu.memory_space<vmem>>, %arg10: memref<8x4xbf16, #tpu.memory_space<vmem>>, %arg11: memref<8x1xf32, #tpu.memory_space<vmem>>, %arg12: memref<1x32x256xf32, #tpu.memory_space<vmem>>) attributes {dimension_semantics = [#tpu.dimension_semantics<parallel>], iteration_bounds = array<i64: 2>, scalar_prefetch = 0 : i64, scratch_operands = 0 : i64, tpu.core_type = #tpu.core_type<tc>, window_params = [{pipeline_mode = #tpu.pipeline_mode<synchronous>, transform_indices = @transform_0, window_bounds = array<i64: 1, 256>}, {pipeline_mode = #tpu.pipeline_mode<synchronous>, transform_indices = @transform_1, window_bounds = array<i64: 1, 256>}, {transform_indices = @transform_2, window_bounds = array<i64: 1, 4, 256>}, {pipeline_mode = #tpu.pipeline_mode<synchronous>, transform_indices = @transform_3, window_bounds = array<i64: 16, 4>}, {pipeline_mode = #tpu.pipeline_mode<synchronous>, transform_indices = @transform_4, window_bounds = array<i64: 16, 1>}, {pipeline_mode = #tpu.pipeline_mode<synchronous>, transform_indices = @transform_5, window_bounds = array<i64: 9, 8, 4>}, {pipeline_mode = #tpu.pipeline_mode<synchronous>, transform_indices = @transform_6, window_bounds = array<i64: 8, 1>}, {pipeline_mode = #tpu.pipeline_mode<synchronous>, transform_indices = @transform_7, window_bounds = array<i64: 25, 8, 4>}, {pipeline_mode = #tpu.pipeline_mode<synchronous>, transform_indices = @transform_8, window_bounds = array<i64: 8, 1>}, {pipeline_mode = #tpu.pipeline_mode<synchronous>, transform_indices = @transform_9, window_bounds = array<i64: 8, 4>}, {pipeline_mode = #tpu.pipeline_mode<synchronous>, transform_indices = @transform_10, window_bounds = array<i64: 8, 1>}, {transform_indices = @transform_11, window_bounds = array<i64: 1, 32, 256>}]} {
    %c0 = arith.constant 0 : index
    %c0_0 = arith.constant 0 : index
    %0 = vector.load %arg1[%c0, %c0_0] : memref<1x256xi32, #tpu.memory_space<vmem>>, vector<1x256xi32>
    %c0_1 = arith.constant 0 : index
    %c0_2 = arith.constant 0 : index
    %1 = vector.load %arg2[%c0_1, %c0_2] : memref<1x256xi32, #tpu.memory_space<vmem>>, vector<1x256xi32>
    %c0_3 = arith.constant 0 : index
    %c0_4 = arith.constant 0 : index
    %c0_5 = arith.constant 0 : index
    %2 = vector.load %arg3[%c0_3, %c0_4, %c0_5] : memref<1x4x256xbf16, #tpu.memory_space<vmem>>, vector<1x4x256xbf16>
    %3 = vector.shape_cast %2 : vector<1x4x256xbf16> to vector<4x256xbf16>
    %c0_6 = arith.constant 0 : index
    %c0_7 = arith.constant 0 : index
    %4 = vector.load %arg4[%c0_6, %c0_7] : memref<16x4xbf16, #tpu.memory_space<vmem>>, vector<16x4xbf16>
    %cst = arith.constant dense<0.000000e+00> : vector<16x256xf32>
    %5 = tpu.matmul %4, %3, %cst {dimension_numbers = #tpu.dot_dimension_numbers<[1], [0], [0], [1], [0, 0, 1, 1], [], []>} : vector<16x4xbf16>, vector<4x256xbf16>, vector<16x256xf32> -> vector<16x256xf32>
    %c0_8 = arith.constant 0 : index
    %c0_9 = arith.constant 0 : index
    %6 = vector.load %arg5[%c0_8, %c0_9] : memref<16x1xf32, #tpu.memory_space<vmem>>, vector<16x1xf32>
    %7 = vector.broadcast %6 : vector<16x1xf32> to vector<16x256xf32>
    %8 = arith.addf %5, %7 : vector<16x256xf32>
    %cst_10 = arith.constant 0.000000e+00 : f32
    %9 = vector.broadcast %cst_10 : f32 to vector<16x256xf32>
    %10 = arith.maximumf %8, %9 : vector<16x256xf32>
    %11 = vector.extract_strided_slice %10 {offsets = [0, 0], sizes = [8, 256], strides = [1, 1]} : vector<16x256xf32> to vector<8x256xf32>
    %12 = vector.extract_strided_slice %10 {offsets = [8, 0], sizes = [4, 256], strides = [1, 1]} : vector<16x256xf32> to vector<4x256xf32>
    %13 = vector.extract_strided_slice %10 {offsets = [12, 0], sizes = [4, 256], strides = [1, 1]} : vector<16x256xf32> to vector<4x256xf32>
    %cst_11 = arith.constant 0.000000e+00 : f32
    %14 = vector.broadcast %cst_11 : f32 to vector<8x256xf32>
    %c1_i32 = arith.constant 1 : i32
    %15 = vector.broadcast %c1_i32 : i32 to vector<1x256xi32>
    %16 = arith.cmpi sge, %0, %15 : vector<1x256xi32>
    %c17_i32 = arith.constant 17 : i32
    %17 = vector.broadcast %c17_i32 : i32 to vector<1x256xi32>
    %18 = arith.cmpi slt, %0, %17 : vector<1x256xi32>
    %19 = arith.andi %16, %18 : vector<1x256xi1>
    %c1_i32_12 = arith.constant 1 : i32
    %20 = vector.broadcast %c1_i32_12 : i32 to vector<1x256xi32>
    %21 = arith.cmpi sge, %1, %20 : vector<1x256xi32>
    %22 = arith.andi %19, %21 : vector<1x256xi1>
    %c17_i32_13 = arith.constant 17 : i32
    %23 = vector.broadcast %c17_i32_13 : i32 to vector<1x256xi32>
    %24 = arith.cmpi slt, %1, %23 : vector<1x256xi32>
    %25 = arith.andi %22, %24 : vector<1x256xi1>
    %c17_i32_14 = arith.constant 17 : i32
    %26 = tpu.dynamic_rotate %12 by %c17_i32_14 dim 1 : vector<4x256xf32>, i32 -> vector<4x256xf32>
    %cst_15 = arith.constant 0.000000e+00 : f32
    %27 = vector.shape_cast %25 : vector<1x256xi1> to vector<1x256xi1>
    %28 = vector.broadcast %27 : vector<1x256xi1> to vector<4x256xi1>
    %29 = vector.broadcast %cst_15 : f32 to vector<4x256xf32>
    %30 = arith.select %28, %26, %29 : vector<4x256xi1>, vector<4x256xf32>
    %c0_16 = arith.constant 0 : index
    %c0_17 = arith.constant 0 : index
    %c0_18 = arith.constant 0 : index
    %31 = vector.load %arg6[%c0_16, %c0_17, %c0_18] : memref<9x8x4xbf16, #tpu.memory_space<vmem>>, vector<1x8x4xbf16>
    %32 = vector.shape_cast %31 : vector<1x8x4xbf16> to vector<8x4xbf16>
    %33 = arith.truncf %30 : vector<4x256xf32> to vector<4x256xbf16>
    %cst_19 = arith.constant dense<0.000000e+00> : vector<8x256xf32>
    %34 = tpu.matmul %32, %33, %cst_19 {dimension_numbers = #tpu.dot_dimension_numbers<[1], [0], [0], [1], [0, 0, 1, 1], [], []>} : vector<8x4xbf16>, vector<4x256xbf16>, vector<8x256xf32> -> vector<8x256xf32>
    %35 = arith.addf %14, %34 : vector<8x256xf32>
    %c1_i32_20 = arith.constant 1 : i32
    %36 = vector.broadcast %c1_i32_20 : i32 to vector<1x256xi32>
    %37 = arith.cmpi sge, %0, %36 : vector<1x256xi32>
    %c17_i32_21 = arith.constant 17 : i32
    %38 = vector.broadcast %c17_i32_21 : i32 to vector<1x256xi32>
    %39 = arith.cmpi slt, %0, %38 : vector<1x256xi32>
    %40 = arith.andi %37, %39 : vector<1x256xi1>
    %c0_i32 = arith.constant 0 : i32
    %41 = vector.broadcast %c0_i32 : i32 to vector<1x256xi32>
    %42 = arith.cmpi sge, %1, %41 : vector<1x256xi32>
    %43 = arith.andi %40, %42 : vector<1x256xi1>
    %c16_i32 = arith.constant 16 : i32
    %44 = vector.broadcast %c16_i32 : i32 to vector<1x256xi32>
    %45 = arith.cmpi slt, %1, %44 : vector<1x256xi32>
    %46 = arith.andi %43, %45 : vector<1x256xi1>
    %c16_i32_22 = arith.constant 16 : i32
    %47 = tpu.dynamic_rotate %12 by %c16_i32_22 dim 1 : vector<4x256xf32>, i32 -> vector<4x256xf32>
    %cst_23 = arith.constant 0.000000e+00 : f32
    %48 = vector.shape_cast %46 : vector<1x256xi1> to vector<1x256xi1>
    %49 = vector.broadcast %48 : vector<1x256xi1> to vector<4x256xi1>
    %50 = vector.broadcast %cst_23 : f32 to vector<4x256xf32>
    %51 = arith.select %49, %47, %50 : vector<4x256xi1>, vector<4x256xf32>
    %c1 = arith.constant 1 : index
    %c0_24 = arith.constant 0 : index
    %c0_25 = arith.constant 0 : index
    %52 = vector.load %arg6[%c1, %c0_24, %c0_25] : memref<9x8x4xbf16, #tpu.memory_space<vmem>>, vector<1x8x4xbf16>
    %53 = vector.shape_cast %52 : vector<1x8x4xbf16> to vector<8x4xbf16>
    %54 = arith.truncf %51 : vector<4x256xf32> to vector<4x256xbf16>
    %cst_26 = arith.constant dense<0.000000e+00> : vector<8x256xf32>
    %55 = tpu.matmul %53, %54, %cst_26 {dimension_numbers = #tpu.dot_dimension_numbers<[1], [0], [0], [1], [0, 0, 1, 1], [], []>} : vector<8x4xbf16>, vector<4x256xbf16>, vector<8x256xf32> -> vector<8x256xf32>
    %56 = arith.addf %35, %55 : vector<8x256xf32>
    %c1_i32_27 = arith.constant 1 : i32
    %57 = vector.broadcast %c1_i32_27 : i32 to vector<1x256xi32>
    %58 = arith.cmpi sge, %0, %57 : vector<1x256xi32>
    %c17_i32_28 = arith.constant 17 : i32
    %59 = vector.broadcast %c17_i32_28 : i32 to vector<1x256xi32>
    %60 = arith.cmpi slt, %0, %59 : vector<1x256xi32>
    %61 = arith.andi %58, %60 : vector<1x256xi1>
    %c-1_i32 = arith.constant -1 : i32
    %62 = vector.broadcast %c-1_i32 : i32 to vector<1x256xi32>
    %63 = arith.cmpi sge, %1, %62 : vector<1x256xi32>
    %64 = arith.andi %61, %63 : vector<1x256xi1>
    %c15_i32 = arith.constant 15 : i32
    %65 = vector.broadcast %c15_i32 : i32 to vector<1x256xi32>
    %66 = arith.cmpi slt, %1, %65 : vector<1x256xi32>
    %67 = arith.andi %64, %66 : vector<1x256xi1>
    %c15_i32_29 = arith.constant 15 : i32
    %68 = tpu.dynamic_rotate %12 by %c15_i32_29 dim 1 : vector<4x256xf32>, i32 -> vector<4x256xf32>
    %cst_30 = arith.constant 0.000000e+00 : f32
    %69 = vector.shape_cast %67 : vector<1x256xi1> to vector<1x256xi1>
    %70 = vector.broadcast %69 : vector<1x256xi1> to vector<4x256xi1>
    %71 = vector.broadcast %cst_30 : f32 to vector<4x256xf32>
    %72 = arith.select %70, %68, %71 : vector<4x256xi1>, vector<4x256xf32>
    %c2 = arith.constant 2 : index
    %c0_31 = arith.constant 0 : index
    %c0_32 = arith.constant 0 : index
    %73 = vector.load %arg6[%c2, %c0_31, %c0_32] : memref<9x8x4xbf16, #tpu.memory_space<vmem>>, vector<1x8x4xbf16>
    %74 = vector.shape_cast %73 : vector<1x8x4xbf16> to vector<8x4xbf16>
    %75 = arith.truncf %72 : vector<4x256xf32> to vector<4x256xbf16>
    %cst_33 = arith.constant dense<0.000000e+00> : vector<8x256xf32>
    %76 = tpu.matmul %74, %75, %cst_33 {dimension_numbers = #tpu.dot_dimension_numbers<[1], [0], [0], [1], [0, 0, 1, 1], [], []>} : vector<8x4xbf16>, vector<4x256xbf16>, vector<8x256xf32> -> vector<8x256xf32>
    %77 = arith.addf %56, %76 : vector<8x256xf32>
    %c0_i32_34 = arith.constant 0 : i32
    %78 = vector.broadcast %c0_i32_34 : i32 to vector<1x256xi32>
    %79 = arith.cmpi sge, %0, %78 : vector<1x256xi32>
    %c16_i32_35 = arith.constant 16 : i32
    %80 = vector.broadcast %c16_i32_35 : i32 to vector<1x256xi32>
    %81 = arith.cmpi slt, %0, %80 : vector<1x256xi32>
    %82 = arith.andi %79, %81 : vector<1x256xi1>
    %c1_i32_36 = arith.constant 1 : i32
    %83 = vector.broadcast %c1_i32_36 : i32 to vector<1x256xi32>
    %84 = arith.cmpi sge, %1, %83 : vector<1x256xi32>
    %85 = arith.andi %82, %84 : vector<1x256xi1>
    %c17_i32_37 = arith.constant 17 : i32
    %86 = vector.broadcast %c17_i32_37 : i32 to vector<1x256xi32>
    %87 = arith.cmpi slt, %1, %86 : vector<1x256xi32>
    %88 = arith.andi %85, %87 : vector<1x256xi1>
    %c1_i32_38 = arith.constant 1 : i32
    %89 = tpu.dynamic_rotate %12 by %c1_i32_38 dim 1 : vector<4x256xf32>, i32 -> vector<4x256xf32>
    %cst_39 = arith.constant 0.000000e+00 : f32
    %90 = vector.shape_cast %88 : vector<1x256xi1> to vector<1x256xi1>
    %91 = vector.broadcast %90 : vector<1x256xi1> to vector<4x256xi1>
    %92 = vector.broadcast %cst_39 : f32 to vector<4x256xf32>
    %93 = arith.select %91, %89, %92 : vector<4x256xi1>, vector<4x256xf32>
    %c3 = arith.constant 3 : index
    %c0_40 = arith.constant 0 : index
    %c0_41 = arith.constant 0 : index
    %94 = vector.load %arg6[%c3, %c0_40, %c0_41] : memref<9x8x4xbf16, #tpu.memory_space<vmem>>, vector<1x8x4xbf16>
    %95 = vector.shape_cast %94 : vector<1x8x4xbf16> to vector<8x4xbf16>
    %96 = arith.truncf %93 : vector<4x256xf32> to vector<4x256xbf16>
    %cst_42 = arith.constant dense<0.000000e+00> : vector<8x256xf32>
    %97 = tpu.matmul %95, %96, %cst_42 {dimension_numbers = #tpu.dot_dimension_numbers<[1], [0], [0], [1], [0, 0, 1, 1], [], []>} : vector<8x4xbf16>, vector<4x256xbf16>, vector<8x256xf32> -> vector<8x256xf32>
    %98 = arith.addf %77, %97 : vector<8x256xf32>
    %c0_i32_43 = arith.constant 0 : i32
    %99 = vector.broadcast %c0_i32_43 : i32 to vector<1x256xi32>
    %100 = arith.cmpi sge, %0, %99 : vector<1x256xi32>
    %c16_i32_44 = arith.constant 16 : i32
    %101 = vector.broadcast %c16_i32_44 : i32 to vector<1x256xi32>
    %102 = arith.cmpi slt, %0, %101 : vector<1x256xi32>
    %103 = arith.andi %100, %102 : vector<1x256xi1>
    %c0_i32_45 = arith.constant 0 : i32
    %104 = vector.broadcast %c0_i32_45 : i32 to vector<1x256xi32>
    %105 = arith.cmpi sge, %1, %104 : vector<1x256xi32>
    %106 = arith.andi %103, %105 : vector<1x256xi1>
    %c16_i32_46 = arith.constant 16 : i32
    %107 = vector.broadcast %c16_i32_46 : i32 to vector<1x256xi32>
    %108 = arith.cmpi slt, %1, %107 : vector<1x256xi32>
    %109 = arith.andi %106, %108 : vector<1x256xi1>
    %cst_47 = arith.constant 0.000000e+00 : f32
    %110 = vector.shape_cast %109 : vector<1x256xi1> to vector<1x256xi1>
    %111 = vector.broadcast %110 : vector<1x256xi1> to vector<4x256xi1>
    %112 = vector.broadcast %cst_47 : f32 to vector<4x256xf32>
    %113 = arith.select %111, %12, %112 : vector<4x256xi1>, vector<4x256xf32>
    %c4 = arith.constant 4 : index
    %c0_48 = arith.constant 0 : index
    %c0_49 = arith.constant 0 : index
    %114 = vector.load %arg6[%c4, %c0_48, %c0_49] : memref<9x8x4xbf16, #tpu.memory_space<vmem>>, vector<1x8x4xbf16>
    %115 = vector.shape_cast %114 : vector<1x8x4xbf16> to vector<8x4xbf16>
    %116 = arith.truncf %113 : vector<4x256xf32> to vector<4x256xbf16>
    %cst_50 = arith.constant dense<0.000000e+00> : vector<8x256xf32>
    %117 = tpu.matmul %115, %116, %cst_50 {dimension_numbers = #tpu.dot_dimension_numbers<[1], [0], [0], [1], [0, 0, 1, 1], [], []>} : vector<8x4xbf16>, vector<4x256xbf16>, vector<8x256xf32> -> vector<8x256xf32>
    %118 = arith.addf %98, %117 : vector<8x256xf32>
    %c0_i32_51 = arith.constant 0 : i32
    %119 = vector.broadcast %c0_i32_51 : i32 to vector<1x256xi32>
    %120 = arith.cmpi sge, %0, %119 : vector<1x256xi32>
    %c16_i32_52 = arith.constant 16 : i32
    %121 = vector.broadcast %c16_i32_52 : i32 to vector<1x256xi32>
    %122 = arith.cmpi slt, %0, %121 : vector<1x256xi32>
    %123 = arith.andi %120, %122 : vector<1x256xi1>
    %c-1_i32_53 = arith.constant -1 : i32
    %124 = vector.broadcast %c-1_i32_53 : i32 to vector<1x256xi32>
    %125 = arith.cmpi sge, %1, %124 : vector<1x256xi32>
    %126 = arith.andi %123, %125 : vector<1x256xi1>
    %c15_i32_54 = arith.constant 15 : i32
    %127 = vector.broadcast %c15_i32_54 : i32 to vector<1x256xi32>
    %128 = arith.cmpi slt, %1, %127 : vector<1x256xi32>
    %129 = arith.andi %126, %128 : vector<1x256xi1>
    %c255_i32 = arith.constant 255 : i32
    %130 = tpu.dynamic_rotate %12 by %c255_i32 dim 1 : vector<4x256xf32>, i32 -> vector<4x256xf32>
    %cst_55 = arith.constant 0.000000e+00 : f32
    %131 = vector.shape_cast %129 : vector<1x256xi1> to vector<1x256xi1>
    %132 = vector.broadcast %131 : vector<1x256xi1> to vector<4x256xi1>
    %133 = vector.broadcast %cst_55 : f32 to vector<4x256xf32>
    %134 = arith.select %132, %130, %133 : vector<4x256xi1>, vector<4x256xf32>
    %c5 = arith.constant 5 : index
    %c0_56 = arith.constant 0 : index
    %c0_57 = arith.constant 0 : index
    %135 = vector.load %arg6[%c5, %c0_56, %c0_57] : memref<9x8x4xbf16, #tpu.memory_space<vmem>>, vector<1x8x4xbf16>
    %136 = vector.shape_cast %135 : vector<1x8x4xbf16> to vector<8x4xbf16>
    %137 = arith.truncf %134 : vector<4x256xf32> to vector<4x256xbf16>
    %cst_58 = arith.constant dense<0.000000e+00> : vector<8x256xf32>
    %138 = tpu.matmul %136, %137, %cst_58 {dimension_numbers = #tpu.dot_dimension_numbers<[1], [0], [0], [1], [0, 0, 1, 1], [], []>} : vector<8x4xbf16>, vector<4x256xbf16>, vector<8x256xf32> -> vector<8x256xf32>
    %139 = arith.addf %118, %138 : vector<8x256xf32>
    %c-1_i32_59 = arith.constant -1 : i32
    %140 = vector.broadcast %c-1_i32_59 : i32 to vector<1x256xi32>
    %141 = arith.cmpi sge, %0, %140 : vector<1x256xi32>
    %c15_i32_60 = arith.constant 15 : i32
    %142 = vector.broadcast %c15_i32_60 : i32 to vector<1x256xi32>
    %143 = arith.cmpi slt, %0, %142 : vector<1x256xi32>
    %144 = arith.andi %141, %143 : vector<1x256xi1>
    %c1_i32_61 = arith.constant 1 : i32
    %145 = vector.broadcast %c1_i32_61 : i32 to vector<1x256xi32>
    %146 = arith.cmpi sge, %1, %145 : vector<1x256xi32>
    %147 = arith.andi %144, %146 : vector<1x256xi1>
    %c17_i32_62 = arith.constant 17 : i32
    %148 = vector.broadcast %c17_i32_62 : i32 to vector<1x256xi32>
    %149 = arith.cmpi slt, %1, %148 : vector<1x256xi32>
    %150 = arith.andi %147, %149 : vector<1x256xi1>
    %c241_i32 = arith.constant 241 : i32
    %151 = tpu.dynamic_rotate %12 by %c241_i32 dim 1 : vector<4x256xf32>, i32 -> vector<4x256xf32>
    %cst_63 = arith.constant 0.000000e+00 : f32
    %152 = vector.shape_cast %150 : vector<1x256xi1> to vector<1x256xi1>
    %153 = vector.broadcast %152 : vector<1x256xi1> to vector<4x256xi1>
    %154 = vector.broadcast %cst_63 : f32 to vector<4x256xf32>
    %155 = arith.select %153, %151, %154 : vector<4x256xi1>, vector<4x256xf32>
    %c6 = arith.constant 6 : index
    %c0_64 = arith.constant 0 : index
    %c0_65 = arith.constant 0 : index
    %156 = vector.load %arg6[%c6, %c0_64, %c0_65] : memref<9x8x4xbf16, #tpu.memory_space<vmem>>, vector<1x8x4xbf16>
    %157 = vector.shape_cast %156 : vector<1x8x4xbf16> to vector<8x4xbf16>
    %158 = arith.truncf %155 : vector<4x256xf32> to vector<4x256xbf16>
    %cst_66 = arith.constant dense<0.000000e+00> : vector<8x256xf32>
    %159 = tpu.matmul %157, %158, %cst_66 {dimension_numbers = #tpu.dot_dimension_numbers<[1], [0], [0], [1], [0, 0, 1, 1], [], []>} : vector<8x4xbf16>, vector<4x256xbf16>, vector<8x256xf32> -> vector<8x256xf32>
    %160 = arith.addf %139, %159 : vector<8x256xf32>
    %c-1_i32_67 = arith.constant -1 : i32
    %161 = vector.broadcast %c-1_i32_67 : i32 to vector<1x256xi32>
    %162 = arith.cmpi sge, %0, %161 : vector<1x256xi32>
    %c15_i32_68 = arith.constant 15 : i32
    %163 = vector.broadcast %c15_i32_68 : i32 to vector<1x256xi32>
    %164 = arith.cmpi slt, %0, %163 : vector<1x256xi32>
    %165 = arith.andi %162, %164 : vector<1x256xi1>
    %c0_i32_69 = arith.constant 0 : i32
    %166 = vector.broadcast %c0_i32_69 : i32 to vector<1x256xi32>
    %167 = arith.cmpi sge, %1, %166 : vector<1x256xi32>
    %168 = arith.andi %165, %167 : vector<1x256xi1>
    %c16_i32_70 = arith.constant 16 : i32
    %169 = vector.broadcast %c16_i32_70 : i32 to vector<1x256xi32>
    %170 = arith.cmpi slt, %1, %169 : vector<1x256xi32>
    %171 = arith.andi %168, %170 : vector<1x256xi1>
    %c240_i32 = arith.constant 240 : i32
    %172 = tpu.dynamic_rotate %12 by %c240_i32 dim 1 : vector<4x256xf32>, i32 -> vector<4x256xf32>
    %cst_71 = arith.constant 0.000000e+00 : f32
    %173 = vector.shape_cast %171 : vector<1x256xi1> to vector<1x256xi1>
    %174 = vector.broadcast %173 : vector<1x256xi1> to vector<4x256xi1>
    %175 = vector.broadcast %cst_71 : f32 to vector<4x256xf32>
    %176 = arith.select %174, %172, %175 : vector<4x256xi1>, vector<4x256xf32>
    %c7 = arith.constant 7 : index
    %c0_72 = arith.constant 0 : index
    %c0_73 = arith.constant 0 : index
    %177 = vector.load %arg6[%c7, %c0_72, %c0_73] : memref<9x8x4xbf16, #tpu.memory_space<vmem>>, vector<1x8x4xbf16>
    %178 = vector.shape_cast %177 : vector<1x8x4xbf16> to vector<8x4xbf16>
    %179 = arith.truncf %176 : vector<4x256xf32> to vector<4x256xbf16>
    %cst_74 = arith.constant dense<0.000000e+00> : vector<8x256xf32>
    %180 = tpu.matmul %178, %179, %cst_74 {dimension_numbers = #tpu.dot_dimension_numbers<[1], [0], [0], [1], [0, 0, 1, 1], [], []>} : vector<8x4xbf16>, vector<4x256xbf16>, vector<8x256xf32> -> vector<8x256xf32>
    %181 = arith.addf %160, %180 : vector<8x256xf32>
    %c-1_i32_75 = arith.constant -1 : i32
    %182 = vector.broadcast %c-1_i32_75 : i32 to vector<1x256xi32>
    %183 = arith.cmpi sge, %0, %182 : vector<1x256xi32>
    %c15_i32_76 = arith.constant 15 : i32
    %184 = vector.broadcast %c15_i32_76 : i32 to vector<1x256xi32>
    %185 = arith.cmpi slt, %0, %184 : vector<1x256xi32>
    %186 = arith.andi %183, %185 : vector<1x256xi1>
    %c-1_i32_77 = arith.constant -1 : i32
    %187 = vector.broadcast %c-1_i32_77 : i32 to vector<1x256xi32>
    %188 = arith.cmpi sge, %1, %187 : vector<1x256xi32>
    %189 = arith.andi %186, %188 : vector<1x256xi1>
    %c15_i32_78 = arith.constant 15 : i32
    %190 = vector.broadcast %c15_i32_78 : i32 to vector<1x256xi32>
    %191 = arith.cmpi slt, %1, %190 : vector<1x256xi32>
    %192 = arith.andi %189, %191 : vector<1x256xi1>
    %c239_i32 = arith.constant 239 : i32
    %193 = tpu.dynamic_rotate %12 by %c239_i32 dim 1 : vector<4x256xf32>, i32 -> vector<4x256xf32>
    %cst_79 = arith.constant 0.000000e+00 : f32
    %194 = vector.shape_cast %192 : vector<1x256xi1> to vector<1x256xi1>
    %195 = vector.broadcast %194 : vector<1x256xi1> to vector<4x256xi1>
    %196 = vector.broadcast %cst_79 : f32 to vector<4x256xf32>
    %197 = arith.select %195, %193, %196 : vector<4x256xi1>, vector<4x256xf32>
    %c8 = arith.constant 8 : index
    %c0_80 = arith.constant 0 : index
    %c0_81 = arith.constant 0 : index
    %198 = vector.load %arg6[%c8, %c0_80, %c0_81] : memref<9x8x4xbf16, #tpu.memory_space<vmem>>, vector<1x8x4xbf16>
    %199 = vector.shape_cast %198 : vector<1x8x4xbf16> to vector<8x4xbf16>
    %200 = arith.truncf %197 : vector<4x256xf32> to vector<4x256xbf16>
    %cst_82 = arith.constant dense<0.000000e+00> : vector<8x256xf32>
    %201 = tpu.matmul %199, %200, %cst_82 {dimension_numbers = #tpu.dot_dimension_numbers<[1], [0], [0], [1], [0, 0, 1, 1], [], []>} : vector<8x4xbf16>, vector<4x256xbf16>, vector<8x256xf32> -> vector<8x256xf32>
    %202 = arith.addf %181, %201 : vector<8x256xf32>
    %c0_83 = arith.constant 0 : index
    %c0_84 = arith.constant 0 : index
    %203 = vector.load %arg7[%c0_83, %c0_84] : memref<8x1xf32, #tpu.memory_space<vmem>>, vector<8x1xf32>
    %204 = vector.broadcast %203 : vector<8x1xf32> to vector<8x256xf32>
    %205 = arith.addf %202, %204 : vector<8x256xf32>
    %cst_85 = arith.constant 0.000000e+00 : f32
    %206 = vector.broadcast %cst_85 : f32 to vector<8x256xf32>
    %207 = arith.maximumf %205, %206 : vector<8x256xf32>
    %cst_86 = arith.constant 0.000000e+00 : f32
    %208 = vector.broadcast %cst_86 : f32 to vector<8x256xf32>
    %c2_i32 = arith.constant 2 : i32
    %209 = vector.broadcast %c2_i32 : i32 to vector<1x256xi32>
    %210 = arith.cmpi sge, %0, %209 : vector<1x256xi32>
    %c18_i32 = arith.constant 18 : i32
    %211 = vector.broadcast %c18_i32 : i32 to vector<1x256xi32>
    %212 = arith.cmpi slt, %0, %211 : vector<1x256xi32>
    %213 = arith.andi %210, %212 : vector<1x256xi1>
    %c2_i32_87 = arith.constant 2 : i32
    %214 = vector.broadcast %c2_i32_87 : i32 to vector<1x256xi32>
    %215 = arith.cmpi sge, %1, %214 : vector<1x256xi32>
    %216 = arith.andi %213, %215 : vector<1x256xi1>
    %c18_i32_88 = arith.constant 18 : i32
    %217 = vector.broadcast %c18_i32_88 : i32 to vector<1x256xi32>
    %218 = arith.cmpi slt, %1, %217 : vector<1x256xi32>
    %219 = arith.andi %216, %218 : vector<1x256xi1>
    %c34_i32 = arith.constant 34 : i32
    %220 = tpu.dynamic_rotate %13 by %c34_i32 dim 1 : vector<4x256xf32>, i32 -> vector<4x256xf32>
    %cst_89 = arith.constant 0.000000e+00 : f32
    %221 = vector.shape_cast %219 : vector<1x256xi1> to vector<1x256xi1>
    %222 = vector.broadcast %221 : vector<1x256xi1> to vector<4x256xi1>
    %223 = vector.broadcast %cst_89 : f32 to vector<4x256xf32>
    %224 = arith.select %222, %220, %223 : vector<4x256xi1>, vector<4x256xf32>
    %c0_90 = arith.constant 0 : index
    %c0_91 = arith.constant 0 : index
    %c0_92 = arith.constant 0 : index
    %225 = vector.load %arg8[%c0_90, %c0_91, %c0_92] : memref<25x8x4xbf16, #tpu.memory_space<vmem>>, vector<1x8x4xbf16>
    %226 = vector.shape_cast %225 : vector<1x8x4xbf16> to vector<8x4xbf16>
    %227 = arith.truncf %224 : vector<4x256xf32> to vector<4x256xbf16>
    %cst_93 = arith.constant dense<0.000000e+00> : vector<8x256xf32>
    %228 = tpu.matmul %226, %227, %cst_93 {dimension_numbers = #tpu.dot_dimension_numbers<[1], [0], [0], [1], [0, 0, 1, 1], [], []>} : vector<8x4xbf16>, vector<4x256xbf16>, vector<8x256xf32> -> vector<8x256xf32>
    %229 = arith.addf %208, %228 : vector<8x256xf32>
    %c2_i32_94 = arith.constant 2 : i32
    %230 = vector.broadcast %c2_i32_94 : i32 to vector<1x256xi32>
    %231 = arith.cmpi sge, %0, %230 : vector<1x256xi32>
    %c18_i32_95 = arith.constant 18 : i32
    %232 = vector.broadcast %c18_i32_95 : i32 to vector<1x256xi32>
    %233 = arith.cmpi slt, %0, %232 : vector<1x256xi32>
    %234 = arith.andi %231, %233 : vector<1x256xi1>
    %c1_i32_96 = arith.constant 1 : i32
    %235 = vector.broadcast %c1_i32_96 : i32 to vector<1x256xi32>
    %236 = arith.cmpi sge, %1, %235 : vector<1x256xi32>
    %237 = arith.andi %234, %236 : vector<1x256xi1>
    %c17_i32_97 = arith.constant 17 : i32
    %238 = vector.broadcast %c17_i32_97 : i32 to vector<1x256xi32>
    %239 = arith.cmpi slt, %1, %238 : vector<1x256xi32>
    %240 = arith.andi %237, %239 : vector<1x256xi1>
    %c33_i32 = arith.constant 33 : i32
    %241 = tpu.dynamic_rotate %13 by %c33_i32 dim 1 : vector<4x256xf32>, i32 -> vector<4x256xf32>
    %cst_98 = arith.constant 0.000000e+00 : f32
    %242 = vector.shape_cast %240 : vector<1x256xi1> to vector<1x256xi1>
    %243 = vector.broadcast %242 : vector<1x256xi1> to vector<4x256xi1>
    %244 = vector.broadcast %cst_98 : f32 to vector<4x256xf32>
    %245 = arith.select %243, %241, %244 : vector<4x256xi1>, vector<4x256xf32>
    %c1_99 = arith.constant 1 : index
    %c0_100 = arith.constant 0 : index
    %c0_101 = arith.constant 0 : index
    %246 = vector.load %arg8[%c1_99, %c0_100, %c0_101] : memref<25x8x4xbf16, #tpu.memory_space<vmem>>, vector<1x8x4xbf16>
    %247 = vector.shape_cast %246 : vector<1x8x4xbf16> to vector<8x4xbf16>
    %248 = arith.truncf %245 : vector<4x256xf32> to vector<4x256xbf16>
    %cst_102 = arith.constant dense<0.000000e+00> : vector<8x256xf32>
    %249 = tpu.matmul %247, %248, %cst_102 {dimension_numbers = #tpu.dot_dimension_numbers<[1], [0], [0], [1], [0, 0, 1, 1], [], []>} : vector<8x4xbf16>, vector<4x256xbf16>, vector<8x256xf32> -> vector<8x256xf32>
    %250 = arith.addf %229, %249 : vector<8x256xf32>
    %c2_i32_103 = arith.constant 2 : i32
    %251 = vector.broadcast %c2_i32_103 : i32 to vector<1x256xi32>
    %252 = arith.cmpi sge, %0, %251 : vector<1x256xi32>
    %c18_i32_104 = arith.constant 18 : i32
    %253 = vector.broadcast %c18_i32_104 : i32 to vector<1x256xi32>
    %254 = arith.cmpi slt, %0, %253 : vector<1x256xi32>
    %255 = arith.andi %252, %254 : vector<1x256xi1>
    %c0_i32_105 = arith.constant 0 : i32
    %256 = vector.broadcast %c0_i32_105 : i32 to vector<1x256xi32>
    %257 = arith.cmpi sge, %1, %256 : vector<1x256xi32>
    %258 = arith.andi %255, %257 : vector<1x256xi1>
    %c16_i32_106 = arith.constant 16 : i32
    %259 = vector.broadcast %c16_i32_106 : i32 to vector<1x256xi32>
    %260 = arith.cmpi slt, %1, %259 : vector<1x256xi32>
    %261 = arith.andi %258, %260 : vector<1x256xi1>
    %c32_i32 = arith.constant 32 : i32
    %262 = tpu.dynamic_rotate %13 by %c32_i32 dim 1 : vector<4x256xf32>, i32 -> vector<4x256xf32>
    %cst_107 = arith.constant 0.000000e+00 : f32
    %263 = vector.shape_cast %261 : vector<1x256xi1> to vector<1x256xi1>
    %264 = vector.broadcast %263 : vector<1x256xi1> to vector<4x256xi1>
    %265 = vector.broadcast %cst_107 : f32 to vector<4x256xf32>
    %266 = arith.select %264, %262, %265 : vector<4x256xi1>, vector<4x256xf32>
    %c2_108 = arith.constant 2 : index
    %c0_109 = arith.constant 0 : index
    %c0_110 = arith.constant 0 : index
    %267 = vector.load %arg8[%c2_108, %c0_109, %c0_110] : memref<25x8x4xbf16, #tpu.memory_space<vmem>>, vector<1x8x4xbf16>
    %268 = vector.shape_cast %267 : vector<1x8x4xbf16> to vector<8x4xbf16>
    %269 = arith.truncf %266 : vector<4x256xf32> to vector<4x256xbf16>
    %cst_111 = arith.constant dense<0.000000e+00> : vector<8x256xf32>
    %270 = tpu.matmul %268, %269, %cst_111 {dimension_numbers = #tpu.dot_dimension_numbers<[1], [0], [0], [1], [0, 0, 1, 1], [], []>} : vector<8x4xbf16>, vector<4x256xbf16>, vector<8x256xf32> -> vector<8x256xf32>
    %271 = arith.addf %250, %270 : vector<8x256xf32>
    %c2_i32_112 = arith.constant 2 : i32
    %272 = vector.broadcast %c2_i32_112 : i32 to vector<1x256xi32>
    %273 = arith.cmpi sge, %0, %272 : vector<1x256xi32>
    %c18_i32_113 = arith.constant 18 : i32
    %274 = vector.broadcast %c18_i32_113 : i32 to vector<1x256xi32>
    %275 = arith.cmpi slt, %0, %274 : vector<1x256xi32>
    %276 = arith.andi %273, %275 : vector<1x256xi1>
    %c-1_i32_114 = arith.constant -1 : i32
    %277 = vector.broadcast %c-1_i32_114 : i32 to vector<1x256xi32>
    %278 = arith.cmpi sge, %1, %277 : vector<1x256xi32>
    %279 = arith.andi %276, %278 : vector<1x256xi1>
    %c15_i32_115 = arith.constant 15 : i32
    %280 = vector.broadcast %c15_i32_115 : i32 to vector<1x256xi32>
    %281 = arith.cmpi slt, %1, %280 : vector<1x256xi32>
    %282 = arith.andi %279, %281 : vector<1x256xi1>
    %c31_i32 = arith.constant 31 : i32
    %283 = tpu.dynamic_rotate %13 by %c31_i32 dim 1 : vector<4x256xf32>, i32 -> vector<4x256xf32>
    %cst_116 = arith.constant 0.000000e+00 : f32
    %284 = vector.shape_cast %282 : vector<1x256xi1> to vector<1x256xi1>
    %285 = vector.broadcast %284 : vector<1x256xi1> to vector<4x256xi1>
    %286 = vector.broadcast %cst_116 : f32 to vector<4x256xf32>
    %287 = arith.select %285, %283, %286 : vector<4x256xi1>, vector<4x256xf32>
    %c3_117 = arith.constant 3 : index
    %c0_118 = arith.constant 0 : index
    %c0_119 = arith.constant 0 : index
    %288 = vector.load %arg8[%c3_117, %c0_118, %c0_119] : memref<25x8x4xbf16, #tpu.memory_space<vmem>>, vector<1x8x4xbf16>
    %289 = vector.shape_cast %288 : vector<1x8x4xbf16> to vector<8x4xbf16>
    %290 = arith.truncf %287 : vector<4x256xf32> to vector<4x256xbf16>
    %cst_120 = arith.constant dense<0.000000e+00> : vector<8x256xf32>
    %291 = tpu.matmul %289, %290, %cst_120 {dimension_numbers = #tpu.dot_dimension_numbers<[1], [0], [0], [1], [0, 0, 1, 1], [], []>} : vector<8x4xbf16>, vector<4x256xbf16>, vector<8x256xf32> -> vector<8x256xf32>
    %292 = arith.addf %271, %291 : vector<8x256xf32>
    %c2_i32_121 = arith.constant 2 : i32
    %293 = vector.broadcast %c2_i32_121 : i32 to vector<1x256xi32>
    %294 = arith.cmpi sge, %0, %293 : vector<1x256xi32>
    %c18_i32_122 = arith.constant 18 : i32
    %295 = vector.broadcast %c18_i32_122 : i32 to vector<1x256xi32>
    %296 = arith.cmpi slt, %0, %295 : vector<1x256xi32>
    %297 = arith.andi %294, %296 : vector<1x256xi1>
    %c-2_i32 = arith.constant -2 : i32
    %298 = vector.broadcast %c-2_i32 : i32 to vector<1x256xi32>
    %299 = arith.cmpi sge, %1, %298 : vector<1x256xi32>
    %300 = arith.andi %297, %299 : vector<1x256xi1>
    %c14_i32 = arith.constant 14 : i32
    %301 = vector.broadcast %c14_i32 : i32 to vector<1x256xi32>
    %302 = arith.cmpi slt, %1, %301 : vector<1x256xi32>
    %303 = arith.andi %300, %302 : vector<1x256xi1>
    %c30_i32 = arith.constant 30 : i32
    %304 = tpu.dynamic_rotate %13 by %c30_i32 dim 1 : vector<4x256xf32>, i32 -> vector<4x256xf32>
    %cst_123 = arith.constant 0.000000e+00 : f32
    %305 = vector.shape_cast %303 : vector<1x256xi1> to vector<1x256xi1>
    %306 = vector.broadcast %305 : vector<1x256xi1> to vector<4x256xi1>
    %307 = vector.broadcast %cst_123 : f32 to vector<4x256xf32>
    %308 = arith.select %306, %304, %307 : vector<4x256xi1>, vector<4x256xf32>
    %c4_124 = arith.constant 4 : index
    %c0_125 = arith.constant 0 : index
    %c0_126 = arith.constant 0 : index
    %309 = vector.load %arg8[%c4_124, %c0_125, %c0_126] : memref<25x8x4xbf16, #tpu.memory_space<vmem>>, vector<1x8x4xbf16>
    %310 = vector.shape_cast %309 : vector<1x8x4xbf16> to vector<8x4xbf16>
    %311 = arith.truncf %308 : vector<4x256xf32> to vector<4x256xbf16>
    %cst_127 = arith.constant dense<0.000000e+00> : vector<8x256xf32>
    %312 = tpu.matmul %310, %311, %cst_127 {dimension_numbers = #tpu.dot_dimension_numbers<[1], [0], [0], [1], [0, 0, 1, 1], [], []>} : vector<8x4xbf16>, vector<4x256xbf16>, vector<8x256xf32> -> vector<8x256xf32>
    %313 = arith.addf %292, %312 : vector<8x256xf32>
    %c1_i32_128 = arith.constant 1 : i32
    %314 = vector.broadcast %c1_i32_128 : i32 to vector<1x256xi32>
    %315 = arith.cmpi sge, %0, %314 : vector<1x256xi32>
    %c17_i32_129 = arith.constant 17 : i32
    %316 = vector.broadcast %c17_i32_129 : i32 to vector<1x256xi32>
    %317 = arith.cmpi slt, %0, %316 : vector<1x256xi32>
    %318 = arith.andi %315, %317 : vector<1x256xi1>
    %c2_i32_130 = arith.constant 2 : i32
    %319 = vector.broadcast %c2_i32_130 : i32 to vector<1x256xi32>
    %320 = arith.cmpi sge, %1, %319 : vector<1x256xi32>
    %321 = arith.andi %318, %320 : vector<1x256xi1>
    %c18_i32_131 = arith.constant 18 : i32
    %322 = vector.broadcast %c18_i32_131 : i32 to vector<1x256xi32>
    %323 = arith.cmpi slt, %1, %322 : vector<1x256xi32>
    %324 = arith.andi %321, %323 : vector<1x256xi1>
    %c18_i32_132 = arith.constant 18 : i32
    %325 = tpu.dynamic_rotate %13 by %c18_i32_132 dim 1 : vector<4x256xf32>, i32 -> vector<4x256xf32>
    %cst_133 = arith.constant 0.000000e+00 : f32
    %326 = vector.shape_cast %324 : vector<1x256xi1> to vector<1x256xi1>
    %327 = vector.broadcast %326 : vector<1x256xi1> to vector<4x256xi1>
    %328 = vector.broadcast %cst_133 : f32 to vector<4x256xf32>
    %329 = arith.select %327, %325, %328 : vector<4x256xi1>, vector<4x256xf32>
    %c5_134 = arith.constant 5 : index
    %c0_135 = arith.constant 0 : index
    %c0_136 = arith.constant 0 : index
    %330 = vector.load %arg8[%c5_134, %c0_135, %c0_136] : memref<25x8x4xbf16, #tpu.memory_space<vmem>>, vector<1x8x4xbf16>
    %331 = vector.shape_cast %330 : vector<1x8x4xbf16> to vector<8x4xbf16>
    %332 = arith.truncf %329 : vector<4x256xf32> to vector<4x256xbf16>
    %cst_137 = arith.constant dense<0.000000e+00> : vector<8x256xf32>
    %333 = tpu.matmul %331, %332, %cst_137 {dimension_numbers = #tpu.dot_dimension_numbers<[1], [0], [0], [1], [0, 0, 1, 1], [], []>} : vector<8x4xbf16>, vector<4x256xbf16>, vector<8x256xf32> -> vector<8x256xf32>
    %334 = arith.addf %313, %333 : vector<8x256xf32>
    %c1_i32_138 = arith.constant 1 : i32
    %335 = vector.broadcast %c1_i32_138 : i32 to vector<1x256xi32>
    %336 = arith.cmpi sge, %0, %335 : vector<1x256xi32>
    %c17_i32_139 = arith.constant 17 : i32
    %337 = vector.broadcast %c17_i32_139 : i32 to vector<1x256xi32>
    %338 = arith.cmpi slt, %0, %337 : vector<1x256xi32>
    %339 = arith.andi %336, %338 : vector<1x256xi1>
    %c1_i32_140 = arith.constant 1 : i32
    %340 = vector.broadcast %c1_i32_140 : i32 to vector<1x256xi32>
    %341 = arith.cmpi sge, %1, %340 : vector<1x256xi32>
    %342 = arith.andi %339, %341 : vector<1x256xi1>
    %c17_i32_141 = arith.constant 17 : i32
    %343 = vector.broadcast %c17_i32_141 : i32 to vector<1x256xi32>
    %344 = arith.cmpi slt, %1, %343 : vector<1x256xi32>
    %345 = arith.andi %342, %344 : vector<1x256xi1>
    %c17_i32_142 = arith.constant 17 : i32
    %346 = tpu.dynamic_rotate %13 by %c17_i32_142 dim 1 : vector<4x256xf32>, i32 -> vector<4x256xf32>
    %cst_143 = arith.constant 0.000000e+00 : f32
    %347 = vector.shape_cast %345 : vector<1x256xi1> to vector<1x256xi1>
    %348 = vector.broadcast %347 : vector<1x256xi1> to vector<4x256xi1>
    %349 = vector.broadcast %cst_143 : f32 to vector<4x256xf32>
    %350 = arith.select %348, %346, %349 : vector<4x256xi1>, vector<4x256xf32>
    %c6_144 = arith.constant 6 : index
    %c0_145 = arith.constant 0 : index
    %c0_146 = arith.constant 0 : index
    %351 = vector.load %arg8[%c6_144, %c0_145, %c0_146] : memref<25x8x4xbf16, #tpu.memory_space<vmem>>, vector<1x8x4xbf16>
    %352 = vector.shape_cast %351 : vector<1x8x4xbf16> to vector<8x4xbf16>
    %353 = arith.truncf %350 : vector<4x256xf32> to vector<4x256xbf16>
    %cst_147 = arith.constant dense<0.000000e+00> : vector<8x256xf32>
    %354 = tpu.matmul %352, %353, %cst_147 {dimension_numbers = #tpu.dot_dimension_numbers<[1], [0], [0], [1], [0, 0, 1, 1], [], []>} : vector<8x4xbf16>, vector<4x256xbf16>, vector<8x256xf32> -> vector<8x256xf32>
    %355 = arith.addf %334, %354 : vector<8x256xf32>
    %c1_i32_148 = arith.constant 1 : i32
    %356 = vector.broadcast %c1_i32_148 : i32 to vector<1x256xi32>
    %357 = arith.cmpi sge, %0, %356 : vector<1x256xi32>
    %c17_i32_149 = arith.constant 17 : i32
    %358 = vector.broadcast %c17_i32_149 : i32 to vector<1x256xi32>
    %359 = arith.cmpi slt, %0, %358 : vector<1x256xi32>
    %360 = arith.andi %357, %359 : vector<1x256xi1>
    %c0_i32_150 = arith.constant 0 : i32
    %361 = vector.broadcast %c0_i32_150 : i32 to vector<1x256xi32>
    %362 = arith.cmpi sge, %1, %361 : vector<1x256xi32>
    %363 = arith.andi %360, %362 : vector<1x256xi1>
    %c16_i32_151 = arith.constant 16 : i32
    %364 = vector.broadcast %c16_i32_151 : i32 to vector<1x256xi32>
    %365 = arith.cmpi slt, %1, %364 : vector<1x256xi32>
    %366 = arith.andi %363, %365 : vector<1x256xi1>
    %c16_i32_152 = arith.constant 16 : i32
    %367 = tpu.dynamic_rotate %13 by %c16_i32_152 dim 1 : vector<4x256xf32>, i32 -> vector<4x256xf32>
    %cst_153 = arith.constant 0.000000e+00 : f32
    %368 = vector.shape_cast %366 : vector<1x256xi1> to vector<1x256xi1>
    %369 = vector.broadcast %368 : vector<1x256xi1> to vector<4x256xi1>
    %370 = vector.broadcast %cst_153 : f32 to vector<4x256xf32>
    %371 = arith.select %369, %367, %370 : vector<4x256xi1>, vector<4x256xf32>
    %c7_154 = arith.constant 7 : index
    %c0_155 = arith.constant 0 : index
    %c0_156 = arith.constant 0 : index
    %372 = vector.load %arg8[%c7_154, %c0_155, %c0_156] : memref<25x8x4xbf16, #tpu.memory_space<vmem>>, vector<1x8x4xbf16>
    %373 = vector.shape_cast %372 : vector<1x8x4xbf16> to vector<8x4xbf16>
    %374 = arith.truncf %371 : vector<4x256xf32> to vector<4x256xbf16>
    %cst_157 = arith.constant dense<0.000000e+00> : vector<8x256xf32>
    %375 = tpu.matmul %373, %374, %cst_157 {dimension_numbers = #tpu.dot_dimension_numbers<[1], [0], [0], [1], [0, 0, 1, 1], [], []>} : vector<8x4xbf16>, vector<4x256xbf16>, vector<8x256xf32> -> vector<8x256xf32>
    %376 = arith.addf %355, %375 : vector<8x256xf32>
    %c1_i32_158 = arith.constant 1 : i32
    %377 = vector.broadcast %c1_i32_158 : i32 to vector<1x256xi32>
    %378 = arith.cmpi sge, %0, %377 : vector<1x256xi32>
    %c17_i32_159 = arith.constant 17 : i32
    %379 = vector.broadcast %c17_i32_159 : i32 to vector<1x256xi32>
    %380 = arith.cmpi slt, %0, %379 : vector<1x256xi32>
    %381 = arith.andi %378, %380 : vector<1x256xi1>
    %c-1_i32_160 = arith.constant -1 : i32
    %382 = vector.broadcast %c-1_i32_160 : i32 to vector<1x256xi32>
    %383 = arith.cmpi sge, %1, %382 : vector<1x256xi32>
    %384 = arith.andi %381, %383 : vector<1x256xi1>
    %c15_i32_161 = arith.constant 15 : i32
    %385 = vector.broadcast %c15_i32_161 : i32 to vector<1x256xi32>
    %386 = arith.cmpi slt, %1, %385 : vector<1x256xi32>
    %387 = arith.andi %384, %386 : vector<1x256xi1>
    %c15_i32_162 = arith.constant 15 : i32
    %388 = tpu.dynamic_rotate %13 by %c15_i32_162 dim 1 : vector<4x256xf32>, i32 -> vector<4x256xf32>
    %cst_163 = arith.constant 0.000000e+00 : f32
    %389 = vector.shape_cast %387 : vector<1x256xi1> to vector<1x256xi1>
    %390 = vector.broadcast %389 : vector<1x256xi1> to vector<4x256xi1>
    %391 = vector.broadcast %cst_163 : f32 to vector<4x256xf32>
    %392 = arith.select %390, %388, %391 : vector<4x256xi1>, vector<4x256xf32>
    %c8_164 = arith.constant 8 : index
    %c0_165 = arith.constant 0 : index
    %c0_166 = arith.constant 0 : index
    %393 = vector.load %arg8[%c8_164, %c0_165, %c0_166] : memref<25x8x4xbf16, #tpu.memory_space<vmem>>, vector<1x8x4xbf16>
    %394 = vector.shape_cast %393 : vector<1x8x4xbf16> to vector<8x4xbf16>
    %395 = arith.truncf %392 : vector<4x256xf32> to vector<4x256xbf16>
    %cst_167 = arith.constant dense<0.000000e+00> : vector<8x256xf32>
    %396 = tpu.matmul %394, %395, %cst_167 {dimension_numbers = #tpu.dot_dimension_numbers<[1], [0], [0], [1], [0, 0, 1, 1], [], []>} : vector<8x4xbf16>, vector<4x256xbf16>, vector<8x256xf32> -> vector<8x256xf32>
    %397 = arith.addf %376, %396 : vector<8x256xf32>
    %c1_i32_168 = arith.constant 1 : i32
    %398 = vector.broadcast %c1_i32_168 : i32 to vector<1x256xi32>
    %399 = arith.cmpi sge, %0, %398 : vector<1x256xi32>
    %c17_i32_169 = arith.constant 17 : i32
    %400 = vector.broadcast %c17_i32_169 : i32 to vector<1x256xi32>
    %401 = arith.cmpi slt, %0, %400 : vector<1x256xi32>
    %402 = arith.andi %399, %401 : vector<1x256xi1>
    %c-2_i32_170 = arith.constant -2 : i32
    %403 = vector.broadcast %c-2_i32_170 : i32 to vector<1x256xi32>
    %404 = arith.cmpi sge, %1, %403 : vector<1x256xi32>
    %405 = arith.andi %402, %404 : vector<1x256xi1>
    %c14_i32_171 = arith.constant 14 : i32
    %406 = vector.broadcast %c14_i32_171 : i32 to vector<1x256xi32>
    %407 = arith.cmpi slt, %1, %406 : vector<1x256xi32>
    %408 = arith.andi %405, %407 : vector<1x256xi1>
    %c14_i32_172 = arith.constant 14 : i32
    %409 = tpu.dynamic_rotate %13 by %c14_i32_172 dim 1 : vector<4x256xf32>, i32 -> vector<4x256xf32>
    %cst_173 = arith.constant 0.000000e+00 : f32
    %410 = vector.shape_cast %408 : vector<1x256xi1> to vector<1x256xi1>
    %411 = vector.broadcast %410 : vector<1x256xi1> to vector<4x256xi1>
    %412 = vector.broadcast %cst_173 : f32 to vector<4x256xf32>
    %413 = arith.select %411, %409, %412 : vector<4x256xi1>, vector<4x256xf32>
    %c9 = arith.constant 9 : index
    %c0_174 = arith.constant 0 : index
    %c0_175 = arith.constant 0 : index
    %414 = vector.load %arg8[%c9, %c0_174, %c0_175] : memref<25x8x4xbf16, #tpu.memory_space<vmem>>, vector<1x8x4xbf16>
    %415 = vector.shape_cast %414 : vector<1x8x4xbf16> to vector<8x4xbf16>
    %416 = arith.truncf %413 : vector<4x256xf32> to vector<4x256xbf16>
    %cst_176 = arith.constant dense<0.000000e+00> : vector<8x256xf32>
    %417 = tpu.matmul %415, %416, %cst_176 {dimension_numbers = #tpu.dot_dimension_numbers<[1], [0], [0], [1], [0, 0, 1, 1], [], []>} : vector<8x4xbf16>, vector<4x256xbf16>, vector<8x256xf32> -> vector<8x256xf32>
    %418 = arith.addf %397, %417 : vector<8x256xf32>
    %c0_i32_177 = arith.constant 0 : i32
    %419 = vector.broadcast %c0_i32_177 : i32 to vector<1x256xi32>
    %420 = arith.cmpi sge, %0, %419 : vector<1x256xi32>
    %c16_i32_178 = arith.constant 16 : i32
    %421 = vector.broadcast %c16_i32_178 : i32 to vector<1x256xi32>
    %422 = arith.cmpi slt, %0, %421 : vector<1x256xi32>
    %423 = arith.andi %420, %422 : vector<1x256xi1>
    %c2_i32_179 = arith.constant 2 : i32
    %424 = vector.broadcast %c2_i32_179 : i32 to vector<1x256xi32>
    %425 = arith.cmpi sge, %1, %424 : vector<1x256xi32>
    %426 = arith.andi %423, %425 : vector<1x256xi1>
    %c18_i32_180 = arith.constant 18 : i32
    %427 = vector.broadcast %c18_i32_180 : i32 to vector<1x256xi32>
    %428 = arith.cmpi slt, %1, %427 : vector<1x256xi32>
    %429 = arith.andi %426, %428 : vector<1x256xi1>
    %c2_i32_181 = arith.constant 2 : i32
    %430 = tpu.dynamic_rotate %13 by %c2_i32_181 dim 1 : vector<4x256xf32>, i32 -> vector<4x256xf32>
    %cst_182 = arith.constant 0.000000e+00 : f32
    %431 = vector.shape_cast %429 : vector<1x256xi1> to vector<1x256xi1>
    %432 = vector.broadcast %431 : vector<1x256xi1> to vector<4x256xi1>
    %433 = vector.broadcast %cst_182 : f32 to vector<4x256xf32>
    %434 = arith.select %432, %430, %433 : vector<4x256xi1>, vector<4x256xf32>
    %c10 = arith.constant 10 : index
    %c0_183 = arith.constant 0 : index
    %c0_184 = arith.constant 0 : index
    %435 = vector.load %arg8[%c10, %c0_183, %c0_184] : memref<25x8x4xbf16, #tpu.memory_space<vmem>>, vector<1x8x4xbf16>
    %436 = vector.shape_cast %435 : vector<1x8x4xbf16> to vector<8x4xbf16>
    %437 = arith.truncf %434 : vector<4x256xf32> to vector<4x256xbf16>
    %cst_185 = arith.constant dense<0.000000e+00> : vector<8x256xf32>
    %438 = tpu.matmul %436, %437, %cst_185 {dimension_numbers = #tpu.dot_dimension_numbers<[1], [0], [0], [1], [0, 0, 1, 1], [], []>} : vector<8x4xbf16>, vector<4x256xbf16>, vector<8x256xf32> -> vector<8x256xf32>
    %439 = arith.addf %418, %438 : vector<8x256xf32>
    %c0_i32_186 = arith.constant 0 : i32
    %440 = vector.broadcast %c0_i32_186 : i32 to vector<1x256xi32>
    %441 = arith.cmpi sge, %0, %440 : vector<1x256xi32>
    %c16_i32_187 = arith.constant 16 : i32
    %442 = vector.broadcast %c16_i32_187 : i32 to vector<1x256xi32>
    %443 = arith.cmpi slt, %0, %442 : vector<1x256xi32>
    %444 = arith.andi %441, %443 : vector<1x256xi1>
    %c1_i32_188 = arith.constant 1 : i32
    %445 = vector.broadcast %c1_i32_188 : i32 to vector<1x256xi32>
    %446 = arith.cmpi sge, %1, %445 : vector<1x256xi32>
    %447 = arith.andi %444, %446 : vector<1x256xi1>
    %c17_i32_189 = arith.constant 17 : i32
    %448 = vector.broadcast %c17_i32_189 : i32 to vector<1x256xi32>
    %449 = arith.cmpi slt, %1, %448 : vector<1x256xi32>
    %450 = arith.andi %447, %449 : vector<1x256xi1>
    %c1_i32_190 = arith.constant 1 : i32
    %451 = tpu.dynamic_rotate %13 by %c1_i32_190 dim 1 : vector<4x256xf32>, i32 -> vector<4x256xf32>
    %cst_191 = arith.constant 0.000000e+00 : f32
    %452 = vector.shape_cast %450 : vector<1x256xi1> to vector<1x256xi1>
    %453 = vector.broadcast %452 : vector<1x256xi1> to vector<4x256xi1>
    %454 = vector.broadcast %cst_191 : f32 to vector<4x256xf32>
    %455 = arith.select %453, %451, %454 : vector<4x256xi1>, vector<4x256xf32>
    %c11 = arith.constant 11 : index
    %c0_192 = arith.constant 0 : index
    %c0_193 = arith.constant 0 : index
    %456 = vector.load %arg8[%c11, %c0_192, %c0_193] : memref<25x8x4xbf16, #tpu.memory_space<vmem>>, vector<1x8x4xbf16>
    %457 = vector.shape_cast %456 : vector<1x8x4xbf16> to vector<8x4xbf16>
    %458 = arith.truncf %455 : vector<4x256xf32> to vector<4x256xbf16>
    %cst_194 = arith.constant dense<0.000000e+00> : vector<8x256xf32>
    %459 = tpu.matmul %457, %458, %cst_194 {dimension_numbers = #tpu.dot_dimension_numbers<[1], [0], [0], [1], [0, 0, 1, 1], [], []>} : vector<8x4xbf16>, vector<4x256xbf16>, vector<8x256xf32> -> vector<8x256xf32>
    %460 = arith.addf %439, %459 : vector<8x256xf32>
    %c0_i32_195 = arith.constant 0 : i32
    %461 = vector.broadcast %c0_i32_195 : i32 to vector<1x256xi32>
    %462 = arith.cmpi sge, %0, %461 : vector<1x256xi32>
    %c16_i32_196 = arith.constant 16 : i32
    %463 = vector.broadcast %c16_i32_196 : i32 to vector<1x256xi32>
    %464 = arith.cmpi slt, %0, %463 : vector<1x256xi32>
    %465 = arith.andi %462, %464 : vector<1x256xi1>
    %c0_i32_197 = arith.constant 0 : i32
    %466 = vector.broadcast %c0_i32_197 : i32 to vector<1x256xi32>
    %467 = arith.cmpi sge, %1, %466 : vector<1x256xi32>
    %468 = arith.andi %465, %467 : vector<1x256xi1>
    %c16_i32_198 = arith.constant 16 : i32
    %469 = vector.broadcast %c16_i32_198 : i32 to vector<1x256xi32>
    %470 = arith.cmpi slt, %1, %469 : vector<1x256xi32>
    %471 = arith.andi %468, %470 : vector<1x256xi1>
    %cst_199 = arith.constant 0.000000e+00 : f32
    %472 = vector.shape_cast %471 : vector<1x256xi1> to vector<1x256xi1>
    %473 = vector.broadcast %472 : vector<1x256xi1> to vector<4x256xi1>
    %474 = vector.broadcast %cst_199 : f32 to vector<4x256xf32>
    %475 = arith.select %473, %13, %474 : vector<4x256xi1>, vector<4x256xf32>
    %c12 = arith.constant 12 : index
    %c0_200 = arith.constant 0 : index
    %c0_201 = arith.constant 0 : index
    %476 = vector.load %arg8[%c12, %c0_200, %c0_201] : memref<25x8x4xbf16, #tpu.memory_space<vmem>>, vector<1x8x4xbf16>
    %477 = vector.shape_cast %476 : vector<1x8x4xbf16> to vector<8x4xbf16>
    %478 = arith.truncf %475 : vector<4x256xf32> to vector<4x256xbf16>
    %cst_202 = arith.constant dense<0.000000e+00> : vector<8x256xf32>
    %479 = tpu.matmul %477, %478, %cst_202 {dimension_numbers = #tpu.dot_dimension_numbers<[1], [0], [0], [1], [0, 0, 1, 1], [], []>} : vector<8x4xbf16>, vector<4x256xbf16>, vector<8x256xf32> -> vector<8x256xf32>
    %480 = arith.addf %460, %479 : vector<8x256xf32>
    %c0_i32_203 = arith.constant 0 : i32
    %481 = vector.broadcast %c0_i32_203 : i32 to vector<1x256xi32>
    %482 = arith.cmpi sge, %0, %481 : vector<1x256xi32>
    %c16_i32_204 = arith.constant 16 : i32
    %483 = vector.broadcast %c16_i32_204 : i32 to vector<1x256xi32>
    %484 = arith.cmpi slt, %0, %483 : vector<1x256xi32>
    %485 = arith.andi %482, %484 : vector<1x256xi1>
    %c-1_i32_205 = arith.constant -1 : i32
    %486 = vector.broadcast %c-1_i32_205 : i32 to vector<1x256xi32>
    %487 = arith.cmpi sge, %1, %486 : vector<1x256xi32>
    %488 = arith.andi %485, %487 : vector<1x256xi1>
    %c15_i32_206 = arith.constant 15 : i32
    %489 = vector.broadcast %c15_i32_206 : i32 to vector<1x256xi32>
    %490 = arith.cmpi slt, %1, %489 : vector<1x256xi32>
    %491 = arith.andi %488, %490 : vector<1x256xi1>
    %c255_i32_207 = arith.constant 255 : i32
    %492 = tpu.dynamic_rotate %13 by %c255_i32_207 dim 1 : vector<4x256xf32>, i32 -> vector<4x256xf32>
    %cst_208 = arith.constant 0.000000e+00 : f32
    %493 = vector.shape_cast %491 : vector<1x256xi1> to vector<1x256xi1>
    %494 = vector.broadcast %493 : vector<1x256xi1> to vector<4x256xi1>
    %495 = vector.broadcast %cst_208 : f32 to vector<4x256xf32>
    %496 = arith.select %494, %492, %495 : vector<4x256xi1>, vector<4x256xf32>
    %c13 = arith.constant 13 : index
    %c0_209 = arith.constant 0 : index
    %c0_210 = arith.constant 0 : index
    %497 = vector.load %arg8[%c13, %c0_209, %c0_210] : memref<25x8x4xbf16, #tpu.memory_space<vmem>>, vector<1x8x4xbf16>
    %498 = vector.shape_cast %497 : vector<1x8x4xbf16> to vector<8x4xbf16>
    %499 = arith.truncf %496 : vector<4x256xf32> to vector<4x256xbf16>
    %cst_211 = arith.constant dense<0.000000e+00> : vector<8x256xf32>
    %500 = tpu.matmul %498, %499, %cst_211 {dimension_numbers = #tpu.dot_dimension_numbers<[1], [0], [0], [1], [0, 0, 1, 1], [], []>} : vector<8x4xbf16>, vector<4x256xbf16>, vector<8x256xf32> -> vector<8x256xf32>
    %501 = arith.addf %480, %500 : vector<8x256xf32>
    %c0_i32_212 = arith.constant 0 : i32
    %502 = vector.broadcast %c0_i32_212 : i32 to vector<1x256xi32>
    %503 = arith.cmpi sge, %0, %502 : vector<1x256xi32>
    %c16_i32_213 = arith.constant 16 : i32
    %504 = vector.broadcast %c16_i32_213 : i32 to vector<1x256xi32>
    %505 = arith.cmpi slt, %0, %504 : vector<1x256xi32>
    %506 = arith.andi %503, %505 : vector<1x256xi1>
    %c-2_i32_214 = arith.constant -2 : i32
    %507 = vector.broadcast %c-2_i32_214 : i32 to vector<1x256xi32>
    %508 = arith.cmpi sge, %1, %507 : vector<1x256xi32>
    %509 = arith.andi %506, %508 : vector<1x256xi1>
    %c14_i32_215 = arith.constant 14 : i32
    %510 = vector.broadcast %c14_i32_215 : i32 to vector<1x256xi32>
    %511 = arith.cmpi slt, %1, %510 : vector<1x256xi32>
    %512 = arith.andi %509, %511 : vector<1x256xi1>
    %c254_i32 = arith.constant 254 : i32
    %513 = tpu.dynamic_rotate %13 by %c254_i32 dim 1 : vector<4x256xf32>, i32 -> vector<4x256xf32>
    %cst_216 = arith.constant 0.000000e+00 : f32
    %514 = vector.shape_cast %512 : vector<1x256xi1> to vector<1x256xi1>
    %515 = vector.broadcast %514 : vector<1x256xi1> to vector<4x256xi1>
    %516 = vector.broadcast %cst_216 : f32 to vector<4x256xf32>
    %517 = arith.select %515, %513, %516 : vector<4x256xi1>, vector<4x256xf32>
    %c14 = arith.constant 14 : index
    %c0_217 = arith.constant 0 : index
    %c0_218 = arith.constant 0 : index
    %518 = vector.load %arg8[%c14, %c0_217, %c0_218] : memref<25x8x4xbf16, #tpu.memory_space<vmem>>, vector<1x8x4xbf16>
    %519 = vector.shape_cast %518 : vector<1x8x4xbf16> to vector<8x4xbf16>
    %520 = arith.truncf %517 : vector<4x256xf32> to vector<4x256xbf16>
    %cst_219 = arith.constant dense<0.000000e+00> : vector<8x256xf32>
    %521 = tpu.matmul %519, %520, %cst_219 {dimension_numbers = #tpu.dot_dimension_numbers<[1], [0], [0], [1], [0, 0, 1, 1], [], []>} : vector<8x4xbf16>, vector<4x256xbf16>, vector<8x256xf32> -> vector<8x256xf32>
    %522 = arith.addf %501, %521 : vector<8x256xf32>
    %c-1_i32_220 = arith.constant -1 : i32
    %523 = vector.broadcast %c-1_i32_220 : i32 to vector<1x256xi32>
    %524 = arith.cmpi sge, %0, %523 : vector<1x256xi32>
    %c15_i32_221 = arith.constant 15 : i32
    %525 = vector.broadcast %c15_i32_221 : i32 to vector<1x256xi32>
    %526 = arith.cmpi slt, %0, %525 : vector<1x256xi32>
    %527 = arith.andi %524, %526 : vector<1x256xi1>
    %c2_i32_222 = arith.constant 2 : i32
    %528 = vector.broadcast %c2_i32_222 : i32 to vector<1x256xi32>
    %529 = arith.cmpi sge, %1, %528 : vector<1x256xi32>
    %530 = arith.andi %527, %529 : vector<1x256xi1>
    %c18_i32_223 = arith.constant 18 : i32
    %531 = vector.broadcast %c18_i32_223 : i32 to vector<1x256xi32>
    %532 = arith.cmpi slt, %1, %531 : vector<1x256xi32>
    %533 = arith.andi %530, %532 : vector<1x256xi1>
    %c242_i32 = arith.constant 242 : i32
    %534 = tpu.dynamic_rotate %13 by %c242_i32 dim 1 : vector<4x256xf32>, i32 -> vector<4x256xf32>
    %cst_224 = arith.constant 0.000000e+00 : f32
    %535 = vector.shape_cast %533 : vector<1x256xi1> to vector<1x256xi1>
    %536 = vector.broadcast %535 : vector<1x256xi1> to vector<4x256xi1>
    %537 = vector.broadcast %cst_224 : f32 to vector<4x256xf32>
    %538 = arith.select %536, %534, %537 : vector<4x256xi1>, vector<4x256xf32>
    %c15 = arith.constant 15 : index
    %c0_225 = arith.constant 0 : index
    %c0_226 = arith.constant 0 : index
    %539 = vector.load %arg8[%c15, %c0_225, %c0_226] : memref<25x8x4xbf16, #tpu.memory_space<vmem>>, vector<1x8x4xbf16>
    %540 = vector.shape_cast %539 : vector<1x8x4xbf16> to vector<8x4xbf16>
    %541 = arith.truncf %538 : vector<4x256xf32> to vector<4x256xbf16>
    %cst_227 = arith.constant dense<0.000000e+00> : vector<8x256xf32>
    %542 = tpu.matmul %540, %541, %cst_227 {dimension_numbers = #tpu.dot_dimension_numbers<[1], [0], [0], [1], [0, 0, 1, 1], [], []>} : vector<8x4xbf16>, vector<4x256xbf16>, vector<8x256xf32> -> vector<8x256xf32>
    %543 = arith.addf %522, %542 : vector<8x256xf32>
    %c-1_i32_228 = arith.constant -1 : i32
    %544 = vector.broadcast %c-1_i32_228 : i32 to vector<1x256xi32>
    %545 = arith.cmpi sge, %0, %544 : vector<1x256xi32>
    %c15_i32_229 = arith.constant 15 : i32
    %546 = vector.broadcast %c15_i32_229 : i32 to vector<1x256xi32>
    %547 = arith.cmpi slt, %0, %546 : vector<1x256xi32>
    %548 = arith.andi %545, %547 : vector<1x256xi1>
    %c1_i32_230 = arith.constant 1 : i32
    %549 = vector.broadcast %c1_i32_230 : i32 to vector<1x256xi32>
    %550 = arith.cmpi sge, %1, %549 : vector<1x256xi32>
    %551 = arith.andi %548, %550 : vector<1x256xi1>
    %c17_i32_231 = arith.constant 17 : i32
    %552 = vector.broadcast %c17_i32_231 : i32 to vector<1x256xi32>
    %553 = arith.cmpi slt, %1, %552 : vector<1x256xi32>
    %554 = arith.andi %551, %553 : vector<1x256xi1>
    %c241_i32_232 = arith.constant 241 : i32
    %555 = tpu.dynamic_rotate %13 by %c241_i32_232 dim 1 : vector<4x256xf32>, i32 -> vector<4x256xf32>
    %cst_233 = arith.constant 0.000000e+00 : f32
    %556 = vector.shape_cast %554 : vector<1x256xi1> to vector<1x256xi1>
    %557 = vector.broadcast %556 : vector<1x256xi1> to vector<4x256xi1>
    %558 = vector.broadcast %cst_233 : f32 to vector<4x256xf32>
    %559 = arith.select %557, %555, %558 : vector<4x256xi1>, vector<4x256xf32>
    %c16 = arith.constant 16 : index
    %c0_234 = arith.constant 0 : index
    %c0_235 = arith.constant 0 : index
    %560 = vector.load %arg8[%c16, %c0_234, %c0_235] : memref<25x8x4xbf16, #tpu.memory_space<vmem>>, vector<1x8x4xbf16>
    %561 = vector.shape_cast %560 : vector<1x8x4xbf16> to vector<8x4xbf16>
    %562 = arith.truncf %559 : vector<4x256xf32> to vector<4x256xbf16>
    %cst_236 = arith.constant dense<0.000000e+00> : vector<8x256xf32>
    %563 = tpu.matmul %561, %562, %cst_236 {dimension_numbers = #tpu.dot_dimension_numbers<[1], [0], [0], [1], [0, 0, 1, 1], [], []>} : vector<8x4xbf16>, vector<4x256xbf16>, vector<8x256xf32> -> vector<8x256xf32>
    %564 = arith.addf %543, %563 : vector<8x256xf32>
    %c-1_i32_237 = arith.constant -1 : i32
    %565 = vector.broadcast %c-1_i32_237 : i32 to vector<1x256xi32>
    %566 = arith.cmpi sge, %0, %565 : vector<1x256xi32>
    %c15_i32_238 = arith.constant 15 : i32
    %567 = vector.broadcast %c15_i32_238 : i32 to vector<1x256xi32>
    %568 = arith.cmpi slt, %0, %567 : vector<1x256xi32>
    %569 = arith.andi %566, %568 : vector<1x256xi1>
    %c0_i32_239 = arith.constant 0 : i32
    %570 = vector.broadcast %c0_i32_239 : i32 to vector<1x256xi32>
    %571 = arith.cmpi sge, %1, %570 : vector<1x256xi32>
    %572 = arith.andi %569, %571 : vector<1x256xi1>
    %c16_i32_240 = arith.constant 16 : i32
    %573 = vector.broadcast %c16_i32_240 : i32 to vector<1x256xi32>
    %574 = arith.cmpi slt, %1, %573 : vector<1x256xi32>
    %575 = arith.andi %572, %574 : vector<1x256xi1>
    %c240_i32_241 = arith.constant 240 : i32
    %576 = tpu.dynamic_rotate %13 by %c240_i32_241 dim 1 : vector<4x256xf32>, i32 -> vector<4x256xf32>
    %cst_242 = arith.constant 0.000000e+00 : f32
    %577 = vector.shape_cast %575 : vector<1x256xi1> to vector<1x256xi1>
    %578 = vector.broadcast %577 : vector<1x256xi1> to vector<4x256xi1>
    %579 = vector.broadcast %cst_242 : f32 to vector<4x256xf32>
    %580 = arith.select %578, %576, %579 : vector<4x256xi1>, vector<4x256xf32>
    %c17 = arith.constant 17 : index
    %c0_243 = arith.constant 0 : index
    %c0_244 = arith.constant 0 : index
    %581 = vector.load %arg8[%c17, %c0_243, %c0_244] : memref<25x8x4xbf16, #tpu.memory_space<vmem>>, vector<1x8x4xbf16>
    %582 = vector.shape_cast %581 : vector<1x8x4xbf16> to vector<8x4xbf16>
    %583 = arith.truncf %580 : vector<4x256xf32> to vector<4x256xbf16>
    %cst_245 = arith.constant dense<0.000000e+00> : vector<8x256xf32>
    %584 = tpu.matmul %582, %583, %cst_245 {dimension_numbers = #tpu.dot_dimension_numbers<[1], [0], [0], [1], [0, 0, 1, 1], [], []>} : vector<8x4xbf16>, vector<4x256xbf16>, vector<8x256xf32> -> vector<8x256xf32>
    %585 = arith.addf %564, %584 : vector<8x256xf32>
    %c-1_i32_246 = arith.constant -1 : i32
    %586 = vector.broadcast %c-1_i32_246 : i32 to vector<1x256xi32>
    %587 = arith.cmpi sge, %0, %586 : vector<1x256xi32>
    %c15_i32_247 = arith.constant 15 : i32
    %588 = vector.broadcast %c15_i32_247 : i32 to vector<1x256xi32>
    %589 = arith.cmpi slt, %0, %588 : vector<1x256xi32>
    %590 = arith.andi %587, %589 : vector<1x256xi1>
    %c-1_i32_248 = arith.constant -1 : i32
    %591 = vector.broadcast %c-1_i32_248 : i32 to vector<1x256xi32>
    %592 = arith.cmpi sge, %1, %591 : vector<1x256xi32>
    %593 = arith.andi %590, %592 : vector<1x256xi1>
    %c15_i32_249 = arith.constant 15 : i32
    %594 = vector.broadcast %c15_i32_249 : i32 to vector<1x256xi32>
    %595 = arith.cmpi slt, %1, %594 : vector<1x256xi32>
    %596 = arith.andi %593, %595 : vector<1x256xi1>
    %c239_i32_250 = arith.constant 239 : i32
    %597 = tpu.dynamic_rotate %13 by %c239_i32_250 dim 1 : vector<4x256xf32>, i32 -> vector<4x256xf32>
    %cst_251 = arith.constant 0.000000e+00 : f32
    %598 = vector.shape_cast %596 : vector<1x256xi1> to vector<1x256xi1>
    %599 = vector.broadcast %598 : vector<1x256xi1> to vector<4x256xi1>
    %600 = vector.broadcast %cst_251 : f32 to vector<4x256xf32>
    %601 = arith.select %599, %597, %600 : vector<4x256xi1>, vector<4x256xf32>
    %c18 = arith.constant 18 : index
    %c0_252 = arith.constant 0 : index
    %c0_253 = arith.constant 0 : index
    %602 = vector.load %arg8[%c18, %c0_252, %c0_253] : memref<25x8x4xbf16, #tpu.memory_space<vmem>>, vector<1x8x4xbf16>
    %603 = vector.shape_cast %602 : vector<1x8x4xbf16> to vector<8x4xbf16>
    %604 = arith.truncf %601 : vector<4x256xf32> to vector<4x256xbf16>
    %cst_254 = arith.constant dense<0.000000e+00> : vector<8x256xf32>
    %605 = tpu.matmul %603, %604, %cst_254 {dimension_numbers = #tpu.dot_dimension_numbers<[1], [0], [0], [1], [0, 0, 1, 1], [], []>} : vector<8x4xbf16>, vector<4x256xbf16>, vector<8x256xf32> -> vector<8x256xf32>
    %606 = arith.addf %585, %605 : vector<8x256xf32>
    %c-1_i32_255 = arith.constant -1 : i32
    %607 = vector.broadcast %c-1_i32_255 : i32 to vector<1x256xi32>
    %608 = arith.cmpi sge, %0, %607 : vector<1x256xi32>
    %c15_i32_256 = arith.constant 15 : i32
    %609 = vector.broadcast %c15_i32_256 : i32 to vector<1x256xi32>
    %610 = arith.cmpi slt, %0, %609 : vector<1x256xi32>
    %611 = arith.andi %608, %610 : vector<1x256xi1>
    %c-2_i32_257 = arith.constant -2 : i32
    %612 = vector.broadcast %c-2_i32_257 : i32 to vector<1x256xi32>
    %613 = arith.cmpi sge, %1, %612 : vector<1x256xi32>
    %614 = arith.andi %611, %613 : vector<1x256xi1>
    %c14_i32_258 = arith.constant 14 : i32
    %615 = vector.broadcast %c14_i32_258 : i32 to vector<1x256xi32>
    %616 = arith.cmpi slt, %1, %615 : vector<1x256xi32>
    %617 = arith.andi %614, %616 : vector<1x256xi1>
    %c238_i32 = arith.constant 238 : i32
    %618 = tpu.dynamic_rotate %13 by %c238_i32 dim 1 : vector<4x256xf32>, i32 -> vector<4x256xf32>
    %cst_259 = arith.constant 0.000000e+00 : f32
    %619 = vector.shape_cast %617 : vector<1x256xi1> to vector<1x256xi1>
    %620 = vector.broadcast %619 : vector<1x256xi1> to vector<4x256xi1>
    %621 = vector.broadcast %cst_259 : f32 to vector<4x256xf32>
    %622 = arith.select %620, %618, %621 : vector<4x256xi1>, vector<4x256xf32>
    %c19 = arith.constant 19 : index
    %c0_260 = arith.constant 0 : index
    %c0_261 = arith.constant 0 : index
    %623 = vector.load %arg8[%c19, %c0_260, %c0_261] : memref<25x8x4xbf16, #tpu.memory_space<vmem>>, vector<1x8x4xbf16>
    %624 = vector.shape_cast %623 : vector<1x8x4xbf16> to vector<8x4xbf16>
    %625 = arith.truncf %622 : vector<4x256xf32> to vector<4x256xbf16>
    %cst_262 = arith.constant dense<0.000000e+00> : vector<8x256xf32>
    %626 = tpu.matmul %624, %625, %cst_262 {dimension_numbers = #tpu.dot_dimension_numbers<[1], [0], [0], [1], [0, 0, 1, 1], [], []>} : vector<8x4xbf16>, vector<4x256xbf16>, vector<8x256xf32> -> vector<8x256xf32>
    %627 = arith.addf %606, %626 : vector<8x256xf32>
    %c-2_i32_263 = arith.constant -2 : i32
    %628 = vector.broadcast %c-2_i32_263 : i32 to vector<1x256xi32>
    %629 = arith.cmpi sge, %0, %628 : vector<1x256xi32>
    %c14_i32_264 = arith.constant 14 : i32
    %630 = vector.broadcast %c14_i32_264 : i32 to vector<1x256xi32>
    %631 = arith.cmpi slt, %0, %630 : vector<1x256xi32>
    %632 = arith.andi %629, %631 : vector<1x256xi1>
    %c2_i32_265 = arith.constant 2 : i32
    %633 = vector.broadcast %c2_i32_265 : i32 to vector<1x256xi32>
    %634 = arith.cmpi sge, %1, %633 : vector<1x256xi32>
    %635 = arith.andi %632, %634 : vector<1x256xi1>
    %c18_i32_266 = arith.constant 18 : i32
    %636 = vector.broadcast %c18_i32_266 : i32 to vector<1x256xi32>
    %637 = arith.cmpi slt, %1, %636 : vector<1x256xi32>
    %638 = arith.andi %635, %637 : vector<1x256xi1>
    %c226_i32 = arith.constant 226 : i32
    %639 = tpu.dynamic_rotate %13 by %c226_i32 dim 1 : vector<4x256xf32>, i32 -> vector<4x256xf32>
    %cst_267 = arith.constant 0.000000e+00 : f32
    %640 = vector.shape_cast %638 : vector<1x256xi1> to vector<1x256xi1>
    %641 = vector.broadcast %640 : vector<1x256xi1> to vector<4x256xi1>
    %642 = vector.broadcast %cst_267 : f32 to vector<4x256xf32>
    %643 = arith.select %641, %639, %642 : vector<4x256xi1>, vector<4x256xf32>
    %c20 = arith.constant 20 : index
    %c0_268 = arith.constant 0 : index
    %c0_269 = arith.constant 0 : index
    %644 = vector.load %arg8[%c20, %c0_268, %c0_269] : memref<25x8x4xbf16, #tpu.memory_space<vmem>>, vector<1x8x4xbf16>
    %645 = vector.shape_cast %644 : vector<1x8x4xbf16> to vector<8x4xbf16>
    %646 = arith.truncf %643 : vector<4x256xf32> to vector<4x256xbf16>
    %cst_270 = arith.constant dense<0.000000e+00> : vector<8x256xf32>
    %647 = tpu.matmul %645, %646, %cst_270 {dimension_numbers = #tpu.dot_dimension_numbers<[1], [0], [0], [1], [0, 0, 1, 1], [], []>} : vector<8x4xbf16>, vector<4x256xbf16>, vector<8x256xf32> -> vector<8x256xf32>
    %648 = arith.addf %627, %647 : vector<8x256xf32>
    %c-2_i32_271 = arith.constant -2 : i32
    %649 = vector.broadcast %c-2_i32_271 : i32 to vector<1x256xi32>
    %650 = arith.cmpi sge, %0, %649 : vector<1x256xi32>
    %c14_i32_272 = arith.constant 14 : i32
    %651 = vector.broadcast %c14_i32_272 : i32 to vector<1x256xi32>
    %652 = arith.cmpi slt, %0, %651 : vector<1x256xi32>
    %653 = arith.andi %650, %652 : vector<1x256xi1>
    %c1_i32_273 = arith.constant 1 : i32
    %654 = vector.broadcast %c1_i32_273 : i32 to vector<1x256xi32>
    %655 = arith.cmpi sge, %1, %654 : vector<1x256xi32>
    %656 = arith.andi %653, %655 : vector<1x256xi1>
    %c17_i32_274 = arith.constant 17 : i32
    %657 = vector.broadcast %c17_i32_274 : i32 to vector<1x256xi32>
    %658 = arith.cmpi slt, %1, %657 : vector<1x256xi32>
    %659 = arith.andi %656, %658 : vector<1x256xi1>
    %c225_i32 = arith.constant 225 : i32
    %660 = tpu.dynamic_rotate %13 by %c225_i32 dim 1 : vector<4x256xf32>, i32 -> vector<4x256xf32>
    %cst_275 = arith.constant 0.000000e+00 : f32
    %661 = vector.shape_cast %659 : vector<1x256xi1> to vector<1x256xi1>
    %662 = vector.broadcast %661 : vector<1x256xi1> to vector<4x256xi1>
    %663 = vector.broadcast %cst_275 : f32 to vector<4x256xf32>
    %664 = arith.select %662, %660, %663 : vector<4x256xi1>, vector<4x256xf32>
    %c21 = arith.constant 21 : index
    %c0_276 = arith.constant 0 : index
    %c0_277 = arith.constant 0 : index
    %665 = vector.load %arg8[%c21, %c0_276, %c0_277] : memref<25x8x4xbf16, #tpu.memory_space<vmem>>, vector<1x8x4xbf16>
    %666 = vector.shape_cast %665 : vector<1x8x4xbf16> to vector<8x4xbf16>
    %667 = arith.truncf %664 : vector<4x256xf32> to vector<4x256xbf16>
    %cst_278 = arith.constant dense<0.000000e+00> : vector<8x256xf32>
    %668 = tpu.matmul %666, %667, %cst_278 {dimension_numbers = #tpu.dot_dimension_numbers<[1], [0], [0], [1], [0, 0, 1, 1], [], []>} : vector<8x4xbf16>, vector<4x256xbf16>, vector<8x256xf32> -> vector<8x256xf32>
    %669 = arith.addf %648, %668 : vector<8x256xf32>
    %c-2_i32_279 = arith.constant -2 : i32
    %670 = vector.broadcast %c-2_i32_279 : i32 to vector<1x256xi32>
    %671 = arith.cmpi sge, %0, %670 : vector<1x256xi32>
    %c14_i32_280 = arith.constant 14 : i32
    %672 = vector.broadcast %c14_i32_280 : i32 to vector<1x256xi32>
    %673 = arith.cmpi slt, %0, %672 : vector<1x256xi32>
    %674 = arith.andi %671, %673 : vector<1x256xi1>
    %c0_i32_281 = arith.constant 0 : i32
    %675 = vector.broadcast %c0_i32_281 : i32 to vector<1x256xi32>
    %676 = arith.cmpi sge, %1, %675 : vector<1x256xi32>
    %677 = arith.andi %674, %676 : vector<1x256xi1>
    %c16_i32_282 = arith.constant 16 : i32
    %678 = vector.broadcast %c16_i32_282 : i32 to vector<1x256xi32>
    %679 = arith.cmpi slt, %1, %678 : vector<1x256xi32>
    %680 = arith.andi %677, %679 : vector<1x256xi1>
    %c224_i32 = arith.constant 224 : i32
    %681 = tpu.dynamic_rotate %13 by %c224_i32 dim 1 : vector<4x256xf32>, i32 -> vector<4x256xf32>
    %cst_283 = arith.constant 0.000000e+00 : f32
    %682 = vector.shape_cast %680 : vector<1x256xi1> to vector<1x256xi1>
    %683 = vector.broadcast %682 : vector<1x256xi1> to vector<4x256xi1>
    %684 = vector.broadcast %cst_283 : f32 to vector<4x256xf32>
    %685 = arith.select %683, %681, %684 : vector<4x256xi1>, vector<4x256xf32>
    %c22 = arith.constant 22 : index
    %c0_284 = arith.constant 0 : index
    %c0_285 = arith.constant 0 : index
    %686 = vector.load %arg8[%c22, %c0_284, %c0_285] : memref<25x8x4xbf16, #tpu.memory_space<vmem>>, vector<1x8x4xbf16>
    %687 = vector.shape_cast %686 : vector<1x8x4xbf16> to vector<8x4xbf16>
    %688 = arith.truncf %685 : vector<4x256xf32> to vector<4x256xbf16>
    %cst_286 = arith.constant dense<0.000000e+00> : vector<8x256xf32>
    %689 = tpu.matmul %687, %688, %cst_286 {dimension_numbers = #tpu.dot_dimension_numbers<[1], [0], [0], [1], [0, 0, 1, 1], [], []>} : vector<8x4xbf16>, vector<4x256xbf16>, vector<8x256xf32> -> vector<8x256xf32>
    %690 = arith.addf %669, %689 : vector<8x256xf32>
    %c-2_i32_287 = arith.constant -2 : i32
    %691 = vector.broadcast %c-2_i32_287 : i32 to vector<1x256xi32>
    %692 = arith.cmpi sge, %0, %691 : vector<1x256xi32>
    %c14_i32_288 = arith.constant 14 : i32
    %693 = vector.broadcast %c14_i32_288 : i32 to vector<1x256xi32>
    %694 = arith.cmpi slt, %0, %693 : vector<1x256xi32>
    %695 = arith.andi %692, %694 : vector<1x256xi1>
    %c-1_i32_289 = arith.constant -1 : i32
    %696 = vector.broadcast %c-1_i32_289 : i32 to vector<1x256xi32>
    %697 = arith.cmpi sge, %1, %696 : vector<1x256xi32>
    %698 = arith.andi %695, %697 : vector<1x256xi1>
    %c15_i32_290 = arith.constant 15 : i32
    %699 = vector.broadcast %c15_i32_290 : i32 to vector<1x256xi32>
    %700 = arith.cmpi slt, %1, %699 : vector<1x256xi32>
    %701 = arith.andi %698, %700 : vector<1x256xi1>
    %c223_i32 = arith.constant 223 : i32
    %702 = tpu.dynamic_rotate %13 by %c223_i32 dim 1 : vector<4x256xf32>, i32 -> vector<4x256xf32>
    %cst_291 = arith.constant 0.000000e+00 : f32
    %703 = vector.shape_cast %701 : vector<1x256xi1> to vector<1x256xi1>
    %704 = vector.broadcast %703 : vector<1x256xi1> to vector<4x256xi1>
    %705 = vector.broadcast %cst_291 : f32 to vector<4x256xf32>
    %706 = arith.select %704, %702, %705 : vector<4x256xi1>, vector<4x256xf32>
    %c23 = arith.constant 23 : index
    %c0_292 = arith.constant 0 : index
    %c0_293 = arith.constant 0 : index
    %707 = vector.load %arg8[%c23, %c0_292, %c0_293] : memref<25x8x4xbf16, #tpu.memory_space<vmem>>, vector<1x8x4xbf16>
    %708 = vector.shape_cast %707 : vector<1x8x4xbf16> to vector<8x4xbf16>
    %709 = arith.truncf %706 : vector<4x256xf32> to vector<4x256xbf16>
    %cst_294 = arith.constant dense<0.000000e+00> : vector<8x256xf32>
    %710 = tpu.matmul %708, %709, %cst_294 {dimension_numbers = #tpu.dot_dimension_numbers<[1], [0], [0], [1], [0, 0, 1, 1], [], []>} : vector<8x4xbf16>, vector<4x256xbf16>, vector<8x256xf32> -> vector<8x256xf32>
    %711 = arith.addf %690, %710 : vector<8x256xf32>
    %c-2_i32_295 = arith.constant -2 : i32
    %712 = vector.broadcast %c-2_i32_295 : i32 to vector<1x256xi32>
    %713 = arith.cmpi sge, %0, %712 : vector<1x256xi32>
    %c14_i32_296 = arith.constant 14 : i32
    %714 = vector.broadcast %c14_i32_296 : i32 to vector<1x256xi32>
    %715 = arith.cmpi slt, %0, %714 : vector<1x256xi32>
    %716 = arith.andi %713, %715 : vector<1x256xi1>
    %c-2_i32_297 = arith.constant -2 : i32
    %717 = vector.broadcast %c-2_i32_297 : i32 to vector<1x256xi32>
    %718 = arith.cmpi sge, %1, %717 : vector<1x256xi32>
    %719 = arith.andi %716, %718 : vector<1x256xi1>
    %c14_i32_298 = arith.constant 14 : i32
    %720 = vector.broadcast %c14_i32_298 : i32 to vector<1x256xi32>
    %721 = arith.cmpi slt, %1, %720 : vector<1x256xi32>
    %722 = arith.andi %719, %721 : vector<1x256xi1>
    %c222_i32 = arith.constant 222 : i32
    %723 = tpu.dynamic_rotate %13 by %c222_i32 dim 1 : vector<4x256xf32>, i32 -> vector<4x256xf32>
    %cst_299 = arith.constant 0.000000e+00 : f32
    %724 = vector.shape_cast %722 : vector<1x256xi1> to vector<1x256xi1>
    %725 = vector.broadcast %724 : vector<1x256xi1> to vector<4x256xi1>
    %726 = vector.broadcast %cst_299 : f32 to vector<4x256xf32>
    %727 = arith.select %725, %723, %726 : vector<4x256xi1>, vector<4x256xf32>
    %c24 = arith.constant 24 : index
    %c0_300 = arith.constant 0 : index
    %c0_301 = arith.constant 0 : index
    %728 = vector.load %arg8[%c24, %c0_300, %c0_301] : memref<25x8x4xbf16, #tpu.memory_space<vmem>>, vector<1x8x4xbf16>
    %729 = vector.shape_cast %728 : vector<1x8x4xbf16> to vector<8x4xbf16>
    %730 = arith.truncf %727 : vector<4x256xf32> to vector<4x256xbf16>
    %cst_302 = arith.constant dense<0.000000e+00> : vector<8x256xf32>
    %731 = tpu.matmul %729, %730, %cst_302 {dimension_numbers = #tpu.dot_dimension_numbers<[1], [0], [0], [1], [0, 0, 1, 1], [], []>} : vector<8x4xbf16>, vector<4x256xbf16>, vector<8x256xf32> -> vector<8x256xf32>
    %732 = arith.addf %711, %731 : vector<8x256xf32>
    %c0_303 = arith.constant 0 : index
    %c0_304 = arith.constant 0 : index
    %733 = vector.load %arg9[%c0_303, %c0_304] : memref<8x1xf32, #tpu.memory_space<vmem>>, vector<8x1xf32>
    %734 = vector.broadcast %733 : vector<8x1xf32> to vector<8x256xf32>
    %735 = arith.addf %732, %734 : vector<8x256xf32>
    %cst_305 = arith.constant 0.000000e+00 : f32
    %736 = vector.broadcast %cst_305 : f32 to vector<8x256xf32>
    %737 = arith.maximumf %735, %736 : vector<8x256xf32>
    %738 = arith.extf %3 : vector<4x256xbf16> to vector<4x256xf32>
    %c1_i32_306 = arith.constant 1 : i32
    %739 = vector.broadcast %c1_i32_306 : i32 to vector<1x256xi32>
    %740 = arith.cmpi sge, %0, %739 : vector<1x256xi32>
    %c17_i32_307 = arith.constant 17 : i32
    %741 = vector.broadcast %c17_i32_307 : i32 to vector<1x256xi32>
    %742 = arith.cmpi slt, %0, %741 : vector<1x256xi32>
    %743 = arith.andi %740, %742 : vector<1x256xi1>
    %c1_i32_308 = arith.constant 1 : i32
    %744 = vector.broadcast %c1_i32_308 : i32 to vector<1x256xi32>
    %745 = arith.cmpi sge, %1, %744 : vector<1x256xi32>
    %746 = arith.andi %743, %745 : vector<1x256xi1>
    %c17_i32_309 = arith.constant 17 : i32
    %747 = vector.broadcast %c17_i32_309 : i32 to vector<1x256xi32>
    %748 = arith.cmpi slt, %1, %747 : vector<1x256xi32>
    %749 = arith.andi %746, %748 : vector<1x256xi1>
    %c17_i32_310 = arith.constant 17 : i32
    %750 = tpu.dynamic_rotate %738 by %c17_i32_310 dim 1 : vector<4x256xf32>, i32 -> vector<4x256xf32>
    %751 = vector.shape_cast %749 : vector<1x256xi1> to vector<1x256xi1>
    %752 = vector.broadcast %751 : vector<1x256xi1> to vector<4x256xi1>
    %753 = arith.select %752, %750, %738 : vector<4x256xi1>, vector<4x256xf32>
    %754 = arith.maximumf %738, %753 : vector<4x256xf32>
    %c1_i32_311 = arith.constant 1 : i32
    %755 = vector.broadcast %c1_i32_311 : i32 to vector<1x256xi32>
    %756 = arith.cmpi sge, %0, %755 : vector<1x256xi32>
    %c17_i32_312 = arith.constant 17 : i32
    %757 = vector.broadcast %c17_i32_312 : i32 to vector<1x256xi32>
    %758 = arith.cmpi slt, %0, %757 : vector<1x256xi32>
    %759 = arith.andi %756, %758 : vector<1x256xi1>
    %c0_i32_313 = arith.constant 0 : i32
    %760 = vector.broadcast %c0_i32_313 : i32 to vector<1x256xi32>
    %761 = arith.cmpi sge, %1, %760 : vector<1x256xi32>
    %762 = arith.andi %759, %761 : vector<1x256xi1>
    %c16_i32_314 = arith.constant 16 : i32
    %763 = vector.broadcast %c16_i32_314 : i32 to vector<1x256xi32>
    %764 = arith.cmpi slt, %1, %763 : vector<1x256xi32>
    %765 = arith.andi %762, %764 : vector<1x256xi1>
    %c16_i32_315 = arith.constant 16 : i32
    %766 = tpu.dynamic_rotate %738 by %c16_i32_315 dim 1 : vector<4x256xf32>, i32 -> vector<4x256xf32>
    %767 = vector.shape_cast %765 : vector<1x256xi1> to vector<1x256xi1>
    %768 = vector.broadcast %767 : vector<1x256xi1> to vector<4x256xi1>
    %769 = arith.select %768, %766, %738 : vector<4x256xi1>, vector<4x256xf32>
    %770 = arith.maximumf %754, %769 : vector<4x256xf32>
    %c1_i32_316 = arith.constant 1 : i32
    %771 = vector.broadcast %c1_i32_316 : i32 to vector<1x256xi32>
    %772 = arith.cmpi sge, %0, %771 : vector<1x256xi32>
    %c17_i32_317 = arith.constant 17 : i32
    %773 = vector.broadcast %c17_i32_317 : i32 to vector<1x256xi32>
    %774 = arith.cmpi slt, %0, %773 : vector<1x256xi32>
    %775 = arith.andi %772, %774 : vector<1x256xi1>
    %c-1_i32_318 = arith.constant -1 : i32
    %776 = vector.broadcast %c-1_i32_318 : i32 to vector<1x256xi32>
    %777 = arith.cmpi sge, %1, %776 : vector<1x256xi32>
    %778 = arith.andi %775, %777 : vector<1x256xi1>
    %c15_i32_319 = arith.constant 15 : i32
    %779 = vector.broadcast %c15_i32_319 : i32 to vector<1x256xi32>
    %780 = arith.cmpi slt, %1, %779 : vector<1x256xi32>
    %781 = arith.andi %778, %780 : vector<1x256xi1>
    %c15_i32_320 = arith.constant 15 : i32
    %782 = tpu.dynamic_rotate %738 by %c15_i32_320 dim 1 : vector<4x256xf32>, i32 -> vector<4x256xf32>
    %783 = vector.shape_cast %781 : vector<1x256xi1> to vector<1x256xi1>
    %784 = vector.broadcast %783 : vector<1x256xi1> to vector<4x256xi1>
    %785 = arith.select %784, %782, %738 : vector<4x256xi1>, vector<4x256xf32>
    %786 = arith.maximumf %770, %785 : vector<4x256xf32>
    %c0_i32_321 = arith.constant 0 : i32
    %787 = vector.broadcast %c0_i32_321 : i32 to vector<1x256xi32>
    %788 = arith.cmpi sge, %0, %787 : vector<1x256xi32>
    %c16_i32_322 = arith.constant 16 : i32
    %789 = vector.broadcast %c16_i32_322 : i32 to vector<1x256xi32>
    %790 = arith.cmpi slt, %0, %789 : vector<1x256xi32>
    %791 = arith.andi %788, %790 : vector<1x256xi1>
    %c1_i32_323 = arith.constant 1 : i32
    %792 = vector.broadcast %c1_i32_323 : i32 to vector<1x256xi32>
    %793 = arith.cmpi sge, %1, %792 : vector<1x256xi32>
    %794 = arith.andi %791, %793 : vector<1x256xi1>
    %c17_i32_324 = arith.constant 17 : i32
    %795 = vector.broadcast %c17_i32_324 : i32 to vector<1x256xi32>
    %796 = arith.cmpi slt, %1, %795 : vector<1x256xi32>
    %797 = arith.andi %794, %796 : vector<1x256xi1>
    %c1_i32_325 = arith.constant 1 : i32
    %798 = tpu.dynamic_rotate %738 by %c1_i32_325 dim 1 : vector<4x256xf32>, i32 -> vector<4x256xf32>
    %799 = vector.shape_cast %797 : vector<1x256xi1> to vector<1x256xi1>
    %800 = vector.broadcast %799 : vector<1x256xi1> to vector<4x256xi1>
    %801 = arith.select %800, %798, %738 : vector<4x256xi1>, vector<4x256xf32>
    %802 = arith.maximumf %786, %801 : vector<4x256xf32>
    %c0_i32_326 = arith.constant 0 : i32
    %803 = vector.broadcast %c0_i32_326 : i32 to vector<1x256xi32>
    %804 = arith.cmpi sge, %0, %803 : vector<1x256xi32>
    %c16_i32_327 = arith.constant 16 : i32
    %805 = vector.broadcast %c16_i32_327 : i32 to vector<1x256xi32>
    %806 = arith.cmpi slt, %0, %805 : vector<1x256xi32>
    %807 = arith.andi %804, %806 : vector<1x256xi1>
    %c-1_i32_328 = arith.constant -1 : i32
    %808 = vector.broadcast %c-1_i32_328 : i32 to vector<1x256xi32>
    %809 = arith.cmpi sge, %1, %808 : vector<1x256xi32>
    %810 = arith.andi %807, %809 : vector<1x256xi1>
    %c15_i32_329 = arith.constant 15 : i32
    %811 = vector.broadcast %c15_i32_329 : i32 to vector<1x256xi32>
    %812 = arith.cmpi slt, %1, %811 : vector<1x256xi32>
    %813 = arith.andi %810, %812 : vector<1x256xi1>
    %c255_i32_330 = arith.constant 255 : i32
    %814 = tpu.dynamic_rotate %738 by %c255_i32_330 dim 1 : vector<4x256xf32>, i32 -> vector<4x256xf32>
    %815 = vector.shape_cast %813 : vector<1x256xi1> to vector<1x256xi1>
    %816 = vector.broadcast %815 : vector<1x256xi1> to vector<4x256xi1>
    %817 = arith.select %816, %814, %738 : vector<4x256xi1>, vector<4x256xf32>
    %818 = arith.maximumf %802, %817 : vector<4x256xf32>
    %c-1_i32_331 = arith.constant -1 : i32
    %819 = vector.broadcast %c-1_i32_331 : i32 to vector<1x256xi32>
    %820 = arith.cmpi sge, %0, %819 : vector<1x256xi32>
    %c15_i32_332 = arith.constant 15 : i32
    %821 = vector.broadcast %c15_i32_332 : i32 to vector<1x256xi32>
    %822 = arith.cmpi slt, %0, %821 : vector<1x256xi32>
    %823 = arith.andi %820, %822 : vector<1x256xi1>
    %c1_i32_333 = arith.constant 1 : i32
    %824 = vector.broadcast %c1_i32_333 : i32 to vector<1x256xi32>
    %825 = arith.cmpi sge, %1, %824 : vector<1x256xi32>
    %826 = arith.andi %823, %825 : vector<1x256xi1>
    %c17_i32_334 = arith.constant 17 : i32
    %827 = vector.broadcast %c17_i32_334 : i32 to vector<1x256xi32>
    %828 = arith.cmpi slt, %1, %827 : vector<1x256xi32>
    %829 = arith.andi %826, %828 : vector<1x256xi1>
    %c241_i32_335 = arith.constant 241 : i32
    %830 = tpu.dynamic_rotate %738 by %c241_i32_335 dim 1 : vector<4x256xf32>, i32 -> vector<4x256xf32>
    %831 = vector.shape_cast %829 : vector<1x256xi1> to vector<1x256xi1>
    %832 = vector.broadcast %831 : vector<1x256xi1> to vector<4x256xi1>
    %833 = arith.select %832, %830, %738 : vector<4x256xi1>, vector<4x256xf32>
    %834 = arith.maximumf %818, %833 : vector<4x256xf32>
    %c-1_i32_336 = arith.constant -1 : i32
    %835 = vector.broadcast %c-1_i32_336 : i32 to vector<1x256xi32>
    %836 = arith.cmpi sge, %0, %835 : vector<1x256xi32>
    %c15_i32_337 = arith.constant 15 : i32
    %837 = vector.broadcast %c15_i32_337 : i32 to vector<1x256xi32>
    %838 = arith.cmpi slt, %0, %837 : vector<1x256xi32>
    %839 = arith.andi %836, %838 : vector<1x256xi1>
    %c0_i32_338 = arith.constant 0 : i32
    %840 = vector.broadcast %c0_i32_338 : i32 to vector<1x256xi32>
    %841 = arith.cmpi sge, %1, %840 : vector<1x256xi32>
    %842 = arith.andi %839, %841 : vector<1x256xi1>
    %c16_i32_339 = arith.constant 16 : i32
    %843 = vector.broadcast %c16_i32_339 : i32 to vector<1x256xi32>
    %844 = arith.cmpi slt, %1, %843 : vector<1x256xi32>
    %845 = arith.andi %842, %844 : vector<1x256xi1>
    %c240_i32_340 = arith.constant 240 : i32
    %846 = tpu.dynamic_rotate %738 by %c240_i32_340 dim 1 : vector<4x256xf32>, i32 -> vector<4x256xf32>
    %847 = vector.shape_cast %845 : vector<1x256xi1> to vector<1x256xi1>
    %848 = vector.broadcast %847 : vector<1x256xi1> to vector<4x256xi1>
    %849 = arith.select %848, %846, %738 : vector<4x256xi1>, vector<4x256xf32>
    %850 = arith.maximumf %834, %849 : vector<4x256xf32>
    %c-1_i32_341 = arith.constant -1 : i32
    %851 = vector.broadcast %c-1_i32_341 : i32 to vector<1x256xi32>
    %852 = arith.cmpi sge, %0, %851 : vector<1x256xi32>
    %c15_i32_342 = arith.constant 15 : i32
    %853 = vector.broadcast %c15_i32_342 : i32 to vector<1x256xi32>
    %854 = arith.cmpi slt, %0, %853 : vector<1x256xi32>
    %855 = arith.andi %852, %854 : vector<1x256xi1>
    %c-1_i32_343 = arith.constant -1 : i32
    %856 = vector.broadcast %c-1_i32_343 : i32 to vector<1x256xi32>
    %857 = arith.cmpi sge, %1, %856 : vector<1x256xi32>
    %858 = arith.andi %855, %857 : vector<1x256xi1>
    %c15_i32_344 = arith.constant 15 : i32
    %859 = vector.broadcast %c15_i32_344 : i32 to vector<1x256xi32>
    %860 = arith.cmpi slt, %1, %859 : vector<1x256xi32>
    %861 = arith.andi %858, %860 : vector<1x256xi1>
    %c239_i32_345 = arith.constant 239 : i32
    %862 = tpu.dynamic_rotate %738 by %c239_i32_345 dim 1 : vector<4x256xf32>, i32 -> vector<4x256xf32>
    %863 = vector.shape_cast %861 : vector<1x256xi1> to vector<1x256xi1>
    %864 = vector.broadcast %863 : vector<1x256xi1> to vector<4x256xi1>
    %865 = arith.select %864, %862, %738 : vector<4x256xi1>, vector<4x256xf32>
    %866 = arith.maximumf %850, %865 : vector<4x256xf32>
    %c0_346 = arith.constant 0 : index
    %c0_347 = arith.constant 0 : index
    %867 = vector.load %arg10[%c0_346, %c0_347] : memref<8x4xbf16, #tpu.memory_space<vmem>>, vector<8x4xbf16>
    %868 = arith.truncf %866 : vector<4x256xf32> to vector<4x256xbf16>
    %cst_348 = arith.constant dense<0.000000e+00> : vector<8x256xf32>
    %869 = tpu.matmul %867, %868, %cst_348 {dimension_numbers = #tpu.dot_dimension_numbers<[1], [0], [0], [1], [0, 0, 1, 1], [], []>} : vector<8x4xbf16>, vector<4x256xbf16>, vector<8x256xf32> -> vector<8x256xf32>
    %c0_349 = arith.constant 0 : index
    %c0_350 = arith.constant 0 : index
    %870 = vector.load %arg11[%c0_349, %c0_350] : memref<8x1xf32, #tpu.memory_space<vmem>>, vector<8x1xf32>
    %871 = vector.broadcast %870 : vector<8x1xf32> to vector<8x256xf32>
    %872 = arith.addf %869, %871 : vector<8x256xf32>
    %cst_351 = arith.constant 0.000000e+00 : f32
    %873 = vector.broadcast %cst_351 : f32 to vector<8x256xf32>
    %874 = arith.maximumf %872, %873 : vector<8x256xf32>
    %c0_352 = arith.constant 0 : index
    %c0_353 = arith.constant 0 : index
    %c0_354 = arith.constant 0 : index
    %875 = vector.load %arg12[%c0_352, %c0_353, %c0_354] : memref<1x32x256xf32, #tpu.memory_space<vmem>>, vector<1x8x256xf32>
    %876 = vector.shape_cast %875 : vector<1x8x256xf32> to vector<8x256xf32>
    %877 = vector.shape_cast %11 : vector<8x256xf32> to vector<1x8x256xf32>
    tpu.vector_store %arg12[%c0_352, %c0_353, %c0_354], %877 {strides = array<i32>} : memref<1x32x256xf32, #tpu.memory_space<vmem>>, vector<1x8x256xf32>,
    %c0_355 = arith.constant 0 : index
    %c8_356 = arith.constant 8 : index
    %c0_357 = arith.constant 0 : index
    %878 = vector.load %arg12[%c0_355, %c8_356, %c0_357] : memref<1x32x256xf32, #tpu.memory_space<vmem>>, vector<1x8x256xf32>
    %879 = vector.shape_cast %878 : vector<1x8x256xf32> to vector<8x256xf32>
    %880 = vector.shape_cast %207 : vector<8x256xf32> to vector<1x8x256xf32>
    tpu.vector_store %arg12[%c0_355, %c8_356, %c0_357], %880 {strides = array<i32>} : memref<1x32x256xf32, #tpu.memory_space<vmem>>, vector<1x8x256xf32>,
    %c0_358 = arith.constant 0 : index
    %c16_359 = arith.constant 16 : index
    %c0_360 = arith.constant 0 : index
    %881 = vector.load %arg12[%c0_358, %c16_359, %c0_360] : memref<1x32x256xf32, #tpu.memory_space<vmem>>, vector<1x8x256xf32>
    %882 = vector.shape_cast %881 : vector<1x8x256xf32> to vector<8x256xf32>
    %883 = vector.shape_cast %737 : vector<8x256xf32> to vector<1x8x256xf32>
    tpu.vector_store %arg12[%c0_358, %c16_359, %c0_360], %883 {strides = array<i32>} : memref<1x32x256xf32, #tpu.memory_space<vmem>>, vector<1x8x256xf32>,
    %c0_361 = arith.constant 0 : index
    %c24_362 = arith.constant 24 : index
    %c0_363 = arith.constant 0 : index
    %884 = vector.load %arg12[%c0_361, %c24_362, %c0_363] : memref<1x32x256xf32, #tpu.memory_space<vmem>>, vector<1x8x256xf32>
    %885 = vector.shape_cast %884 : vector<1x8x256xf32> to vector<8x256xf32>
    %886 = vector.shape_cast %874 : vector<8x256xf32> to vector<1x8x256xf32>
    tpu.vector_store %arg12[%c0_361, %c24_362, %c0_363], %886 {strides = array<i32>} : memref<1x32x256xf32, #tpu.memory_space<vmem>>, vector<1x8x256xf32>,
    return
  }
  func.func @transform_0(%arg0: i32) -> (i32, i32) {
    %c0_i32 = arith.constant 0 : i32
    %c0_i32_0 = arith.constant 0 : i32
    %c0_i32_1 = arith.constant 0 : i32
    return %c0_i32, %c0_i32_0 : i32, i32
  }
  func.func @transform_1(%arg0: i32) -> (i32, i32) {
    %c0_i32 = arith.constant 0 : i32
    %c0_i32_0 = arith.constant 0 : i32
    %c0_i32_1 = arith.constant 0 : i32
    return %c0_i32, %c0_i32_0 : i32, i32
  }
  func.func @transform_2(%arg0: i32) -> (i32, i32, i32) {
    %c0_i32 = arith.constant 0 : i32
    %c0_i32_0 = arith.constant 0 : i32
    %c0_i32_1 = arith.constant 0 : i32
    return %arg0, %c0_i32, %c0_i32_0 : i32, i32, i32
  }
  func.func @transform_3(%arg0: i32) -> (i32, i32) {
    %c0_i32 = arith.constant 0 : i32
    %c0_i32_0 = arith.constant 0 : i32
    %c0_i32_1 = arith.constant 0 : i32
    return %c0_i32, %c0_i32_0 : i32, i32
  }
  func.func @transform_4(%arg0: i32) -> (i32, i32) {
    %c0_i32 = arith.constant 0 : i32
    %c0_i32_0 = arith.constant 0 : i32
    %c0_i32_1 = arith.constant 0 : i32
    return %c0_i32, %c0_i32_0 : i32, i32
  }
  func.func @transform_5(%arg0: i32) -> (i32, i32, i32) {
    %c0_i32 = arith.constant 0 : i32
    %c0_i32_0 = arith.constant 0 : i32
    %c0_i32_1 = arith.constant 0 : i32
    %c0_i32_2 = arith.constant 0 : i32
    return %c0_i32, %c0_i32_0, %c0_i32_1 : i32, i32, i32
  }
  func.func @transform_6(%arg0: i32) -> (i32, i32) {
    %c0_i32 = arith.constant 0 : i32
    %c0_i32_0 = arith.constant 0 : i32
    %c0_i32_1 = arith.constant 0 : i32
    return %c0_i32, %c0_i32_0 : i32, i32
  }
  func.func @transform_7(%arg0: i32) -> (i32, i32, i32) {
    %c0_i32 = arith.constant 0 : i32
    %c0_i32_0 = arith.constant 0 : i32
    %c0_i32_1 = arith.constant 0 : i32
    %c0_i32_2 = arith.constant 0 : i32
    return %c0_i32, %c0_i32_0, %c0_i32_1 : i32, i32, i32
  }
  func.func @transform_8(%arg0: i32) -> (i32, i32) {
    %c0_i32 = arith.constant 0 : i32
    %c0_i32_0 = arith.constant 0 : i32
    %c0_i32_1 = arith.constant 0 : i32
    return %c0_i32, %c0_i32_0 : i32, i32
  }
  func.func @transform_9(%arg0: i32) -> (i32, i32) {
    %c0_i32 = arith.constant 0 : i32
    %c0_i32_0 = arith.constant 0 : i32
    %c0_i32_1 = arith.constant 0 : i32
    return %c0_i32, %c0_i32_0 : i32, i32
  }
  func.func @transform_10(%arg0: i32) -> (i32, i32) {
    %c0_i32 = arith.constant 0 : i32
    %c0_i32_0 = arith.constant 0 : i32
    %c0_i32_1 = arith.constant 0 : i32
    return %c0_i32, %c0_i32_0 : i32, i32
  }
  func.func @transform_11(%arg0: i32) -> (i32, i32, i32) {
    %c0_i32 = arith.constant 0 : i32
    %c0_i32_0 = arith.constant 0 : i32
    %c0_i32_1 = arith.constant 0 : i32
    return %arg0, %c0_i32, %c0_i32_0 : i32, i32, i32
  }
}

</mosaic_0001>

<bundles_post_ra>
// kernel: tile.9
= control target key start
LH: loop header
LB: loop body
LE: loop exit
PB: predicated region body
PF: predicated region fallthrough
CT: control target
= control target key end

     0   :  { %s7_s6 = smov 3  ;;  %s21_s9 = smov 3  ;;  %vm4_vm0 = vcmask 130048   ;;  %vm11_vm1 = vcmask 1048448   ;;  %vm18_vm2 = vcmask 917248   ;;  %vm25_vm3 = vcmask 786048   ;;  %s128_s0 = inlined_call_operand.vmem [shape: s32[16,16], index: 0, kind: input, shape index: {}]   ;;  %s129_s1 = inlined_call_operand.vmem [shape: s32[1,256], index: 1, kind: output, shape index: {}]  }
   0x1   :  { %v66_v0 = vld [vmem:[%s128_s0 + $0x7] ss:$8 sm:%s7_s6]   ;;  %s81_s10 = smov 112   ;;  %v68_v1 = vld [vmem:[%s128_s0 + $0x5] ss:$8 sm:%s21_s9]   ;;  %s14_s13 = smov 3 }
   0x2   :  { %9 = vrot.lane.b32.xlu0 %v66_v0, %s81_s10  ;;  %s82_s14 = smov 80   ;;  %v67_v2 = vld [vmem:[%s128_s0 + $0x6] ss:$8 sm:%s14_s13]   ;;  %s28_s17 = smov 3  ;;  %vm32_vm4 = vcmask 654848   ;;  %vm39_vm5 = vcmask 523648  }
   0x3   :  { %23 = vrot.lane.b32.xlu1 %v68_v1, %s82_s14  ;;  %v69_v3 = vld [vmem:[%s128_s0 + $0x4] ss:$8 sm:%s28_s17]   ;;  %s35_s20 = smov 3  ;;  %s42_s21 = smov 3  ;;  %vm46_vm6 = vcmask 392448   ;;  %vm53_vm7 = vcmask 261248  }
   0x4   :  { %s83_s22 = smov 96   ;;  %s84_s23 = smov 64   ;;  %v70_v4 = vld [vmem:[%s128_s0 + $0x3] ss:$8 sm:%s35_s20]   ;;  %v71_v5 = vld [vmem:[%s128_s0 + $0x2] ss:$8 sm:%s42_s21]  }
   0x5   :  { %s2_s26 = smov 3  ;;  %s49_s29 = smov 3 }
   0x6   :  { %16 = vrot.lane.b32.xlu0 %v67_v2, %s83_s22  ;;  %v3_v6 = vld [vmem:[%s128_s0] ss:$8 sm:%s2_s26]   ;;  %s85_s3 = smov 48   ;;  %s86_s4 = smov 32  }
   0x7   :  { %30 = vrot.lane.b32.xlu1 %v69_v3, %s84_s23  ;;  %5 = vst.msk [vmem:[#allocation0] ss:$8 sm:$0x3] %vm4_vm0, %v3_v6   ;;  %v72_v7 = vld [vmem:[%s128_s0 + $0x1] ss:$8 sm:%s49_s29]   ;;  %s87_s0 = smov 16  }
   0xa   :  { %37 = vrot.lane.b32.xlu0 %v70_v4, %s85_s3 }
   0xb   :  { %44 = vrot.lane.b32.xlu1 %v71_v5, %s86_s4 }
   0xe   :  { %51 = vrot.lane.b32.xlu0 %v72_v7, %s87_s0 }
  0x74   :  { %v10_v8 = vpop.permute.xlu0 %9  }
  0x75   :  { %12 = vst.msk [vmem:[#allocation0] ss:$8 sm:$0x3] %vm11_vm1, %v10_v8   ;;  %v24_v9 = vpop.permute.xlu1 %23  }
  0x78   :  { %v17_v10 = vpop.permute.xlu0 %16  }
  0x79   :  { %19 = vst.msk [vmem:[#allocation0] ss:$8 sm:$0x3] %vm18_vm2, %v17_v10   ;;  %v31_v11 = vpop.permute.xlu1 %30  }
  0x7a   :  { %26 = vst.msk [vmem:[#allocation0] ss:$8 sm:$0x3] %vm25_vm3, %v24_v9  }
  0x7b   :  { %33 = vst.msk [vmem:[#allocation0] ss:$8 sm:$0x3] %vm32_vm4, %v31_v11  }
  0x7c   :  { %v38_v12 = vpop.permute.xlu0 %37  }
  0x7d   :  { %40 = vst.msk [vmem:[#allocation0] ss:$8 sm:$0x3] %vm39_vm5, %v38_v12   ;;  %v45_v13 = vpop.permute.xlu1 %44  }
  0x7e   :  { %47 = vst.msk [vmem:[#allocation0] ss:$8 sm:$0x3] %vm46_vm6, %v45_v13  }
  0x80   :  { %v52_v14 = vpop.permute.xlu0 %51  }
  0x81   :  { %54 = vst.msk [vmem:[#allocation0] ss:$8 sm:$0x3] %vm53_vm7, %v52_v14  }
  0x88   :  { %v58_v15 = vld [vmem:[#allocation0] sm:$0x1]  ;;  %v62_v16 = vld [vmem:[#allocation0 + $0x8] sm:$0x1] }
  0x89   :  { %60 = vst [vmem:[%s129_s1] sm:$0x1] %v58_v15  ;;  %73 = vst [vmem:[%s129_s1 + $0x1] sm:$0x1] %v62_v16 }

// kernel: basic_block_forward.1
= control target key start
LH: loop header
LB: loop body
LE: loop exit
PB: predicated region body
PF: predicated region fallthrough
CT: control target
= control target key end

     0   :  { %s3717_s17 = smov 0   ;;  %s5367_s0 = inlined_call_operand.vmem [shape: s32[1,256], index: 0, kind: input, shape index: {}]   ;;  %s5368_s1 = inlined_call_operand.vmem [shape: s32[1,256], index: 1, kind: input, shape index: {}]   ;;  %s5369_s2 = inlined_call_operand.vmem [shape: bf16[2,4,256], index: 2, kind: input, shape index: {}]   ;;  %s5370_s3 = inlined_call_operand.vmem [shape: bf16[16,4], index: 3, kind: input, shape index: {}]   ;;  %s5371_s4 = inlined_call_operand.vmem [shape: f32[16,1], index: 4, kind: input, shape index: {}]   ;;  %s5372_s5 = inlined_call_operand.vmem [shape: bf16[9,8,4], index: 5, kind: input, shape index: {}]   ;;  %s5373_s6 = inlined_call_operand.vmem [shape: f32[8,1], index: 6, kind: input, shape index: {}]   ;;  %s5374_s7 = inlined_call_operand.vmem [shape: bf16[25,8,4], index: 7, kind: input, shape index: {}]   ;;  %s5375_s8 = inlined_call_operand.vmem [shape: f32[8,1], index: 8, kind: input, shape index: {}]   ;;  %s5376_s9 = inlined_call_operand.vmem [shape: bf16[8,4], index: 9, kind: input, shape index: {}]   ;;  %s5377_s10 = inlined_call_operand.vmem [shape: f32[8,1], index: 10, kind: input, shape index: {}]   ;;  %s5378_s11 = inlined_call_operand.vmem [shape: f32[2,32,256], index: 11, kind: output, shape index: {}]  }
   0x1 LB: > { %s3268_s18 = sadd.s32 4294967295, %s3629_s17   ;;  %p3272_p0 = scmp.ge.s32.totalorder %s3629_s17, 1  ;;  %s3629_s17 = sphi %s3717_s17, %s21_s17  }
   0x2   : > { %p337_p1 = scmp.lt.s32.totalorder %s3629_s17, 3 }
   0x4   : > { %p338_p2 = pnand %p3272_p0, %p337_p1 }
   0x6   : > { %341 = sbr.rel (%p338_p2) target bundleno = 757 (0x2f5), region = 64 }
   0xd   : > { %p377_p3 = scmp.lt.s32.totalorder %s3268_s18, 1  ;;  %v414_v0 = vlaneseq  ;;  %v3631_v1 = vmov 1983009808   ;;  %v5419_v3 = vmov 0   ;;  %v394_v4 = vld [vmem:[%s5371_s4 + $0x8] sm:$0xff]  ;;  %vm5382_vm0 = vcmask 1041408  }
   0xe   : > { %v412_v2 = vunpack.c.l.s4 %v3631_v1  ;;  %462 = vmatprep.mubr.bf16.mxu0 %v5419_v3  ;;  %3420 = vset.pattern.permute.xlu0 %v5419_v3  ;;  %v3622_v12 = vld [vmem:[%s5370_s3] sm:$0xff]   ;;  %vm5381_vm1 = vcmask 31744   ;;  %s3633_s27 = smov 17   ;;  %s3634_s28 = smov 16   ;;  %v5444_v31 = vmov 0  ;;  %v5446_v32 = vmov 0 }
   0xf   : > { %s5845_s18 = smov (!%p377_p3, %s3268_s18), 1  ;;  %v3733_v5 = vshrl.u32 %v414_v0, 7  ;;  %402 = vperm.xlu0 %3420, %v394_v4   ;;  %3621 = vset.pattern.permute.xlu1 %v5419_v3  ;;  %s3635_s29 = smov 15   ;;  %v3804_v29 = vld [vmem:[%s5367_s0] sm:$0x3]  ;;  %v5449_v33 = vmov 0 }
  0x10   : > { %v413_v6 = vunpack.c.0.s8 %v412_v2  ;;  %578 = vmatprep.mubr.bf16.mxu1 %v5419_v3  ;;  %s3384_s21 = sshll.u32 %s5845_s18, 2  ;;  %s3636_s30 = smov 1   ;;  %vm947_vm2 = vcmp.ge.s32.totalorder %v3804_v29, 4294967295  ;;  %vm948_vm3 = vcmp.lt.s32.totalorder %v3804_v29, 15  ;;  %v3811_v30 = vld [vmem:[%s5368_s1] sm:$0x3] }
  0x11   : > { %s381_s24 = scalar_lea.vmem %s5369_s2, %s3384_s21  ;;  %s3637_s12 = smov 127   ;;  %vm3816_vm4 = vmand %vm947_vm2, %vm948_vm3  ;;  %vm5380_vm5 = vcmp.ge.s32.totalorder %v3811_v30, 4294967294  ;;  %vm5379_vm6 = vcmp.lt.s32.totalorder %v3811_v30, 14  ;;  %vm2630_vm9 = vcmp.ge.s32.totalorder %v3804_v29, 4294967294  ;;  %vm2631_vm10 = vcmp.lt.s32.totalorder %v3804_v29, 14  ;;  %v1184_v36 = vld [vmem:[%s5373_s6] sm:$0xff] }
  0x12   : > { %v416_v7 = vsub.s32 %v413_v6, %v3733_v5  ;;  %v390_v8 = vld [vmem:[%s381_s24] sm:$0xf]  ;;  %s3638_s13 = smov 113   ;;  %s3639_s14 = smov 112   ;;  %v5445_v31 = vsel %vm3816_vm4, 4294967295, %v5444_v31  ;;  %vm2552_vm7 = vmand %vm3816_vm4, %vm5380_vm5  ;;  %vm5384_vm11 = vcmp.ge.s32.totalorder %v3811_v30, 2 }
  0x13   : > { %s3640_s15 = smov 111   ;;  %s3641_s16 = smov 34   ;;  %v3784_v26 = vunpack.c.l.bf16 %v390_v8  ;;  %vm3828_vm8 = vmand %vm2552_vm7, %vm5379_vm6  ;;  %vm5383_vm13 = vcmp.lt.s32.totalorder %v3811_v30, 18  ;;  %v5452_v34 = vmov 0  ;;  %v5455_v35 = vmov 0  ;;  %v393_v37 = vld [vmem:[%s5371_s4] sm:$0xff] }
  0x14   : > { %v417_v9 = vrot.slane %v390_v8, %v416_v7  ;;  %s3642_s19 = smov 33   ;;  %s3643_s20 = smov 31   ;;  %v5447_v32 = vsel %vm3828_vm8, 4294967295, %v5446_v32  ;;  %vm3838_vm12 = vmand %vm2630_vm9, %vm2631_vm10  ;;  %v3147_v38 = vld [vmem:[%s5377_s10] sm:$0xff]  ;;  %vm717_vm7 = vcmp.ge.s32.totalorder %v3804_v29, 0  ;;  %vm718_vm9 = vcmp.lt.s32.totalorder %v3804_v29, 16 }
  0x15   : > { %s3644_s21 = smov 32   ;;  %s3645_s22 = smov 18   ;;  %v3794_v27 = vcombine.high %v3784_v26, %v3784_v26  ;;  %5448 = vst [vmem:[#allocation4_spill] sm:$0xff] %v5447_v32  ;;  %v5450_v33 = vsel %vm3838_vm12, 4294967295, %v5449_v33  ;;  %vm2633_vm14 = vmand %vm3838_vm12, %vm5384_vm11  ;;  %vm477_vm10 = vcmp.ge.s32.totalorder %v3804_v29, 1  ;;  %v5458_v39 = vmov 0 }
  0x16   : > { %v418_v10 = vcombine.high %v417_v9, %v417_v9  ;;  %v425_v11 = vsel %vm5382_vm0, %v417_v9, 0  ;;  %s3646_s23 = smov 30   ;;  %s3647_s24 = smov 14   ;;  %5451 = vst [vmem:[#allocation5_spill] sm:$0xff] %v5450_v33  ;;  %vm3851_vm15 = vmand %vm2633_vm14, %vm5383_vm13  ;;  %vm478_vm14 = vcmp.lt.s32.totalorder %v3804_v29, 17  ;;  %v5460_v40 = vmov 0 }
  0x17   : > { %s3648_s25 = smov 2   ;;  %s3649_s26 = smov 126   ;;  %v3541_v28 = vpack.i.bf16 %v3794_v27, %v3784_v26  ;;  %v5453_v34 = vsel %vm3851_vm15, 4294967295, %v5452_v34  ;;  %vm2945_vm2 = vmand %vm3838_vm12, %vm5380_vm5  ;;  %vm5462_vm15 = vcmp.ge.s32.totalorder %v3811_v30, 0  ;;  %v3939_v43 = vsub.s32 1, %v3733_v5 }
  0x18   : > { %3278 = vmatprep.subr.msk.bf16.mxu0 %vm5382_vm0, %v418_v10  ;;  %5454 = vst [vmem:[#allocation6_spill] sm:$0xff] %v5453_v34  ;;  %vm3867_vm3 = vmand %vm2945_vm2, %vm5379_vm6  ;;  %vm5385_vm6 = vcmp.ge.s32.totalorder %v3811_v30, 0  ;;  %vm5390_vm0 = vcmp.lt.s32.totalorder %v3811_v30, 16  ;;  %v3946_v44 = vsub.s32 0, %v3733_v5  ;;  %v3981_v52 = vand.u32 127, %v414_v0 }
  0x19   : > { %431 = vmatpush1.bf16.msra.mxu0 %v425_v11  ;;  %v5456_v35 = vsel %vm3867_vm3, 4294967295, %v5455_v35  ;;  %vm3888_vm2 = vmand %vm717_vm7, %vm718_vm9  ;;  %vm5389_vm7 = vcmp.ge.s32.totalorder %v3811_v30, 4294967295  ;;  %vm5392_vm3 = vcmp.lt.s32.totalorder %v3811_v30, 15  ;;  %v5488_v0 = vmov 0 }
  0x1a   : > { %5457 = vst [vmem:[#allocation7_spill] sm:$0xff] %v5456_v35  ;;  %v5459_v39 = vsel %vm3888_vm2, 4294967295, %v5458_v39  ;;  %vm3893_vm5 = vmand %vm477_vm10, %vm478_vm14  ;;  %vm5391_vm10 = vcmp.lt.s32.totalorder %v3811_v30, 17  ;;  %v5491_v9 = vmov 0  ;;  %v5493_v10 = vmov 0 }
  0x1b   : > { %v5461_v40 = vsel %vm3893_vm5, 4294967295, %v5460_v40  ;;  %vm798_vm13 = vmand %vm3888_vm2, %vm5385_vm6  ;;  %v5504_v42 = vmov 0  ;;  %v5506_v45 = vmov 0  ;;  %v5603_v34 = vmov 0  }
  0x1c   : > { %3279 = vmatmul.mubr.msk.bf16.vlgmr.msra.gmra.mrb[0].mxu0 %vm5381_vm1, %v3622_v12  ;;  %vm5386_vm1 = vcmp.ge.s32.totalorder %v3811_v30, 1  ;;  %vm799_vm14 = vmand %vm798_vm13, %vm5390_vm0  ;;  %vm5465_vm13 = vcmp.ge.s32.totalorder %v3811_v30, 1 }
  0x1d   : > { %628 = vmatprep.mubr.bf16.mxu0 %v5419_v3  ;;  %vm481_vm9 = vmand %vm3893_vm5, %vm5386_vm1  ;;  %v800_v46 = vsel %vm799_vm14, 1, %v5419_v3 }
  0x1e   : > { %vm638_vm11 = vmand %vm3893_vm5, %vm5389_vm7  ;;  %v808_v49 = vrot.slane %v800_v46, %v3939_v43  ;;  %v804_v51 = vrot.slane %v800_v46, %v3946_v44  ;;  %v5508_v46 = vmov 0 }
  0x1f   : > { %vm483_vm6 = vmand %vm481_vm9, %vm5391_vm10 }
  0x20   : > { %vm510_vm1 = vmand %vm3893_vm5, %vm5462_vm15  ;;  %vm5468_vm15 = vcmp.ge.s32.totalorder %v3811_v30, 4294967295  ;;  %v493_v47 = vsel %vm483_vm6, 1, %v5419_v3  ;;  %vm1194_vm6 = vcmp.ge.s32.totalorder %v3804_v29, 2 }
  0x21   : > { %vm3924_vm12 = vmand %vm638_vm11, %vm5392_vm3  ;;  %v501_v53 = vrot.slane %v493_v47, %v3939_v43  ;;  %v497_v62 = vrot.slane %v493_v47, %v3946_v44 }
  0x22   : > { %vm720_vm7 = vmand %vm3888_vm2, %vm5465_vm13  ;;  %v648_v54 = vsel %vm3924_vm12, 1, %v5419_v3  ;;  %vm4003_vm12 = vcmp.eq.s32.totalorder %v808_v49, 1 }
  0x23   : > { %vm3934_vm8 = vmand %vm510_vm1, %vm5390_vm0  ;;  %v656_v60 = vrot.slane %v648_v54, %v3939_v43  ;;  %v652_v11 = vrot.slane %v648_v54, %v3946_v44 }
  0x24   : > { %vm869_vm11 = vmand %vm3888_vm2, %vm5468_vm15  ;;  %v520_v56 = vsel %vm3934_vm8, 1, %v5419_v3  ;;  %vm5512_vm2 = vcmp.lt.s32.totalorder %v3981_v52, 16 }
  0x25   : > { %vm3950_vm9 = vmand %vm720_vm7, %vm5391_vm10  ;;  %vm5474_vm7 = vcmp.ge.s32.totalorder %v3811_v30, 0  ;;  %v528_v2 = vrot.slane %v520_v56, %v3939_v43  ;;  %v524_v5 = vrot.slane %v520_v56, %v3946_v44 }
  0x26   : > { %vm5471_vm1 = vmmov %vm5465_vm13  ;;  %v729_v55 = vsel %vm3950_vm9, 1, %v5419_v3  ;;  %vm4018_vm9 = vcmp.eq.s32.totalorder %v804_v51, 1 }
  0x27   : > { %vm950_vm13 = vmand %vm3816_vm4, %vm5471_vm1  ;;  %vm5477_vm1 = vcmp.ge.s32.totalorder %v3811_v30, 4294967295  ;;  %v737_v1 = vrot.slane %v729_v55, %v3939_v43  ;;  %v733_v12 = vrot.slane %v729_v55, %v3946_v44 }
  0x28   : > { %vm3962_vm15 = vmand %vm869_vm11, %vm5392_vm3  ;;  %vm1195_vm11 = vcmp.lt.s32.totalorder %v3804_v29, 18 }
  0x29   : > { %vm1028_vm0 = vmand %vm3816_vm4, %vm5474_vm7  ;;  %vm5478_vm7 = vcmp.lt.s32.totalorder %v3811_v30, 16  ;;  %v878_v61 = vsel %vm3962_vm15, 1, %v5419_v3 }
  0x2a   : > { %vm3973_vm14 = vmand %vm950_vm13, %vm5391_vm10  ;;  %v886_v6 = vrot.slane %v878_v61, %v3939_v43 }
  0x2b   : > { %vm1106_vm13 = vmand %vm3816_vm4, %vm5477_vm1  ;;  %v4034_v4 = vsel %vm3973_vm14, 1, %v5419_v3  ;;  %vm4051_vm14 = vcmp.eq.s32.totalorder %v656_v60, 1  ;;  %vm4055_vm1 = vcmp.eq.s32.totalorder %v497_v62, 1  ;;  %vm4101_vm4 = vcmp.eq.s32.totalorder %v733_v12, 1 }
  0x2c   : > { %vm3999_vm10 = vmand %vm1028_vm0, %vm5478_vm7  ;;  %vm5485_vm0 = vcmp.lt.s32.totalorder %v3811_v30, 15  ;;  %v5492_v9 = vsel %vm4051_vm14, 4294967295, %v5491_v9  ;;  %v5494_v10 = vsel %vm4055_vm1, 4294967295, %v5493_v10  ;;  %v5509_v46 = vsel %vm4101_vm4, 4294967295, %v5508_v46 }
  0x2d   : > { %vm4007_vm3 = vmand %vm1194_vm6, %vm1195_vm11  ;;  %vm4023_vm11 = vcmp.eq.s32.totalorder %v501_v53, 1  ;;  %v4046_v7 = vsel %vm3999_vm10, 1, %v5419_v3  ;;  %vm4065_vm10 = vcmp.eq.s32.totalorder %v528_v2, 1  ;;  %vm4079_vm6 = vcmp.eq.s32.totalorder %v524_v5, 1 }
  0x2e   : > { %vm1107_vm8 = vmand %vm1106_vm13, %vm5485_vm0  ;;  %v5489_v0 = vsel %vm4023_vm11, 4294967295, %v5488_v0  ;;  %vm5490_vm13 = vcmp.ge.s32.totalorder %v3811_v30, 2  ;;  %vm4097_vm0 = vcmp.eq.s32.totalorder %v652_v11, 1  ;;  %v5514_v53 = vmov 0 }
  0x2f   : > { %vm1198_vm7 = vmand %vm4007_vm3, %vm5490_vm13  ;;  %v4049_v8 = vsel %vm1107_vm8, 1, %v5419_v3  ;;  %vm4061_vm13 = vcmp.eq.s32.totalorder %v737_v1, 1  ;;  %vm5499_vm8 = vcmp.lt.s32.totalorder %v3811_v30, 18  ;;  %v5507_v45 = vsel %vm4097_vm0, 4294967295, %v5506_v45 }
  0x30   : > { %vm4073_vm15 = vmand %vm1198_vm7, %vm5499_vm8  ;;  %vm4092_vm7 = vcmp.eq.s32.totalorder %v886_v6, 1  ;;  %v5516_v1 = vmov 0  ;;  %v5521_v12 = vmov 0 }
  0x31   : > { %v5505_v42 = vsel %vm4092_vm7, 4294967295, %v5504_v42  ;;  %vm5513_vm5 = vmmov %vm5512_vm2 }
  0x8e   : > { %v403_v14 = vpop.permute.xlu0 %402 }
  0xef   : > { %v3749_v13 = vpop.f32.mrb[0].mxu0 }
  0xf0   : > { %5442 = vst [vmem:[#allocation2_spill] sm:$0xff] %v3749_v13  ;;  %v3751_v15 = vpop.f32.mrb[1].mxu0 }
  0xf1   : > { %5443 = vst [vmem:[#allocation3_spill] sm:$0xff] %v3751_v15  ;;  %v468_v16 = vpop.f32.mrb[2].mxu0 }
  0xf2   : > { %v469_v17 = vadd.f32 %v468_v16, %v403_v14  ;;  %v470_v18 = vpop.f32.mrb[3].mxu0  ;;  %v5497_v16 = vmov 0 }
  0xf3   : > { %v471_v19 = vadd.f32 %v470_v18, %v403_v14  ;;  %v5498_v16 = vsel %vm4065_vm10, 4294967295, %v5497_v16 }
  0xf4   : > { %v3753_v20 = vmax.f32 %v469_v17, 0.0  ;;  %v967_v17 = vrot.slane %v4034_v4, %v3939_v43 }
  0xf5   : > { %v3755_v21 = vmax.f32 %v471_v19, 0.0  ;;  %v882_v19 = vrot.slane %v878_v61, %v3946_v44 }
  0xf6   : > { %v1203_v22 = vrot.slane %v3753_v20, 4  ;;  %v4113_v47 = vsel %vm4018_vm9, %v3753_v20, 0.0  ;;  %vm5518_vm9 = vcmp.ge.s32.totalorder %v3811_v30, 1 }
  0xf7   : > { %v1204_v23 = vrot.slane %v3755_v21, 4  ;;  %v3426_v24 = vpack.i.bf16 %v3755_v21, %v3753_v20  ;;  %v4090_v29 = vsel %vm4003_vm12, %v3755_v21, 0.0  ;;  %v4108_v21 = vsel %vm4073_vm15, 1, %v5419_v3  ;;  %vm4144_vm15 = vmand %vm4007_vm3, %vm5518_vm9 }
  0xf8   : > { %vm5510_vm12 = vcmp.lt.s32.totalorder %v3981_v52, 17  ;;  %vm4123_vm7 = vcmp.eq.s32.totalorder %v882_v19, 1 }
  0xf9   : > { %3427 = vrot.lane.b32.xlu1 %v3426_v24, %s3633_s27  ;;  %3422 = vrot.lane.b32.xlu0 %v3426_v24, %s3634_s28  ;;  %v3763_v25 = vpack.i.bf16 %v1204_v23, %v1203_v22  ;;  %vm5511_vm8 = vmmov %vm5510_vm12  ;;  %v5515_v53 = vsel %vm4123_vm7, 4294967295, %v5514_v53 }
  0xfd   : > { %3432 = vrot.lane.b32.xlu1 %v3426_v24, %s3635_s29  ;;  %3437 = vrot.lane.b32.xlu0 %v3426_v24, %s3636_s30 }
 0x101   : > { %3442 = vrot.lane.b32.xlu1 %v3426_v24, %s3637_s12  ;;  %3447 = vrot.lane.b32.xlu0 %v3426_v24, %s3638_s13 }
 0x105   : > { %3452 = vrot.lane.b32.xlu1 %v3426_v24, %s3639_s14  ;;  %3457 = vrot.lane.b32.xlu0 %v3426_v24, %s3640_s15  ;;  %v5502_v24 = vmov 0 }
 0x106   : > { %v5503_v24 = vsel %vm4079_vm6, 4294967295, %v5502_v24 }
 0x109   : > { %3467 = vrot.lane.b32.xlu0 %v3763_v25, %s3641_s16  ;;  %3462 = vrot.lane.b32.xlu1 %v3763_v25, %s3642_s19  ;;  %s3650_s16 = smov 114  }
 0x10d   : > { %3477 = vrot.lane.b32.xlu0 %v3763_v25, %s3643_s20  ;;  %3472 = vrot.lane.b32.xlu1 %v3763_v25, %s3644_s21 }
 0x111   : > { %3487 = vrot.lane.b32.xlu0 %v3763_v25, %s3645_s22  ;;  %3482 = vrot.lane.b32.xlu1 %v3763_v25, %s3646_s23  ;;  %s3653_s23 = smov 97  }
 0x115   : > { %3497 = vrot.lane.b32.xlu0 %v3763_v25, %s3634_s28  ;;  %3492 = vrot.lane.b32.xlu1 %v3763_v25, %s3633_s27 }
 0x119   : > { %3507 = vrot.lane.b32.xlu0 %v3763_v25, %s3647_s24  ;;  %3502 = vrot.lane.b32.xlu1 %v3763_v25, %s3635_s29 }
 0x11d   : > { %3517 = vrot.lane.b32.xlu0 %v3763_v25, %s3636_s30  ;;  %3512 = vrot.lane.b32.xlu1 %v3763_v25, %s3648_s25 }
 0x121   : > { %3527 = vrot.lane.b32.xlu0 %v3763_v25, %s3649_s26  ;;  %3522 = vrot.lane.b32.xlu1 %v3763_v25, %s3637_s12 }
 0x125   : > { %3537 = vrot.lane.b32.xlu0 %v3763_v25, %s3638_s13  ;;  %3532 = vrot.lane.b32.xlu1 %v3763_v25, %s3650_s16 }
 0x129   : > { %3542 = vrot.lane.b32.xlu0 %v3541_v28, %s3633_s27  ;;  %3547 = vrot.lane.b32.xlu1 %v3763_v25, %s3639_s14  ;;  %s3651_s27 = smov 110  }
 0x12d   : > { %3552 = vrot.lane.b32.xlu0 %v3763_v25, %s3640_s15  ;;  %3567 = vrot.lane.b32.xlu1 %v3541_v28, %s3636_s30  ;;  %s3652_s30 = smov 98  }
 0x131   : > { %3557 = vrot.lane.b32.xlu0 %v3541_v28, %s3634_s28  ;;  %3587 = vrot.lane.b32.xlu1 %v3763_v25, %s3651_s27  ;;  %s3654_s28 = smov 96  }
 0x135   : > { %3562 = vrot.lane.b32.xlu0 %v3541_v28, %s3635_s29  ;;  %3592 = vrot.lane.b32.xlu1 %v3763_v25, %s3652_s30  ;;  %s3655_s29 = smov 95  }
 0x139   : > { %3572 = vrot.lane.b32.xlu0 %v3541_v28, %s3637_s12  ;;  %3597 = vrot.lane.b32.xlu1 %v3763_v25, %s3653_s23  ;;  %s3656_s12 = smov 94  }
 0x13d   : > { %3577 = vrot.lane.b32.xlu0 %v3541_v28, %s3638_s13  ;;  %3602 = vrot.lane.b32.xlu1 %v3763_v25, %s3654_s28 }
 0x141   : > { %3582 = vrot.lane.b32.xlu0 %v3541_v28, %s3639_s14  ;;  %3607 = vrot.lane.b32.xlu1 %v3763_v25, %s3655_s29 }
 0x145   : > { %3617 = vrot.lane.b32.xlu0 %v3763_v25, %s3656_s12  ;;  %3612 = vrot.lane.b32.xlu1 %v3541_v28, %s3640_s15  ;;  %v1045_v25 = vrot.slane %v4046_v7, %v3939_v43  ;;  %v1123_v28 = vrot.slane %v4049_v8, %v3939_v43  ;;  %s3385_s12 = sshll.u32 %s5845_s18, 6 }
 0x146   : > { %s5089_s24 = scalar_lea.vmem %s5378_s11, %s3385_s12 }
 0x149   : > { %1187 = vperm.xlu0 %3420, %v1184_v36   ;;  %397 = vperm.xlu1 %3621, %v393_v37  }
 0x14d   : > { %3150 = vperm.xlu0 %3420, %v3147_v38  }
 0x16b   : > { %v3428_v22 = vpop.permute.xlu1 %3427  ;;  %v3423_v23 = vpop.permute.xlu0 %3422 }
 0x16c   : > { %v3430_v36 = vunpack.i.h.bf16 %v3428_v22  ;;  %v3429_v37 = vunpack.i.l.bf16 %v3428_v22  ;;  %v3425_v38 = vunpack.i.h.bf16 %v3423_v23  ;;  %v3424_v41 = vunpack.i.l.bf16 %v3423_v23 }
 0x16e   : > { %v491_v48 = vsel %vm5510_vm12, %v3429_v37, %v3430_v36  ;;  %v492_v49 = vsel %vm5511_vm8, %v3430_v36, %v3429_v37  ;;  %v518_v50 = vsel %vm5512_vm2, %v3424_v41, %v3425_v38  ;;  %v519_v51 = vsel %vm5513_vm5, %v3425_v38, %v3424_v41 }
 0x16f   : > { %v505_v20 = vsel %vm4023_vm11, %v491_v48, 0.0  ;;  %v3433_v54 = vpop.permute.xlu1 %3432  ;;  %v3438_v55 = vpop.permute.xlu0 %3437  ;;  %v532_v56 = vsel %vm4065_vm10, %v518_v50, 0.0  ;;  %v504_v57 = vsel %vm4055_vm1, %v492_v49, 0.0  ;;  %v531_v58 = vsel %vm4079_vm6, %v519_v51, 0.0 }
 0x170   : > { %v3435_v60 = vunpack.i.h.bf16 %v3433_v54  ;;  %v3434_v61 = vunpack.i.l.bf16 %v3433_v54  ;;  %v3440_v62 = vunpack.i.h.bf16 %v3438_v55  ;;  %v3439_v63 = vunpack.i.l.bf16 %v3438_v55  ;;  %v3280_v55 = vld [vmem:[%s5372_s5 + $0x4] sm:$0xf] }
 0x171   : > { %vm4136_vm2 = vcmp.eq.s32.totalorder %v1045_v25, 1  ;;  %v536_v5 = vpack.c.bf16 %v532_v56, %v532_v56  ;;  %v508_v6 = vpack.c.bf16 %v505_v20, %v505_v20  ;;  %v507_v11 = vpack.c.bf16 %v504_v57, %v504_v57  ;;  %v506_v56 = vld [vmem:[%s5372_s5] sm:$0xf] }
 0x172   : > { %v5517_v1 = vsel %vm4136_vm2, 4294967295, %v5516_v1  ;;  %vm4148_vm8 = vcmp.eq.s32.totalorder %v967_v17, 1  ;;  %v535_v18 = vpack.c.bf16 %v531_v58, %v531_v58  ;;  %vm5523_vm12 = vcmp.lt.s32.totalorder %v3981_v52, 15 }
 0x173   : > { %v5522_v12 = vsel %vm4148_vm8, 4294967295, %v5521_v12  ;;  %v646_v19 = vsel %vm5523_vm12, %v3434_v61, %v3435_v60  ;;  %vm5524_vm5 = vmmov %vm5523_vm12  ;;  %vm5525_vm6 = vcmp.lt.s32.totalorder %v3981_v52, 1  ;;  %vm5527_vm10 = vcmask 1041408   ;;  %v3443_v37 = vpop.permute.xlu1 %3442  ;;  %v3448_v41 = vpop.permute.xlu0 %3447 }
 0x174   : > { %v647_v22 = vsel %vm5524_vm5, %v3435_v60, %v3434_v61  ;;  %v727_v23 = vsel %vm5525_vm6, %v3439_v63, %v3440_v62  ;;  %vm5526_vm9 = vmmov %vm5525_vm6  ;;  %v660_v36 = vsel %vm4051_vm14, %v646_v19, 0.0  ;;  %3281 = vmatprep.subr.msk.bf16.mxu1 %vm5527_vm10, %v536_v5  ;;  %vm5531_vm6 = vcmp.lt.s32.totalorder %v3811_v30, 17 }
 0x175   : > { %v728_v25 = vsel %vm5526_vm9, %v3440_v62, %v3439_v63  ;;  %v741_v17 = vsel %vm4061_vm13, %v727_v23, 0.0  ;;  %vm5528_vm1 = vmmov %vm5527_vm10  ;;  %v3445_v50 = vunpack.i.h.bf16 %v3443_v37  ;;  %v3444_v51 = vunpack.i.l.bf16 %v3443_v37 }
 0x176   : > { %3283 = vmatprep.subr.msk.bf16.mxu0 %vm5528_vm1, %v508_v6  ;;  %vm5529_vm12 = vmmov %vm5528_vm1  ;;  %v3450_v20 = vunpack.i.h.bf16 %v3448_v41  ;;  %v3449_v54 = vunpack.i.l.bf16 %v3448_v41  ;;  %v664_v57 = vpack.c.bf16 %v660_v36, %v660_v36  ;;  %v745_v58 = vpack.c.bf16 %v741_v17, %v741_v17 }
 0x177   : > { %v591_v38 = vsel %vm5529_vm12, %v507_v11, 0  ;;  %vm5530_vm5 = vmmov %vm5528_vm1  ;;  %v659_v60 = vsel %vm4097_vm0, %v647_v22, 0.0  ;;  %v740_v61 = vsel %vm4101_vm4, %v728_v25, 0.0  ;;  %vm5534_vm1 = vcmp.lt.s32.totalorder %v3981_v52, 127  ;;  %v3453_v11 = vpop.permute.xlu1 %3452 }
 0x178   : > { %v541_v48 = vsel %vm5530_vm5, %v535_v18, 0  ;;  %vm4172_vm9 = vmand %vm4144_vm15, %vm5531_vm6  ;;  %597 = vmatpush1.bf16.msra.mxu0 %v591_v38  ;;  %v876_v62 = vsel %vm5534_vm1, %v3444_v51, %v3445_v50  ;;  %v963_v5 = vrot.slane %v4034_v4, %v3946_v44  ;;  %vm5536_vm12 = vnez %v5505_v42  ;;  %v4202_v18 = vpop.permute.xlu0 %3457 }
 0x179   : > { %547 = vmatpush1.bf16.msra.mxu1 %v541_v48  ;;  %vm5535_vm10 = vmmov %vm5534_vm1  ;;  %v4194_v2 = vsel %vm4172_vm9, 1, %v5419_v3  ;;  %vm5537_vm5 = vcmask 31744   ;;  %v663_v19 = vpack.c.bf16 %v659_v60, %v659_v60  ;;  %v744_v22 = vpack.c.bf16 %v740_v61, %v740_v61 }
 0x17a   : > { %v877_v63 = vsel %vm5535_vm10, %v3445_v50, %v3444_v51  ;;  %vm5538_vm6 = vmmov %vm5537_vm5  ;;  %v1041_v23 = vrot.slane %v4046_v7, %v3946_v44  ;;  %vm5539_vm9 = vcmp.lt.s32.totalorder %v3981_v52, 113  ;;  %vm5540_vm1 = vcmask 1041408  }
 0x17b   : > { %v890_v6 = vsel %vm5536_vm12, %v877_v63, 0.0  ;;  %3284 = vmatmul.mubr.msk.bf16.vlgmr.msra.gmra.mrb[4].mxu0 %vm5538_vm6, %v506_v56  ;;  %v958_v25 = vsel %vm5539_vm9, %v3450_v20, %v3449_v54  ;;  %3286 = vmatprep.subr.msk.bf16.mxu1 %vm5540_vm1, %v664_v57  ;;  %vm5541_vm10 = vmmov %vm5540_vm1  ;;  %v3455_v4 = vunpack.i.h.bf16 %v3453_v11  ;;  %v3454_v36 = vunpack.i.l.bf16 %v3453_v11 }
 0x17c   : > { %3282 = vmatmul.mubr.msk.bf16.vlgmr.msra.gmra.mrb[0].mxu1 %vm5537_vm5, %v3280_v55  ;;  %3289 = vmatprep.subr.msk.bf16.mxu0 %vm5541_vm10, %v745_v58  ;;  %v4212_v17 = vpack.c.bf16 %v4090_v29, %v4090_v29  ;;  %vm4217_vm5 = vcmp.eq.s32.totalorder %v1123_v28, 1  ;;  %v5542_v37 = vmov 0  ;;  %vm5544_vm6 = vmmov %vm5540_vm1  ;;  %v894_v41 = vpack.c.bf16 %v890_v6, %v890_v6  ;;  %v4257_v57 = vpop.permute.xlu0 %3467  ;;  %v4259_v58 = vpop.permute.xlu1 %3462 }
 0x17d   : > { %v5543_v37 = vsel %vm4217_vm5, 4294967295, %v5542_v37  ;;  %v669_v7 = vsel %vm5544_vm6, %v663_v19, 0  ;;  %vm5545_vm9 = vmmov %vm5540_vm1  ;;  %706 = vmatprep.mubr.bf16.mxu1 %v5419_v3  ;;  %787 = vmatprep.mubr.bf16.mxu0 %v5419_v3  ;;  %v889_v29 = vsel %vm4123_vm7, %v876_v62, 0.0  ;;  %vm5546_vm1 = vcmp.ge.s32.totalorder %v3811_v30, 4294967295  ;;  %v3288_v19 = vld [vmem:[%s5372_s5 + $0xc] sm:$0xf] }
 0x17e   : > { %v750_v38 = vsel %vm5545_vm9, %v744_v22, 0  ;;  %vm4231_vm10 = vmand %vm4007_vm3, %vm5546_vm1  ;;  %vm5549_vm6 = vcmp.lt.s32.totalorder %v3981_v52, 112  ;;  %675 = vmatpush1.bf16.msra.mxu1 %v669_v7  ;;  %v1222_v49 = vrot.slane %v4108_v21, %v3939_v43  ;;  %v1247_v50 = vrot.slane %v4194_v2, %v3939_v43 }
 0x17f   : > { %v1036_v48 = vsel %vm5549_vm6, %v3455_v4, %v3454_v36  ;;  %v4243_v51 = vpack.c.bf16 %v4113_v47, %v4113_v47  ;;  %vm5550_vm9 = vcmp.ge.s32.totalorder %v3811_v30, 0  ;;  %756 = vmatpush1.bf16.msra.mxu0 %v750_v38  ;;  %vm5553_vm6 = vcmask 1041408  }
 0x180   : > { %vm4249_vm1 = vmand %vm4007_vm3, %vm5550_vm9  ;;  %v1049_v56 = vsel %vm4136_vm2, %v1036_v48, 0.0  ;;  %3292 = vmatprep.subr.msk.bf16.mxu1 %vm5553_vm6, %v4212_v17  ;;  %v893_v47 = vpack.c.bf16 %v889_v29, %v889_v29  ;;  %vm4261_vm15 = vcmp.eq.s32.totalorder %v963_v5, 1  ;;  %v5554_v60 = vmov 0  ;;  %3295 = vmatprep.subr.msk.bf16.mxu0 %vm5553_vm6, %v894_v41  ;;  %v3285_v5 = vld [vmem:[%s5372_s5 + $0x8] sm:$0xf]  ;;  %v4317_v38 = vpop.permute.xlu0 %3477  ;;  %v4319_v41 = vpop.permute.xlu1 %3472 }
 0x181   : > { %v5555_v60 = vsel %vm4261_vm15, 4294967295, %v5554_v60  ;;  %vm4265_vm9 = vcmp.eq.s32.totalorder %v1041_v23, 1  ;;  %v5556_v61 = vmov 0  ;;  %vm5558_vm7 = vcmp.lt.s32.totalorder %v3981_v52, 113 }
 0x182   : > { %v5557_v61 = vsel %vm4265_vm9, 4294967295, %v5556_v61  ;;  %v957_v62 = vsel %vm5558_vm7, %v3449_v54, %v3450_v20  ;;  %v971_v63 = vsel %vm4148_vm8, %v958_v25, 0.0  ;;  %v3460_v6 = vunpack.i.h.bf16 %v4202_v18 }
 0x183   : > { %v3459_v11 = vunpack.i.l.bf16 %v4202_v18  ;;  %vm5559_vm0 = vcmp.lt.s32.totalorder %v3811_v30, 15  ;;  %vm5560_vm4 = vcmp.lt.s32.totalorder %v3981_v52, 112  ;;  %v3465_v54 = vunpack.i.h.bf16 %v4259_v58 }
 0x184   : > { %vm1435_vm7 = vmand %vm4231_vm10, %vm5559_vm0  ;;  %v1035_v20 = vsel %vm5560_vm4, %v3454_v36, %v3455_v4  ;;  %v3464_v18 = vunpack.i.l.bf16 %v4259_v58  ;;  %v1053_v22 = vpack.c.bf16 %v1049_v56, %v1049_v56  ;;  %vm5561_vm6 = vcmp.lt.s32.totalorder %v3811_v30, 16  ;;  %v4382_v23 = vpop.permute.xlu0 %3487  ;;  %v3291_v4 = vld [vmem:[%s5372_s5 + $0x10] sm:$0xf] }
 0x185   : > { %vm4294_vm14 = vmand %vm4249_vm1, %vm5561_vm6  ;;  %vm1236_vm0 = vcmp.lt.s32.totalorder %v3981_v52, 33  ;;  %vm5564_vm10 = vcmask 1041408   ;;  %vm5565_vm8 = vcmp.ge.s32.totalorder %v3811_v30, 4294967294  ;;  %vm5568_vm1 = vcmask 31744  }
 0x186   : > { %v821_v25 = vsel %vm5564_vm10, %v4243_v51, 0  ;;  %vm4307_vm11 = vmand %vm4007_vm3, %vm5565_vm8  ;;  %3287 = vmatmul.mubr.msk.bf16.vlgmr.msra.gmra.mrb[4].mxu1 %vm5568_vm1, %v3285_v5  ;;  %v4315_v7 = vsel %vm1435_vm7, 1, %v5419_v3  ;;  %v975_v29 = vpack.c.bf16 %v971_v63, %v971_v63  ;;  %vm5572_vm3 = vnez %v5461_v40 }
 0x187   : > { %vm5569_vm6 = vmmov %vm5568_vm1  ;;  %v1119_v28 = vrot.slane %v4049_v8, %v3946_v44  ;;  %827 = vmatpush1.bf16.msra.mxu1 %v821_v25  ;;  %v4334_v48 = vsel %vm4294_vm14, 1, %v5419_v3  ;;  %v970_v55 = vsel %vm4261_vm15, %v957_v62, 0.0  ;;  %v1048_v56 = vsel %vm4265_vm9, %v1035_v20, 0.0  ;;  %858 = vmatprep.mubr.bf16.mxu1 %v5419_v3  ;;  %v4384_v25 = vpop.permute.xlu1 %3482 }
 0x188   : > { %3290 = vmatmul.mubr.msk.bf16.vlgmr.msra.gmra.mrb[8].mxu0 %vm5569_vm6, %v3288_v19  ;;  %vm5570_vm2 = vmmov %vm5564_vm10  ;;  %vm5571_vm10 = vcmp.ge.s32.totalorder %v3811_v30, 2  ;;  %v1243_v58 = vrot.slane %v4194_v2, %v3946_v44  ;;  %vm4344_vm7 = vcmp.eq.s32.totalorder %v1222_v49, 1  ;;  %vm4348_vm1 = vcmp.eq.s32.totalorder %v1247_v50, 1  ;;  %v4466_v19 = vpop.permute.xlu0 %3497 }
 0x189   : > { %v899_v36 = vsel %vm5570_vm2, %v893_v47, 0  ;;  %vm4325_vm8 = vmand %vm5572_vm3, %vm5571_vm10  ;;  %vm5575_vm2 = vcmp.lt.s32.totalorder %v3981_v52, 111  ;;  %v1237_v62 = vsel %vm1236_vm0, %v3464_v18, %v3465_v54  ;;  %vm5580_vm14 = vcmask 1041408   ;;  %936 = vmatprep.mubr.bf16.mxu0 %v5419_v3 }
 0x18a   : > { %905 = vmatpush1.bf16.msra.mxu0 %v899_v36  ;;  %v1114_v47 = vsel %vm5575_vm2, %v3460_v6, %v3459_v11  ;;  %vm5581_vm6 = vmmov %vm5580_vm14  ;;  %vm5582_vm10 = vcmp.lt.s32.totalorder %v3811_v30, 14  ;;  %v1451_v5 = vrot.slane %v4315_v7, %v3939_v43  ;;  %vm5585_vm4 = vcmp.lt.s32.totalorder %v3811_v30, 18 }
 0x18b   : > { %3301 = vmatprep.subr.msk.bf16.mxu0 %vm5580_vm14, %v1053_v22  ;;  %3298 = vmatprep.subr.msk.bf16.mxu1 %vm5581_vm6, %v975_v29  ;;  %vm4360_vm2 = vmand %vm4307_vm11, %vm5582_vm10  ;;  %v1218_v20 = vrot.slane %v4108_v21, %v3946_v44  ;;  %v1373_v22 = vrot.slane %v4334_v48, %v3939_v43  ;;  %v974_v36 = vpack.c.bf16 %v970_v55, %v970_v55  ;;  %vm4398_vm6 = vcmp.eq.s32.totalorder %v1119_v28, 1  ;;  %v3294_v28 = vld [vmem:[%s5372_s5 + $0x14] sm:$0xf] }
 0x18c   : > { %vm4372_vm14 = vmand %vm4325_vm8, %vm5585_vm4  ;;  %v1052_v29 = vpack.c.bf16 %v1048_v56, %v1048_v56  ;;  %vm5588_vm4 = vcmp.ge.s32.totalorder %v3811_v30, 4294967294  ;;  %v1127_v50 = vsel %vm4217_vm5, %v1114_v47, 0.0  ;;  %v1251_v49 = vsel %vm4348_vm1, %v1237_v62, 0.0 }
 0x18d   : > { %vm4394_vm8 = vmand %vm5572_vm3, %vm5588_vm4  ;;  %v4410_v40 = vsel %vm4360_vm2, 1, %v5419_v3  ;;  %vm4415_vm3 = vcmp.eq.s32.totalorder %v1243_v58, 1  ;;  %vm5595_vm4 = vcmp.ge.s32.totalorder %v3811_v30, 2  ;;  %vm5596_vm11 = vnez %v5459_v39 }
 0x18e   : > { %vm4423_vm1 = vmand %vm5596_vm11, %vm5595_vm4  ;;  %vm5599_vm10 = vcmp.lt.s32.totalorder %v3981_v52, 111  ;;  %v1238_v63 = vsel %vm1236_vm0, %v3465_v54, %v3464_v18  ;;  %v3475_v62 = vunpack.i.h.bf16 %v4319_v41  ;;  %v3474_v58 = vunpack.i.l.bf16 %v4319_v41 }
 0x18f   : > { %v1113_v47 = vsel %vm5599_vm10, %v3459_v11, %v3460_v6  ;;  %v5600_v2 = vunpack.i.h.bf16 %v4257_v57  ;;  %v5601_v3 = vunpack.i.l.bf16 %v4257_v57  ;;  %vm5602_vm2 = vcmp.lt.s32.totalorder %v3981_v52, 34 }
 0x190   : > { %v4442_v33 = vsel %vm4372_vm14, 1, %v5603_v34  ;;  %vm5604_vm10 = vcmp.lt.s32.totalorder %v3811_v30, 14  ;;  %vm4452_vm4 = vcmp.eq.s32.totalorder %v1218_v20, 1  ;;  %vm5611_vm14 = vcmask 31744   ;;  %v4468_v20 = vpop.permute.xlu1 %3492 }
 0x191   : > { %v1212_v35 = vsel %vm5602_vm2, %v5601_v3, %v5600_v2  ;;  %vm4448_vm0 = vmand %vm4394_vm8, %vm5604_vm10  ;;  %v1369_v3 = vrot.slane %v4334_v48, %v3946_v44  ;;  %vm4458_vm2 = vcmp.eq.s32.totalorder %v1451_v5, 1  ;;  %3293 = vmatmul.mubr.msk.bf16.vlgmr.msra.gmra.mrb[8].mxu1 %vm5611_vm14, %v3291_v4  ;;  %vm5613_vm9 = vcmask 1041408  }
 0x192   : > { %vm5612_vm5 = vmmov %vm5611_vm14  ;;  %v980_v18 = vsel %vm5613_vm9, %v974_v36, 0  ;;  %v1131_v21 = vpack.c.bf16 %v1127_v50, %v1127_v50  ;;  %v1255_v2 = vpack.c.bf16 %v1251_v49, %v1251_v49  ;;  %vm5615_vm10 = vcmp.lt.s32.totalorder %v3811_v30, 18  ;;  %1017 = vmatprep.mubr.bf16.mxu1 %v5603_v34 }
 0x193   : > { %3296 = vmatmul.mubr.msk.bf16.vlgmr.msra.gmra.mrb[12].mxu0 %vm5612_vm5, %v3294_v28  ;;  %vm5614_vm8 = vmmov %vm5613_vm9  ;;  %v1531_v5 = vrot.slane %v4410_v40, %v3939_v43  ;;  %986 = vmatpush1.bf16.msra.mxu1 %v980_v18  ;;  %v1126_v4 = vsel %vm4398_vm6, %v1113_v47, 0.0  ;;  %v1250_v50 = vsel %vm4415_vm3, %v1238_v63, 0.0  ;;  %v1447_v49 = vrot.slane %v4315_v7, %v3946_v44  ;;  %v4514_v18 = vpop.permute.xlu0 %3507 }
 0x194   : > { %v1058_v41 = vsel %vm5614_vm8, %v1052_v29, 0  ;;  %vm4474_vm15 = vmand %vm4423_vm1, %vm5615_vm10  ;;  %vm4486_vm5 = vcmp.eq.s32.totalorder %v1373_v22, 1  ;;  %vm5620_vm9 = vcmp.lt.s32.totalorder %v3981_v52, 32  ;;  %v1609_v28 = vrot.slane %v4442_v33, %v3939_v43  ;;  %1095 = vmatprep.mubr.bf16.mxu0 %v5603_v34 }
 0x195   : > { %1064 = vmatpush1.bf16.msra.mxu0 %v1058_v41  ;;  %v1363_v29 = vsel %vm5620_vm9, %v3474_v58, %v3475_v62  ;;  %vm5621_vm1 = vmmov %vm5614_vm8  ;;  %v4499_v55 = vsel %vm4448_vm0, 1, %v5603_v34  ;;  %v1226_v7 = vsel %vm4344_vm7, %v1212_v35, 0.0  ;;  %v3480_v22 = vunpack.i.h.bf16 %v4317_v38  ;;  %v4516_v35 = vpop.permute.xlu1 %3502 }
 0x196   : > { %3304 = vmatprep.subr.msk.bf16.mxu1 %vm5621_vm1, %v1131_v21  ;;  %vm5622_vm14 = vmmov %vm5621_vm1  ;;  %v3479_v56 = vunpack.i.l.bf16 %v4317_v38  ;;  %v4510_v47 = vsel %vm4474_vm15, 1, %v5603_v34  ;;  %v3485_v63 = vunpack.i.h.bf16 %v4384_v25  ;;  %v3484_v6 = vunpack.i.l.bf16 %v4384_v25  ;;  %v3297_v38 = vld [vmem:[%s5372_s5 + $0x18] sm:$0xf]  ;;  %v3300_v25 = vld [vmem:[%s5372_s5 + $0x1c] sm:$0xf] }
 0x197   : > { %3307 = vmatprep.subr.msk.bf16.mxu0 %vm5622_vm14, %v1255_v2  ;;  %v1130_v8 = vpack.c.bf16 %v1126_v4, %v1126_v4  ;;  %v1254_v41 = vpack.c.bf16 %v1250_v50, %v1250_v50  ;;  %v1377_v21 = vsel %vm4486_vm5, %v1363_v29, 0.0  ;;  %vm4524_vm15 = vcmp.eq.s32.totalorder %v1531_v5, 1  ;;  %vm5632_vm10 = vmmov %vm5620_vm9 }
 0x198   : > { %vm4531_vm7 = vcmp.eq.s32.totalorder %v1369_v3, 1  ;;  %vm4535_vm0 = vcmp.eq.s32.totalorder %v1447_v49, 1  ;;  %v5629_v4 = vunpack.i.l.bf16 %v4257_v57  ;;  %v5630_v50 = vunpack.i.h.bf16 %v4257_v57 }
 0x199   : > { %vm5631_vm8 = vcmp.lt.s32.totalorder %v3981_v52, 34  ;;  %v1364_v36 = vsel %vm5632_vm10, %v3475_v62, %v3474_v58  ;;  %vm4547_vm5 = vcmp.eq.s32.totalorder %v1609_v28, 1  ;;  %v1527_v49 = vrot.slane %v4410_v40, %v3946_v44  ;;  %v4569_v3 = vpop.permute.xlu1 %3512 }
 0x19a   : > { %v1213_v5 = vsel %vm5631_vm8, %v5630_v50, %v5629_v4  ;;  %vm5635_vm9 = vcmp.lt.s32.totalorder %v3981_v52, 31  ;;  %v1229_v4 = vpack.c.bf16 %v1226_v7, %v1226_v7  ;;  %v1605_v62 = vrot.slane %v4442_v33, %v3946_v44  ;;  %v4567_v50 = vpop.permute.xlu0 %3517 }
 0x19b   : > { %v1441_v15 = vsel %vm5635_vm9, %v3479_v56, %v3480_v22  ;;  %vm5636_vm1 = vcmp.lt.s32.totalorder %v3981_v52, 30  ;;  %vm5637_vm14 = vcmask 31744   ;;  %vm5639_vm10 = vcmask 1041408  }
 0x19c   : > { %v1521_v58 = vsel %vm5636_vm1, %v3484_v6, %v3485_v63  ;;  %3299 = vmatmul.mubr.msk.bf16.vlgmr.msra.gmra.mrb[12].mxu1 %vm5637_vm14, %v3297_v38  ;;  %vm5638_vm8 = vmmov %vm5637_vm14  ;;  %v1136_v28 = vsel %vm5639_vm10, %v1130_v8, 0  ;;  %v1381_v57 = vpack.c.bf16 %v1377_v21, %v1377_v21  ;;  %v5432_v33 = vunpack.i.h.bf16 %v4567_v50 }
 0x19d   : > { %3302 = vmatmul.mubr.msk.bf16.vlgmr.msra.gmra.mrb[16].mxu0 %vm5638_vm8, %v3300_v25  ;;  %vm5640_vm3 = vmmov %vm5639_vm10  ;;  %1142 = vmatpush1.bf16.msra.mxu1 %v1136_v28  ;;  %v5437_v7 = vunpack.i.l.bf16 %v4567_v50  ;;  %v1225_v38 = vsel %vm4452_vm4, %v1213_v5, 0.0  ;;  %v1376_v25 = vsel %vm4531_vm7, %v1364_v36, 0.0  ;;  %v3490_v8 = vunpack.i.h.bf16 %v4382_v23  ;;  %v4608_v54 = vpop.permute.xlu1 %3522 }
 0x19e   : > { %v1260_v40 = vsel %vm5640_vm3, %v1254_v41, 0  ;;  %v3489_v41 = vunpack.i.l.bf16 %v4382_v23  ;;  %3309 = vmatprep.subr.msk.bf16.mxu1 %vm5640_vm3, %v1229_v4  ;;  %vm5641_vm9 = vmmov %vm5640_vm3  ;;  %vm4581_vm1 = vcmp.eq.s32.totalorder %v1527_v49, 1  ;;  %vm5644_vm4 = vcmp.lt.s32.totalorder %v3981_v52, 31  ;;  %1173 = vmatprep.mubr.bf16.mxu1 %v5603_v34  ;;  %v3303_v4 = vld [vmem:[%s5372_s5 + $0x20] sm:$0xf] }
 0x19f   : > { %1266 = vmatpush1.bf16.msra.mxu0 %v1260_v40  ;;  %v1442_v11 = vsel %vm5644_vm4, %v3480_v22, %v3479_v56  ;;  %v1455_v48 = vsel %vm4458_vm2, %v1441_v15, 0.0  ;;  %vm5645_vm7 = vcmp.lt.s32.totalorder %v3981_v52, 30  ;;  %vm5646_vm14 = vcmp.lt.s32.totalorder %v3981_v52, 1  ;;  %v4606_v15 = vpop.permute.xlu0 %3527  ;;  %1297 = vmatprep.mubr.bf16.mxu0 %v5603_v34 }
 0x1a0   : > { %3312 = vmatprep.subr.msk.bf16.mxu0 %vm5641_vm9, %v1381_v57  ;;  %v1522_v23 = vsel %vm5645_vm7, %v3485_v63, %v3484_v6  ;;  %v2022_v5 = vsel %vm5646_vm14, %v5437_v7, %v5432_v33  ;;  %v1535_v36 = vsel %vm4524_vm15, %v1521_v58, 0.0  ;;  %v1228_v56 = vpack.c.bf16 %v1225_v38, %v1225_v38  ;;  %v3306_v58 = vld [vmem:[%s5374_s7 + $0x4] sm:$0xf] }
 0x1a1   : > { %v4604_v22 = vsel %vm4061_vm13, %v2022_v5, 0.0  ;;  %v1380_v63 = vpack.c.bf16 %v1376_v25, %v1376_v25  ;;  %v3495_v6 = vunpack.i.h.bf16 %v4468_v20  ;;  %v3494_v49 = vunpack.i.l.bf16 %v4468_v20  ;;  %v4654_v32 = vpop.permute.xlu1 %3532 }
 0x1a2   : > { %v5436_v57 = vunpack.i.h.bf16 %v4608_v54  ;;  %v5433_v2 = vunpack.i.l.bf16 %v4608_v54  ;;  %vm5647_vm2 = vcmp.lt.s32.totalorder %v3981_v52, 18  ;;  %v3500_v20 = vunpack.i.h.bf16 %v4466_v19 }
 0x1a3   : > { %v1599_v40 = vsel %vm5647_vm2, %v3489_v41, %v3490_v8  ;;  %vm5648_vm15 = vmmov %vm5647_vm2  ;;  %v3499_v25 = vunpack.i.l.bf16 %v4466_v19  ;;  %vm4629_vm8 = vcmp.eq.s32.totalorder %v1605_v62, 1  ;;  %vm5651_vm10 = vcmp.lt.s32.totalorder %v3981_v52, 127 }
 0x1a4   : > { %v4625_v38 = vsel %vm5648_vm15, %v3490_v8, %v3489_v41  ;;  %v2145_v28 = vsel %vm5651_vm10, %v5436_v57, %v5433_v2  ;;  %v1459_v33 = vpack.c.bf16 %v1455_v48, %v1455_v48  ;;  %v1454_v8 = vsel %vm4535_vm0, %v1442_v11, 0.0  ;;  %v4652_v2 = vpop.permute.xlu0 %3537 }
 0x1a5   : > { %v1534_v41 = vsel %vm4581_vm1, %v1522_v23, 0.0  ;;  %vm5441_vm3 = vcmp.lt.s32.totalorder %v3981_v52, 14  ;;  %v4646_v19 = vsel %vm5536_vm12, %v2145_v28, 0.0  ;;  %vm5653_vm9 = vcmask 31744  }
 0x1a6   : > { %5652 = vst [vmem:[#allocation8_spill] sm:$0xff] %v4646_v19  ;;  %3305 = vmatmul.mubr.msk.bf16.vlgmr.msra.gmra.mrb[16].mxu1 %vm5653_vm9, %v3303_v4  ;;  %vm5654_vm4 = vmmov %vm5653_vm9  ;;  %vm5655_vm7 = vcmask 1041408   ;;  %v1539_v21 = vpack.c.bf16 %v1535_v36, %v1535_v36  ;;  %v1613_v11 = vsel %vm4547_vm5, %v1599_v40, 0.0  ;;  %vm5657_vm0 = vcmp.lt.s32.totalorder %v3981_v52, 17 }
 0x1a7   : > { %3308 = vmatmul.mubr.msk.bf16.vlgmr.msra.gmra.mrb[20].mxu0 %vm5654_vm4, %v3306_v58  ;;  %v1310_v62 = vsel %vm5655_vm7, %v1228_v56, 0  ;;  %vm5656_vm14 = vmmov %vm5655_vm7  ;;  %v1674_v28 = vsel %vm5657_vm0, %v3494_v49, %v3495_v6  ;;  %v5435_v23 = vunpack.i.h.bf16 %v4652_v2  ;;  %v5434_v4 = vunpack.i.l.bf16 %v4652_v2  ;;  %1347 = vmatprep.mubr.bf16.mxu1 %v5603_v34 }
 0x1a8   : > { %v1386_v48 = vsel %vm5656_vm14, %v1380_v63, 0  ;;  %1316 = vmatpush1.bf16.msra.mxu1 %v1310_v62  ;;  %v3505_v56 = vunpack.i.h.bf16 %v4516_v35  ;;  %v3504_v63 = vunpack.i.l.bf16 %v4516_v35  ;;  %vm5658_vm1 = vmmov %vm5655_vm7  ;;  %v1458_v36 = vpack.c.bf16 %v1454_v8, %v1454_v8  ;;  %v4690_v8 = vpop.permute.xlu1 %3547  ;;  %1423 = vmatprep.mubr.bf16.mxu0 %v5603_v34 }
 0x1a9   : > { %1392 = vmatpush1.bf16.msra.mxu0 %v1386_v48  ;;  %3315 = vmatprep.subr.msk.bf16.mxu1 %vm5658_vm1, %v1459_v33  ;;  %vm5659_vm2 = vmmov %vm5658_vm1  ;;  %v1538_v29 = vpack.c.bf16 %v1534_v41, %v1534_v41  ;;  %vm5660_vm5 = vcmp.lt.s32.totalorder %v3981_v52, 16  ;;  %vm5440_vm9 = vcmp.lt.s32.totalorder %v3981_v52, 2  ;;  %vm5663_vm4 = vcmp.lt.s32.totalorder %v3981_v52, 113 }
 0x1aa   : > { %3318 = vmatprep.subr.msk.bf16.mxu0 %vm5659_vm2, %v1539_v21  ;;  %v1738_v58 = vsel %vm5660_vm5, %v3499_v25, %v3500_v20  ;;  %vm5661_vm15 = vmmov %vm5660_vm5  ;;  %v2365_v35 = vsel %vm5663_vm4, %v5435_v23, %v5434_v4  ;;  %vm5664_vm7 = vnez %v5489_v0  ;;  %vm5665_vm14 = vnez %v5522_v12 }
 0x1ab   : > { %v4670_v40 = vsel %vm5661_vm15, %v3500_v20, %v3499_v25  ;;  %vm5662_vm10 = vmmov %vm5657_vm0  ;;  %v1677_v33 = vsel %vm5664_vm7, %v1674_v28, 0.0  ;;  %v5439_v21 = vunpack.i.h.bf16 %v4690_v8  ;;  %v5438_v4 = vunpack.i.l.bf16 %v4690_v8  ;;  %v1227_v28 = vld [vmem:[%s5374_s7] sm:$0xf] }
 0x1ac   : > { %v1675_v62 = vsel %vm5662_vm10, %v3495_v6, %v3494_v49  ;;  %v4688_v6 = vsel %vm5665_vm14, %v2365_v35, 0.0  ;;  %v3543_v49 = vpop.permute.xlu0 %3542  ;;  %v3311_v35 = vld [vmem:[%s5374_s7 + $0x8] sm:$0xf]  ;;  %vm5667_vm0 = vcmp.lt.s32.totalorder %v3981_v52, 15  ;;  %v1464_v57 = vsel %vm5658_vm1, %v1458_v36, 0  ;;  %vm5668_vm2 = vmmov %vm5658_vm1 }
 0x1ad   : > { %5666 = vst [vmem:[#allocation9_spill] sm:$0xff] %v4688_v6  ;;  %v3545_v41 = vunpack.i.h.bf16 %v3543_v49  ;;  %v3544_v48 = vunpack.i.l.bf16 %v3543_v49  ;;  %v1802_v23 = vsel %vm5667_vm0, %v3504_v63, %v3505_v56  ;;  %v1544_v25 = vsel %vm5668_vm2, %v1538_v29, 0  ;;  %vm5669_vm5 = vmmov %vm5662_vm10 }
 0x1ae   : > { %v1617_v49 = vpack.c.bf16 %v1613_v11, %v1613_v11  ;;  %vm5670_vm15 = vmmov %vm5669_vm5  ;;  %vm5671_vm10 = vcmp.lt.s32.totalorder %v3981_v52, 112  ;;  %v1681_v6 = vpack.c.bf16 %v1677_v33, %v1677_v33  ;;  %v5672_v36 = vrot.slane %v4499_v55, %v3939_v43 }
 0x1af   : > { %v3041_v20 = vsel %vm5669_vm5, %v3544_v48, %v3545_v41  ;;  %v3042_v7 = vsel %vm5670_vm15, %v3545_v41, %v3544_v48  ;;  %v2429_v13 = vsel %vm5671_vm10, %v5439_v21, %v5438_v4  ;;  %v5675_v11 = vunpack.i.l.bf16 %v4567_v50  ;;  %v3568_v4 = vpop.permute.xlu1 %3567 }
 0x1b0   : > { %vm4718_vm4 = vcmp.eq.s32.totalorder %v5672_v36, 1  ;;  %v5676_v19 = vunpack.i.h.bf16 %v4567_v50  ;;  %vm5677_vm0 = vcmp.lt.s32.totalorder %v3981_v52, 1  ;;  %vm5678_vm1 = vnez %v5494_v10  ;;  %v4740_v50 = vpop.permute.xlu0 %3552 }
 0x1b1   : > { %v3043_v48 = vsel %vm5678_vm1, %v3042_v7, %v3784_v26  ;;  %v3044_v33 = vsel %vm5664_vm7, %v3041_v20, %v3794_v27  ;;  %vm5679_vm2 = vnez %v5517_v1  ;;  %vm5680_vm5 = vcmask 31744   ;;  %v3320_v7 = vld [vmem:[%s5374_s7 + $0x14] sm:$0xf] }
 0x1b2   : > { %v2023_v41 = vsel %vm5677_vm0, %v5676_v19, %v5675_v11  ;;  %v4736_v36 = vsel %vm5679_vm2, %v2429_v13, 0.0  ;;  %3310 = vmatmul.mubr.msk.bf16.vlgmr.msra.gmra.mrb[20].mxu1 %vm5680_vm5, %v1227_v28  ;;  %vm5681_vm15 = vmmov %vm5680_vm5  ;;  %v5682_v19 = vrot.slane %v4510_v47, %v3939_v43  ;;  %v3047_v0 = vcombine.low %v3043_v48, %v3044_v33 }
 0x1b3   : > { %3313 = vmatmul.mubr.msk.bf16.vlgmr.msra.gmra.mrb[24].mxu0 %vm5681_vm15, %v3311_v35  ;;  %1470 = vmatpush1.bf16.msra.mxu1 %v1464_v57  ;;  %v3570_v20 = vunpack.i.h.bf16 %v3568_v4  ;;  %v1612_v13 = vsel %vm4629_vm8, %v4625_v38, 0.0  ;;  %v1676_v28 = vsel %vm5678_vm1, %v1675_v62, 0.0  ;;  %vm5685_vm7 = vnez %v5498_v16 }
 0x1b4   : > { %vm4745_vm10 = vcmp.eq.s32.totalorder %v5682_v19, 1  ;;  %1550 = vmatpush1.bf16.msra.mxu0 %v1544_v25  ;;  %v1741_v35 = vsel %vm5685_vm7, %v1738_v58, 0.0  ;;  %v3515_v11 = vunpack.i.h.bf16 %v4569_v3  ;;  %v3514_v19 = vunpack.i.l.bf16 %v4569_v3  ;;  %1501 = vmatprep.mubr.bf16.mxu1 %v5603_v34 }
 0x1b5   : > { %v3569_v21 = vunpack.i.l.bf16 %v3568_v4  ;;  %vm5686_vm0 = vcmask 1041408   ;;  %v5688_v57 = vunpack.i.h.bf16 %v4514_v18  ;;  %v5689_v5 = vunpack.i.l.bf16 %v4514_v18  ;;  %1581 = vmatprep.mubr.bf16.mxu0 %v5603_v34 }
 0x1b6   : > { %3321 = vmatprep.subr.msk.bf16.mxu1 %vm5686_vm0, %v1617_v49  ;;  %vm5687_vm5 = vmmov %vm5686_vm0  ;;  %vm5690_vm8 = vcmp.lt.s32.totalorder %v3981_v52, 15  ;;  %vm5691_vm1 = vnez %v5492_v9  ;;  %vm5692_vm15 = vnez %v5509_v46  ;;  %vm5693_vm0 = vcmp.lt.s32.totalorder %v3981_v52, 1  ;;  %v4780_v49 = vpop.permute.xlu1 %3587 }
 0x1b7   : > { %3324 = vmatprep.subr.msk.bf16.mxu0 %vm5687_vm5, %v1681_v6  ;;  %v1869_v10 = vsel %vm5441_vm3, %v5689_v5, %v5688_v57  ;;  %v1803_v38 = vsel %vm5690_vm8, %v3505_v56, %v3504_v63  ;;  %v1805_v58 = vsel %vm5691_vm1, %v1802_v23, 0.0  ;;  %v4774_v4 = vsel %vm5692_vm15, %v2023_v41, 0.0  ;;  %vm5694_vm5 = vmmov %vm5693_vm0  ;;  %v3558_v6 = vpop.permute.xlu0 %3557  ;;  %v3314_v57 = vld [vmem:[%s5374_s7 + $0xc] sm:$0xf] }
 0x1b8   : > { %v3080_v62 = vsel %vm5693_vm0, %v3569_v21, %v3570_v20  ;;  %v3081_v25 = vsel %vm5694_vm5, %v3570_v20, %v3569_v21  ;;  %v1616_v56 = vpack.c.bf16 %v1612_v13, %v1612_v13  ;;  %v1680_v63 = vpack.c.bf16 %v1676_v28, %v1676_v28  ;;  %v3317_v13 = vld [vmem:[%s5374_s7 + $0x10] sm:$0xf] }
 0x1b9   : > { %v3082_v23 = vsel %vm5692_vm15, %v3081_v25, %v3784_v26  ;;  %v3083_v41 = vsel %vm4061_vm13, %v3080_v62, %v3794_v27  ;;  %v3560_v48 = vunpack.i.h.bf16 %v3558_v6  ;;  %v3559_v33 = vunpack.i.l.bf16 %v3558_v6 }
 0x1ba   : > { %v5695_v21 = vrot.slane %v4499_v55, %v3946_v44  ;;  %v1947_v14 = vsel %vm5440_vm9, %v3514_v19, %v3515_v11  ;;  %v4804_v46 = vcombine.low %v3082_v23, %v3083_v41  ;;  %v1745_v28 = vpack.c.bf16 %v1741_v35, %v1741_v35  ;;  %v4837_v39 = vpop.permute.xlu1 %3592 }
 0x1bb   : > { %v1809_v5 = vpack.c.bf16 %v1805_v58, %v1805_v58  ;;  %v5698_v55 = vunpack.i.h.bf16 %v4608_v54  ;;  %v5699_v62 = vunpack.i.l.bf16 %v4608_v54  ;;  %vm5700_vm13 = vcmp.lt.s32.totalorder %v3981_v52, 127 }
 0x1bc   : > { %vm4794_vm8 = vcmp.eq.s32.totalorder %v5695_v21, 1  ;;  %v3049_v6 = vmax.f32 %v3784_v26, %v3047_v0  ;;  %vm5701_vm15 = vcmp.lt.s32.totalorder %v3981_v52, 16  ;;  %vm5703_vm5 = vcmp.ge.s32.totalorder %v3811_v30, 4294967294 }
 0x1bd   : > { %v2144_v25 = vsel %vm5700_vm13, %v5699_v62, %v5698_v55  ;;  %v3054_v21 = vsel %vm5701_vm15, %v3559_v33, %v3560_v48  ;;  %vm5702_vm0 = vmmov %vm5701_vm15  ;;  %vm5706_vm3 = vnez %v5503_v24  ;;  %vm5707_vm13 = vcmask 31744  }
 0x1be   : > { %v3055_v23 = vsel %vm5702_vm0, %v3560_v48, %v3559_v33  ;;  %vm4824_vm9 = vmand %vm5596_vm11, %vm5703_vm5  ;;  %v3057_v0 = vsel %vm5685_vm7, %v3054_v21, %v3794_v27  ;;  %3316 = vmatmul.mubr.msk.bf16.vlgmr.msra.gmra.mrb[24].mxu1 %vm5707_vm13, %v3314_v57  ;;  %vm5708_vm15 = vcmask 1041408   ;;  %v3563_v48 = vpop.permute.xlu0 %3562  ;;  %v1740_v16 = vsel %vm5706_vm3, %v4670_v40, 0.0 }
 0x1bf   : > { %v3056_v54 = vsel %vm5706_vm3, %v3055_v23, %v3784_v26  ;;  %v1622_v58 = vsel %vm5708_vm15, %v1616_v56, 0  ;;  %vm5709_vm0 = vmmov %vm5708_vm15  ;;  %v3565_v55 = vunpack.i.h.bf16 %v3563_v48  ;;  %v3564_v62 = vunpack.i.l.bf16 %v3563_v48  ;;  %1659 = vmatprep.mubr.bf16.mxu1 %v5603_v34  ;;  %v4882_v23 = vpop.permute.xlu1 %3597  ;;  %v3329_v48 = vld [vmem:[%s5374_s7 + $0x20] sm:$0xf] }
 0x1c0   : > { %v1686_v41 = vsel %vm5709_vm0, %v1680_v63, 0  ;;  %v3060_v33 = vcombine.low %v3056_v54, %v3057_v0  ;;  %vm5710_vm11 = vmmov %vm5707_vm13  ;;  %1628 = vmatpush1.bf16.msra.mxu1 %v1622_v58  ;;  %v5711_v21 = vunpack.i.l.bf16 %v4514_v18  ;;  %v5712_v57 = vunpack.i.h.bf16 %v4514_v18  ;;  %v3323_v58 = vld [vmem:[%s5374_s7 + $0x18] sm:$0xf] }
 0x1c1   : > { %3319 = vmatmul.mubr.msk.bf16.vlgmr.msra.gmra.mrb[28].mxu0 %vm5710_vm11, %v3317_v13  ;;  %vm5713_vm7 = vcmp.lt.s32.totalorder %v3981_v52, 14  ;;  %vm5714_vm5 = vmmov %vm5709_vm0  ;;  %vm5715_vm13 = vnez %v5507_v45  ;;  %v1953_v13 = vrot.slane %v4510_v47, %v3946_v44  ;;  %vm5716_vm15 = vnez %v5515_v53 }
 0x1c2   : > { %v1870_v56 = vsel %vm5713_vm7, %v5712_v57, %v5711_v21  ;;  %1692 = vmatpush1.bf16.msra.mxu0 %v1686_v41  ;;  %3327 = vmatprep.subr.msk.bf16.mxu1 %vm5714_vm5, %v1745_v28  ;;  %v1804_v63 = vsel %vm5715_vm13, %v1803_v38, 0.0  ;;  %v4856_v24 = vsel %vm5716_vm15, %v2144_v25, 0.0  ;;  %v1883_v40 = vsel %vm4718_vm4, %v1869_v10, 0.0 }
 0x1c3   : > { %vm5717_vm3 = vcmp.lt.s32.totalorder %v3811_v30, 14  ;;  %v3062_v28 = vmax.f32 %v3049_v6, %v3060_v33  ;;  %vm5720_vm11 = vcmp.lt.s32.totalorder %v3981_v52, 15  ;;  %3330 = vmatprep.subr.msk.bf16.mxu0 %vm5714_vm5, %v1809_v5  ;;  %v1961_v29 = vsel %vm4745_vm10, %v1947_v14, 0.0  ;;  %v3573_v6 = vpop.permute.xlu0 %3572  ;;  %1723 = vmatprep.mubr.bf16.mxu0 %v5603_v34  ;;  %v4918_v57 = vpop.permute.xlu1 %3602 }
 0x1c4   : > { %vm4864_vm0 = vmand %vm4824_vm9, %vm5717_vm3  ;;  %v3067_v38 = vsel %vm5720_vm11, %v3564_v62, %v3565_v55  ;;  %v1744_v35 = vpack.c.bf16 %v1740_v16, %v1740_v16  ;;  %v3575_v54 = vunpack.i.h.bf16 %v3573_v6  ;;  %v3574_v0 = vunpack.i.l.bf16 %v3573_v6 }
 0x1c5   : > { %vm5721_vm7 = vmmov %vm5720_vm11  ;;  %v3070_v25 = vsel %vm5691_vm1, %v3067_v38, %v3794_v27  ;;  %v1808_v14 = vpack.c.bf16 %v1804_v63, %v1804_v63  ;;  %vm5722_vm9 = vcmp.lt.s32.totalorder %v3981_v52, 2  ;;  %v4897_v45 = vsel %vm4864_vm0, 1, %v5603_v34 }
 0x1c6   : > { %v3068_v47 = vsel %vm5721_vm7, %v3565_v55, %v3564_v62  ;;  %v1948_v9 = vsel %vm5722_vm9, %v3515_v11, %v3514_v19  ;;  %v1887_v41 = vpack.c.bf16 %v1883_v40, %v1883_v40  ;;  %vm4902_vm4 = vcmp.eq.s32.totalorder %v1953_v13, 1  ;;  %vm5728_vm3 = vmmov %vm5714_vm5 }
 0x1c7   : > { %v3069_v10 = vsel %vm5715_vm13, %v3068_v47, %v3784_v26  ;;  %vm5725_vm10 = vcmp.lt.s32.totalorder %v3981_v52, 127  ;;  %v1965_v19 = vpack.c.bf16 %v1961_v29, %v1961_v29  ;;  %vm5727_vm13 = vcmask 31744   ;;  %v3578_v21 = vpop.permute.xlu0 %3577  ;;  %vm5732_vm11 = vmmov %vm5728_vm3 }
 0x1c8   : > { %v3073_v5 = vcombine.low %v3069_v10, %v3070_v25  ;;  %v3093_v3 = vsel %vm5725_vm10, %v3574_v0, %v3575_v54  ;;  %vm5726_vm1 = vmmov %vm5725_vm10  ;;  %3322 = vmatmul.mubr.msk.bf16.vlgmr.msra.gmra.mrb[28].mxu1 %vm5727_vm13, %v3320_v7  ;;  %v1750_v16 = vsel %vm5728_vm3, %v1744_v35, 0  ;;  %v1882_v63 = vsel %vm4794_vm8, %v1870_v56, 0.0 }
 0x1c9   : > { %v3094_v11 = vsel %vm5726_vm1, %v3575_v54, %v3574_v0  ;;  %v3095_v55 = vsel %vm5716_vm15, %v3093_v3, %v3784_v26  ;;  %vm5729_vm0 = vmmov %vm5727_vm13  ;;  %1756 = vmatpush1.bf16.msra.mxu1 %v1750_v16  ;;  %v3580_v42 = vunpack.i.h.bf16 %v3578_v21  ;;  %v3579_v18 = vunpack.i.l.bf16 %v3578_v21  ;;  %1787 = vmatprep.mubr.bf16.mxu1 %v5603_v34  ;;  %v4958_v54 = vpop.permute.xlu1 %3607  ;;  %v3326_v0 = vld [vmem:[%s5374_s7 + $0x1c] sm:$0xf] }
 0x1ca   : > { %v3075_v33 = vmax.f32 %v3062_v28, %v3073_v5  ;;  %v3096_v62 = vsel %vm5536_vm12, %v3094_v11, %v3794_v27  ;;  %3325 = vmatmul.mubr.msk.bf16.vlgmr.msra.gmra.mrb[32].mxu0 %vm5729_vm0, %v3323_v58  ;;  %vm5730_vm15 = vmmov %vm5728_vm3  ;;  %v1960_v28 = vsel %vm4902_vm4, %v1948_v9, 0.0  ;;  %v1886_v20 = vpack.c.bf16 %v1882_v63, %v1882_v63 }
 0x1cb   : > { %v3099_v40 = vcombine.low %v3095_v55, %v3096_v62  ;;  %v1814_v53 = vsel %vm5730_vm15, %v1808_v14, 0  ;;  %vm5731_vm12 = vmmov %vm5728_vm3  ;;  %v2221_v56 = vrot.slane %v4897_v45, %v3939_v43  ;;  %v5733_v47 = vunpack.i.h.bf16 %v4652_v2  ;;  %v3583_v35 = vpop.permute.xlu0 %3582  ;;  %1851 = vmatprep.mubr.bf16.mxu0 %v5603_v34 }
 0x1cc   : > { %v3088_v13 = vmax.f32 %v3075_v33, %v4804_v46  ;;  %1820 = vmatpush1.bf16.msra.mxu0 %v1814_v53  ;;  %3333 = vmatprep.subr.msk.bf16.mxu1 %vm5731_vm12, %v1887_v41  ;;  %v2087_v46 = vrot.slane %v4212_v17, 2  ;;  %v5734_v29 = vunpack.i.l.bf16 %v4652_v2  ;;  %vm5735_vm8 = vcmp.lt.s32.totalorder %v3981_v52, 113  ;;  %vm5749_vm15 = vmmov %vm5732_vm11 }
 0x1cd   : > { %3336 = vmatprep.subr.msk.bf16.mxu0 %vm5732_vm11, %v1965_v19  ;;  %vm5736_vm7 = vcmp.ge.s32.totalorder %v3811_v30, 2  ;;  %vm5737_vm5 = vnez %v5445_v31  ;;  %vm5740_vm4 = vmmov %vm5735_vm8  ;;  %vm5742_vm1 = vnez %v5555_v60  ;;  %v3585_v5 = vunpack.i.h.bf16 %v3583_v35 }
 0x1ce   : > { %v3101_v38 = vmax.f32 %v3088_v13, %v3099_v40  ;;  %v2364_v10 = vsel %vm5735_vm8, %v5734_v29, %v5733_v47  ;;  %vm4943_vm9 = vmand %vm5737_vm5, %vm5736_vm7  ;;  %v3106_v17 = vsel %vm5740_vm4, %v3579_v18, %v3580_v42  ;;  %v1964_v7 = vpack.c.bf16 %v1960_v28, %v1960_v28  ;;  %v3613_v40 = vpop.permute.xlu1 %3612 }
 0x1cf   : > { %vm5741_vm10 = vmmov %vm5740_vm4  ;;  %v3108_v2 = vsel %vm5742_vm1, %v3106_v17, %v3784_v26  ;;  %v3530_v14 = vunpack.i.h.bf16 %v4606_v15  ;;  %v3529_v9 = vunpack.i.l.bf16 %v4606_v15  ;;  %v3584_v41 = vunpack.i.l.bf16 %v3583_v35 }
 0x1d0   : > { %v3107_v6 = vsel %vm5741_vm10, %v3580_v42, %v3579_v18  ;;  %vm5743_vm13 = vcmp.lt.s32.totalorder %v3811_v30, 18  ;;  %v5746_v33 = vunpack.i.h.bf16 %v4690_v8  ;;  %v5747_v15 = vunpack.i.l.bf16 %v4690_v8  ;;  %vm5757_vm4 = vmmov %vm5749_vm15 }
 0x1d1   : > { %v3109_v31 = vsel %vm5665_vm14, %v3107_v6, %v3794_v27  ;;  %vm2210_vm14 = vcmp.lt.s32.totalorder %v3981_v52, 126  ;;  %vm4973_vm3 = vmand %vm4943_vm9, %vm5743_vm13  ;;  %vm5748_vm0 = vcmp.lt.s32.totalorder %v3981_v52, 112  ;;  %v1892_v11 = vsel %vm5749_vm15, %v1886_v20, 0 }
 0x1d2   : > { %v3112_v58 = vcombine.low %v3108_v2, %v3109_v31  ;;  %v2428_v3 = vsel %vm5748_vm0, %v5747_v15, %v5746_v33  ;;  %v4986_v19 = vsel %vm5742_vm1, %v2364_v10, 0.0  ;;  %vm5750_vm12 = vmmov %vm5748_vm0  ;;  %vm5752_vm8 = vcmask 31744   ;;  %v5765_v2 = vld [vmem:[#allocation8_spill] sm:$0xff]  ;;  %v398_v21 = vpop.permute.xlu1 %397 }
 0x1d3   : > { %v3119_v62 = vsel %vm5750_vm12, %v3584_v41, %v3585_v5  ;;  %vm5751_vm11 = vmmov %vm5748_vm0  ;;  %3328 = vmatmul.mubr.msk.bf16.vlgmr.msra.gmra.mrb[32].mxu1 %vm5752_vm8, %v3326_v0  ;;  %v2029_v8 = vpack.c.bf16 %v4604_v22, %v4604_v22  ;;  %vm4995_vm7 = vcmp.eq.s32.totalorder %v2221_v56, 1  ;;  %vm5755_vm5 = vnez %v5557_v61  ;;  %v3341_v15 = vld [vmem:[%s5374_s7 + $0x30] sm:$0xf] }
 0x1d4   : > { %v3114_v55 = vmax.f32 %v3101_v38, %v3112_v58  ;;  %v3120_v16 = vsel %vm5751_vm11, %v3585_v5, %v3584_v41  ;;  %v3121_v60 = vsel %vm5755_vm5, %v3119_v62, %v3784_v26  ;;  %vm5756_vm9 = vmmov %vm5752_vm8  ;;  %1898 = vmatpush1.bf16.msra.mxu1 %v1892_v11  ;;  %v1970_v13 = vsel %vm5757_vm4, %v1964_v7, 0  ;;  %1929 = vmatprep.mubr.bf16.mxu1 %v5603_v34 }
 0x1d5   : > { %v3122_v63 = vsel %vm5679_vm2, %v3120_v16, %v3794_v27  ;;  %3331 = vmatmul.mubr.msk.bf16.vlgmr.msra.gmra.mrb[36].mxu0 %vm5756_vm9, %v3329_v48  ;;  %v2212_v22 = vsel %vm2210_vm14, %v3530_v14, %v3529_v9  ;;  %v2291_v53 = vsel %vm4973_vm3, 1, %v5603_v34  ;;  %vm5758_vm10 = vmmov %vm5757_vm4  ;;  %v3615_v18 = vunpack.i.h.bf16 %v3613_v40  ;;  %v3338_v48 = vld [vmem:[%s5374_s7 + $0x2c] sm:$0xf]  ;;  %v5772_v16 = vld [vmem:[#allocation9_spill] sm:$0xff] }
 0x1d6   : > { %v3125_v42 = vcombine.low %v3121_v60, %v3122_v63  ;;  %1976 = vmatpush1.bf16.msra.mxu0 %v1970_v13  ;;  %3339 = vmatprep.subr.msk.bf16.mxu1 %vm5758_vm10, %v2029_v8  ;;  %vm5759_vm1 = vmmov %vm5757_vm4  ;;  %v3614_v1 = vunpack.i.l.bf16 %v3613_v40  ;;  %v2217_v28 = vrot.slane %v4897_v45, %v3946_v44  ;;  %v5019_v38 = vsel %vm5755_vm5, %v2428_v3, 0.0  ;;  %v3332_v45 = vld [vmem:[%s5374_s7 + $0x24] sm:$0xf]  ;;  %v5775_v13 = vld [vmem:[#allocation3_spill] sm:$0xff] }
 0x1d7   : > { %3342 = vmatprep.subr.msk.bf16.mxu0 %vm5759_vm1, %v2087_v46  ;;  %2007 = vmatprep.mubr.bf16.mxu0 %v5603_v34  ;;  %v2028_v56 = vpack.c.bf16 %v4774_v4, %v4774_v4  ;;  %v2086_v47 = vrot.slane %v4243_v51, 2  ;;  %v2225_v46 = vsel %vm4995_vm7, %v2212_v22, 0.0  ;;  %v2299_v29 = vrot.slane %v2291_v53, %v3939_v43  ;;  %v3335_v51 = vld [vmem:[%s5374_s7 + $0x28] sm:$0xf]  ;;  %vm5763_vm12 = vmmov %vm5752_vm8 }
 0x1d8   : > { %v3127_v20 = vmax.f32 %v3114_v55, %v3125_v42  ;;  %vm5760_vm2 = vcmp.lt.s32.totalorder %v3981_v52, 111  ;;  %v3535_v25 = vunpack.i.h.bf16 %v4654_v32  ;;  %v3534_v4 = vunpack.i.l.bf16 %v4654_v32  ;;  %vm5764_vm11 = vmmov %vm5759_vm1 }
 0x1d9   : > { %v3132_v61 = vsel %vm5760_vm2, %v3614_v1, %v3615_v18  ;;  %vm5761_vm13 = vmmov %vm5760_vm2  ;;  %vm5762_vm3 = vnez %v5543_v37  ;;  %v2211_v35 = vsel %vm2210_vm14, %v3529_v9, %v3530_v14  ;;  %vm2288_vm0 = vcmp.lt.s32.totalorder %v3981_v52, 114  ;;  %v3023_v37 = vld [vmem:[%s5375_s8] sm:$0xff] }
 0x1da   : > { %v3133_v10 = vsel %vm5761_vm13, %v3615_v18, %v3614_v1  ;;  %v3134_v17 = vsel %vm4398_vm6, %v3132_v61, %v3784_v26  ;;  %vm2222_vm15 = vcmp.eq.s32.totalorder %v2217_v28, 1  ;;  %v2034_v32 = vsel %vm5764_vm11, %v2028_v56, 0  ;;  %vm5766_vm7 = vmmov %vm5759_vm1  ;;  %v5780_v18 = vld [vmem:[#allocation5_spill] sm:$0xff]  ;;  %v5785_v28 = vld [vmem:[#allocation6_spill] sm:$0xff]  ;;  %3026 = vperm.xlu1 %3621, %v3023_v37  }
 0x1db   : > { %v3135_v6 = vsel %vm5762_vm3, %v3133_v10, %v3794_v27  ;;  %3334 = vmatmul.mubr.msk.bf16.vlgmr.msra.gmra.mrb[36].mxu1 %vm5763_vm12, %v3332_v45  ;;  %v2151_v31 = vpack.c.bf16 %v5765_v2, %v5765_v2  ;;  %v2092_v26 = vsel %vm5766_vm7, %v2086_v47, 0  ;;  %v2229_v27 = vpack.c.bf16 %v2225_v46, %v2225_v46  ;;  %vm5767_vm14 = vmmov %vm5759_vm1  ;;  %v3344_v45 = vld [vmem:[%s5374_s7 + $0x34] sm:$0xf]  ;;  %v5816_v1 = vld [vmem:[#allocation7_spill] sm:$0xff] }
 0x1dc   : > { %v3138_v5 = vcombine.low %v3134_v17, %v3135_v6  ;;  %2040 = vmatpush1.bf16.msra.mxu1 %v2034_v32  ;;  %vm2301_vm5 = vcmp.eq.s32.totalorder %v2299_v29, 1  ;;  %v2290_v0 = vsel %vm2288_vm0, %v3535_v25, %v3534_v4  ;;  %v2224_v7 = vsel %vm2222_vm15, %v2211_v35, 0.0  ;;  %vm5768_vm9 = vmmov %vm5759_vm1  ;;  %2071 = vmatprep.mubr.bf16.mxu1 %v5603_v34 }
 0x1dd   : > { %3337 = vmatmul.mubr.msk.bf16.vlgmr.msra.gmra.mrb[40].mxu0 %vm5752_vm8, %v3335_v51  ;;  %3345 = vmatprep.subr.msk.bf16.mxu1 %vm5767_vm14, %v2151_v31  ;;  %v2295_v14 = vrot.slane %v2291_v53, %v3946_v44  ;;  %v2150_v9 = vpack.c.bf16 %v4856_v24, %v4856_v24  ;;  %v2303_v41 = vsel %vm2301_vm5, %v2290_v0, 0.0  ;;  %v2228_v12 = vpack.c.bf16 %v2224_v7, %v2224_v7  ;;  %vm5769_vm10 = vmmov %vm5752_vm8  ;;  %v5777_v53 = vld [vmem:[#allocation4_spill] sm:$0xff] }
 0x1de   : > { %2098 = vmatpush1.bf16.msra.mxu0 %v2092_v26  ;;  %2129 = vmatprep.mubr.bf16.mxu0 %v5603_v34  ;;  %v5064_v58 = vmax.f32 %v3127_v20, %v3138_v5  ;;  %v2289_v33 = vsel %vm2288_vm0, %v3534_v4, %v3535_v25  ;;  %v3555_v3 = vunpack.i.h.bf16 %v4740_v50  ;;  %v3554_v24 = vunpack.i.l.bf16 %v4740_v50  ;;  %vm5770_vm2 = vmmov %vm5752_vm8  ;;  %v5774_v50 = vld [vmem:[#allocation2_spill] sm:$0xff] }
 0x1df   : > { %3348 = vmatprep.subr.msk.bf16.mxu0 %vm5768_vm9, %v2229_v27  ;;  %vm2300_vm4 = vcmp.eq.s32.totalorder %v2295_v14, 1  ;;  %v2156_v11 = vsel %vm5759_vm1, %v2150_v9, 0  ;;  %v2307_v55 = vpack.c.bf16 %v2303_v41, %v2303_v41  ;;  %vm5771_vm13 = vmmov %vm5759_vm1  ;;  %v2371_v8 = vpack.c.bf16 %v5772_v16, %v5772_v16  ;;  %v3353_v16 = vld [vmem:[%s5374_s7 + $0x40] sm:$0xf] }
 0x1e0   : > { %v2234_v62 = vsel %vm5771_vm13, %v2228_v12, 0  ;;  %v2302_v60 = vsel %vm2300_vm4, %v2289_v33, 0.0  ;;  %vm5773_vm0 = vmmov %vm5759_vm1  ;;  %v465_v63 = vadd.f32 %v5774_v50, %v398_v21  ;;  %v467_v40 = vadd.f32 %v5775_v13, %v398_v21 }
 0x1e1   : > { %vm5776_vm15 = vcmp.lt.s32.totalorder %v3981_v52, 111  ;;  %vm5778_vm12 = vnez %v5777_v53  ;;  %vm5779_vm11 = vcmp.ge.s32.totalorder %v3811_v30, 1  ;;  %vm5781_vm8 = vnez %v5780_v18  ;;  %vm5784_vm5 = vmmov %vm5773_vm0 }
 0x1e2   : > { %v2493_v22 = vsel %vm5776_vm15, %v3555_v3, %v3554_v24  ;;  %v2561_v42 = vsel %vm5778_vm12, 1, %v5603_v34  ;;  %vm5100_vm7 = vmand %vm5781_vm8, %vm5779_vm11  ;;  %vm5786_vm14 = vnez %v5785_v28  ;;  %vm5787_vm9 = vcmp.ge.s32.totalorder %v3811_v30, 0 }
 0x1e3   : > { %3340 = vmatmul.mubr.msk.bf16.vlgmr.msra.gmra.mrb[40].mxu1 %vm5769_vm10, %v3338_v48  ;;  %v5109_v20 = vsel %vm5786_vm14, 1, %v5603_v34  ;;  %vm5115_vm4 = vmand %vm5781_vm8, %vm5787_vm9  ;;  %v473_v47 = vmax.f32 %v465_v63, 0.0  ;;  %v474_v46 = vmax.f32 %v467_v40, 0.0  ;;  %v2306_v29 = vpack.c.bf16 %v2302_v60, %v2302_v60 }
 0x1e4   : > { %2162 = vmatpush1.bf16.msra.mxu1 %v2156_v11  ;;  %2193 = vmatprep.mubr.bf16.mxu1 %v5603_v34  ;;  %vm2558_vm10 = vcmp.lt.s32.totalorder %v3981_v52, 110  ;;  %v2370_v61 = vpack.c.bf16 %v4986_v19, %v4986_v19  ;;  %v2495_v10 = vsel %vm5762_vm3, %v2493_v22, 0.0  ;;  %v2569_v25 = vrot.slane %v2561_v42, %v3939_v43  ;;  %v3347_v19 = vld [vmem:[%s5374_s7 + $0x38] sm:$0xf]  ;;  %vm5791_vm3 = vmmov %vm5776_vm15 }
 0x1e5   : > { %3343 = vmatmul.mubr.msk.bf16.vlgmr.msra.gmra.mrb[44].mxu0 %vm5770_vm2, %v3341_v15  ;;  %3351 = vmatprep.subr.msk.bf16.mxu1 %vm5773_vm0, %v2307_v55  ;;  %v3590_v4 = vunpack.i.h.bf16 %v4780_v49  ;;  %v3589_v51 = vunpack.i.l.bf16 %v4780_v49  ;;  %vm5790_vm1 = vcmp.lt.s32.totalorder %v3811_v30, 17  ;;  %3205 = vst [vmem:[%s5089_s24] sm:$0xff] %v473_v47  ;;  %3206 = vst [vmem:[%s5089_s24 + $0x8] sm:$0xff] %v474_v46  ;;  %v2492_v17 = vsel %vm5791_vm3, %v3554_v24, %v3555_v3  ;;  %v3350_v3 = vld [vmem:[%s5374_s7 + $0x3c] sm:$0xf] }
 0x1e6   : > { %2240 = vmatpush1.bf16.msra.mxu0 %v2234_v62  ;;  %2271 = vmatprep.mubr.bf16.mxu0 %v5603_v34  ;;  %vm2712_vm2 = vmand %vm5100_vm7, %vm5790_vm1  ;;  %v2650_v49 = vrot.slane %v5109_v20, %v3939_v43  ;;  %v3595_v6 = vunpack.i.h.bf16 %v4837_v39  ;;  %v3594_v35 = vunpack.i.l.bf16 %v4837_v39  ;;  %vm5792_vm13 = vcmp.lt.s32.totalorder %v3811_v30, 16 }
 0x1e7   : > { %3354 = vmatprep.subr.msk.bf16.mxu0 %vm5784_vm5, %v2371_v8  ;;  %vm2790_vm0 = vmand %vm5115_vm4, %vm5792_vm13  ;;  %vm2639_vm15 = vcmp.lt.s32.totalorder %v3981_v52, 98  ;;  %vm5793_vm12 = vcmask 31744   ;;  %v2435_v2 = vpack.c.bf16 %v4736_v36, %v4736_v36  ;;  %v5159_v31 = vsel %vm2712_vm2, 1, %v5603_v34 }
 0x1e8   : > { %vm5794_vm11 = vmmov %vm5784_vm5  ;;  %v2376_v39 = vsel %vm5784_vm5, %v2370_v61, 0  ;;  %v2499_v5 = vpack.c.bf16 %v2495_v10, %v2495_v10  ;;  %v2565_v26 = vrot.slane %v2561_v42, %v3946_v44  ;;  %vm5164_vm14 = vcmp.eq.s32.totalorder %v2569_v25, 1 }
 0x1e9   : > { %v2312_v32 = vsel %vm5794_vm11, %v2306_v29, 0  ;;  %vm5795_vm7 = vmmov %vm5793_vm12  ;;  %v2560_v0 = vsel %vm2558_vm10, %v3590_v4, %v3589_v51  ;;  %v5171_v36 = vsel %vm2790_vm0, 1, %v5603_v34  ;;  %vm5798_vm9 = vcmp.ge.s32.totalorder %v3811_v30, 4294967295 }
 0x1ea   : > { %vm5177_vm4 = vmand %vm5781_vm8, %vm5798_vm9  ;;  %v2494_v14 = vsel %vm4398_vm6, %v2492_v17, 0.0  ;;  %vm5184_vm2 = vcmp.eq.s32.totalorder %v2650_v49, 1  ;;  %v2641_v41 = vsel %vm2639_vm15, %v3595_v6, %v3594_v35  ;;  %v2646_v48 = vrot.slane %v5109_v20, %v3946_v44 }
 0x1eb   : > { %3346 = vmatmul.mubr.msk.bf16.vlgmr.msra.gmra.mrb[44].mxu1 %vm5793_vm12, %v3344_v45  ;;  %vm5801_vm1 = vmmov %vm5784_vm5  ;;  %vm2717_vm8 = vcmp.lt.s32.totalorder %v3981_v52, 97  ;;  %v2728_v59 = vrot.slane %v5159_v31, %v3939_v43  ;;  %v2434_v12 = vpack.c.bf16 %v5019_v38, %v5019_v38  ;;  %v2573_v33 = vsel %vm5164_vm14, %v2560_v0, 0.0  ;;  %v3618_v45 = vpop.permute.xlu0 %3617 }
 0x1ec   : > { %2318 = vmatpush1.bf16.msra.mxu1 %v2312_v32  ;;  %vm5804_vm3 = vmmov %vm5801_vm1  ;;  %2349 = vmatprep.mubr.bf16.mxu1 %v5603_v34  ;;  %v2806_v15 = vrot.slane %v5171_v36, %v3939_v43  ;;  %vm5805_vm6 = vcmp.lt.s32.totalorder %v3811_v30, 15  ;;  %v2498_v24 = vpack.c.bf16 %v2494_v14, %v2494_v14  ;;  %vm5211_vm0 = vcmp.eq.s32.totalorder %v2565_v26, 1 }
 0x1ed   : > { %3349 = vmatmul.mubr.msk.bf16.vlgmr.msra.gmra.mrb[48].mxu0 %vm5795_vm7, %v3347_v19  ;;  %3357 = vmatprep.subr.msk.bf16.mxu1 %vm5801_vm1, %v2435_v2  ;;  %vm2868_vm13 = vmand %vm5177_vm4, %vm5805_vm6  ;;  %v2559_v38 = vsel %vm2558_vm10, %v3589_v51, %v3590_v4  ;;  %v2654_v55 = vsel %vm5184_vm2, %v2641_v41, 0.0  ;;  %v3600_v30 = vunpack.i.h.bf16 %v4882_v23  ;;  %v3599_v62 = vunpack.i.l.bf16 %v4882_v23  ;;  %v3356_v4 = vld [vmem:[%s5374_s7 + $0x44] sm:$0xf] }
 0x1ee   : > { %2382 = vmatpush1.bf16.msra.mxu0 %v2376_v39  ;;  %2413 = vmatprep.mubr.bf16.mxu0 %v5603_v34  ;;  %v2640_v8 = vsel %vm2639_vm15, %v3594_v35, %v3595_v6  ;;  %v3605_v21 = vunpack.i.h.bf16 %v4918_v57  ;;  %v3604_v60 = vunpack.i.l.bf16 %v4918_v57  ;;  %vm5228_vm12 = vcmp.eq.s32.totalorder %v2646_v48, 1  ;;  %vm5810_vm11 = vmmov %vm5795_vm7  ;;  %v3362_v48 = vld [vmem:[%s5374_s7 + $0x4c] sm:$0xf] }
 0x1ef   : > { %3360 = vmatprep.subr.msk.bf16.mxu0 %vm5804_vm3, %v2499_v5  ;;  %vm2795_vm10 = vcmp.lt.s32.totalorder %v3981_v52, 96  ;;  %v5234_v63 = vsel %vm2868_vm13, 1, %v5603_v34  ;;  %vm5811_vm7 = vmmov %vm5801_vm1  ;;  %v2577_v13 = vpack.c.bf16 %v2573_v33, %v2573_v33  ;;  %v2658_v57 = vpack.c.bf16 %v2654_v55, %v2654_v55 }
 0x1f0   : > { %v2440_v23 = vsel %vm5811_vm7, %v2434_v12, 0  ;;  %vm5812_vm5 = vmmov %vm5810_vm11  ;;  %v2572_v22 = vsel %vm5211_vm0, %v2559_v38, 0.0  ;;  %v2724_v53 = vrot.slane %v5159_v31, %v3946_v44  ;;  %vm5244_vm14 = vcmp.eq.s32.totalorder %v2728_v59, 1 }
 0x1f1   : > { %vm5813_vm15 = vmmov %vm5801_vm1  ;;  %v2719_v18 = vsel %vm2717_vm8, %v3600_v30, %v3599_v62  ;;  %vm5817_vm9 = vnez %v5816_v1  ;;  %v2653_v20 = vsel %vm5228_vm12, %v2640_v8, 0.0  ;;  %v2797_v47 = vsel %vm2795_vm10, %v3605_v21, %v3604_v60 }
 0x1f2   : > { %v2504_v40 = vsel %vm5813_vm15, %v2498_v24, 0  ;;  %v2954_v28 = vsel %vm5817_vm9, 1, %v5603_v34  ;;  %vm5818_vm4 = vmmov %vm5801_vm1  ;;  %vm5256_vm1 = vcmp.eq.s32.totalorder %v2806_v15, 1  ;;  %v2802_v46 = vrot.slane %v5171_v36, %v3946_v44  ;;  %v3365_v15 = vld [vmem:[%s5374_s7 + $0x50] sm:$0xf] }
 0x1f3   : > { %3352 = vmatmul.mubr.msk.bf16.vlgmr.msra.gmra.mrb[48].mxu1 %vm5810_vm11, %v3350_v3  ;;  %vm5821_vm2 = vmmov %vm5804_vm3  ;;  %vm2873_vm3 = vcmp.lt.s32.totalorder %v3981_v52, 95  ;;  %v2884_v29 = vrot.slane %v5234_v63, %v3939_v43  ;;  %v2576_v61 = vpack.c.bf16 %v2572_v22, %v2572_v22  ;;  %v2732_v10 = vsel %vm5244_vm14, %v2719_v18, 0.0 }
 0x1f4   : > { %2446 = vmatpush1.bf16.msra.mxu1 %v2440_v23  ;;  %2477 = vmatprep.mubr.bf16.mxu1 %v5603_v34  ;;  %v2962_v25 = vrot.slane %v2954_v28, %v3939_v43  ;;  %v2657_v51 = vpack.c.bf16 %v2653_v20, %v2653_v20  ;;  %vm5276_vm6 = vcmp.eq.s32.totalorder %v2724_v53, 1  ;;  %v2718_v37 = vsel %vm2717_vm8, %v3599_v62, %v3600_v30  ;;  %v3359_v43 = vld [vmem:[%s5374_s7 + $0x48] sm:$0xf]  ;;  %vm5824_vm8 = vmmov %vm5812_vm5 }
 0x1f5   : > { %3355 = vmatmul.mubr.msk.bf16.vlgmr.msra.gmra.mrb[52].mxu0 %vm5812_vm5, %v3353_v16  ;;  %3363 = vmatprep.subr.msk.bf16.mxu1 %vm5818_vm4, %v2577_v13  ;;  %v2810_v17 = vsel %vm5256_vm1, %v2797_v47, 0.0  ;;  %v3610_v49 = vunpack.i.h.bf16 %v4958_v54  ;;  %v3609_v6 = vunpack.i.l.bf16 %v4958_v54  ;;  %v2796_v35 = vsel %vm2795_vm10, %v3604_v60, %v3605_v21  ;;  %vm5825_vm12 = vmmov %vm5821_vm2  ;;  %v3368_v16 = vld [vmem:[%s5374_s7 + $0x54] sm:$0xf]  ;;  %v3371_v21 = vld [vmem:[%s5374_s7 + $0x58] sm:$0xf] }
 0x1f6   : > { %2510 = vmatpush1.bf16.msra.mxu0 %v2504_v40  ;;  %2541 = vmatprep.mubr.bf16.mxu0 %v5603_v34  ;;  %v3620_v32 = vunpack.i.h.bf16 %v3618_v45  ;;  %v3619_v2 = vunpack.i.l.bf16 %v3618_v45  ;;  %vm2807_vm13 = vcmp.eq.s32.totalorder %v2802_v46, 1  ;;  %vm2951_vm0 = vcmp.lt.s32.totalorder %v3981_v52, 94  ;;  %vm5826_vm11 = vmmov %vm5812_vm5  ;;  %v3374_v13 = vld [vmem:[%s5374_s7 + $0x5c] sm:$0xf]  ;;  %v3377_v40 = vld [vmem:[%s5374_s7 + $0x60] sm:$0xf] }
 0x1f7   : > { %3366 = vmatprep.subr.msk.bf16.mxu0 %vm5821_vm2, %v2658_v57  ;;  %v2582_v31 = vsel %vm5825_vm12, %v2576_v61, 0  ;;  %v2736_v39 = vpack.c.bf16 %v2732_v10, %v2732_v10  ;;  %vm5827_vm7 = vmmov %vm5821_vm2  ;;  %v2814_v5 = vpack.c.bf16 %v2810_v17, %v2810_v17  ;;  %v2731_v26 = vsel %vm5276_vm6, %v2718_v37, 0.0 }
 0x1f8   : > { %v2663_v54 = vsel %vm5827_vm7, %v2657_v51, 0  ;;  %vm2886_vm10 = vcmp.eq.s32.totalorder %v2884_v29, 1  ;;  %v2875_v27 = vsel %vm2873_vm3, %v3610_v49, %v3609_v6  ;;  %vm5828_vm5 = vmmov %vm5821_vm2  ;;  %v2809_v0 = vsel %vm2807_vm13, %v2796_v35, 0.0 }
 0x1f9   : > { %v2880_v36 = vrot.slane %v5234_v63, %v3946_v44  ;;  %vm2964_vm15 = vcmp.eq.s32.totalorder %v2962_v25, 1  ;;  %v2953_v7 = vsel %vm2951_vm0, %v3620_v32, %v3619_v2  ;;  %vm5829_vm14 = vmmov %vm5821_vm2  ;;  %v2958_v14 = vrot.slane %v2954_v28, %v3946_v44 }
 0x1fa   : > { %v2735_v9 = vpack.c.bf16 %v2731_v26, %v2731_v26  ;;  %v2888_v41 = vsel %vm2886_vm10, %v2875_v27, 0.0  ;;  %v2813_v59 = vpack.c.bf16 %v2809_v0, %v2809_v0  ;;  %v2874_v12 = vsel %vm2873_vm3, %v3609_v6, %v3610_v49  ;;  %vm5830_vm1 = vmmov %vm5824_vm8 }
 0x1fb   : > { %3358 = vmatmul.mubr.msk.bf16.vlgmr.msra.gmra.mrb[52].mxu1 %vm5824_vm8, %v3356_v4  ;;  %v2966_v33 = vsel %vm2964_vm15, %v2953_v7, 0.0  ;;  %vm2885_vm9 = vcmp.eq.s32.totalorder %v2880_v36, 1  ;;  %v2952_v44 = vsel %vm2951_vm0, %v3619_v2, %v3620_v32  ;;  %vm2963_vm4 = vcmp.eq.s32.totalorder %v2958_v14, 1  ;;  %vm5831_vm6 = vmmov %vm5830_vm1 }
 0x1fc   : > { %2588 = vmatpush1.bf16.msra.mxu1 %v2582_v31  ;;  %2619 = vmatprep.mubr.bf16.mxu1 %v5603_v34  ;;  %v2741_v3 = vsel %vm5821_vm2, %v2735_v9, 0  ;;  %v2892_v24 = vpack.c.bf16 %v2888_v41, %v2888_v41  ;;  %vm5832_vm13 = vmmov %vm5821_vm2  ;;  %v2970_v38 = vpack.c.bf16 %v2966_v33, %v2966_v33  ;;  %v2887_v55 = vsel %vm2885_vm9, %v2874_v12, 0.0 }
 0x1fd   : > { %3361 = vmatmul.mubr.msk.bf16.vlgmr.msra.gmra.mrb[56].mxu0 %vm5826_vm11, %v3359_v43  ;;  %3369 = vmatprep.subr.msk.bf16.mxu1 %vm5828_vm5, %v2736_v39  ;;  %v2819_v11 = vsel %vm5832_vm13, %v2813_v59, 0  ;;  %vm5833_vm3 = vmmov %vm5821_vm2  ;;  %v2965_v30 = vsel %vm2963_vm4, %v2952_v44, 0.0  ;;  %v2891_v52 = vpack.c.bf16 %v2887_v55, %v2887_v55  ;;  %v3143_v62 = vcombine.high %v5064_v58, %v5064_v58 }
 0x1fe   : > { %2669 = vmatpush1.bf16.msra.mxu0 %v2663_v54  ;;  %2700 = vmatprep.mubr.bf16.mxu0 %v5603_v34  ;;  %vm5834_vm8 = vmmov %vm5821_vm2  ;;  %v2969_v8 = vpack.c.bf16 %v2965_v30, %v2965_v30  ;;  %v3145_v23 = vpack.c.bf16 %v5064_v58, %v5064_v58  ;;  %v3141_v58 = vld [vmem:[%s5376_s9] sm:$0xf] }
 0x1ff   : > { %3372 = vmatprep.subr.msk.bf16.mxu0 %vm5829_vm14, %v2814_v5  ;;  %vm5835_vm0 = vmmov %vm5830_vm1  ;;  %v3146_v50 = vpack.c.bf16 %v3143_v62, %v3143_v62 }
 0x200   : > { %vm5836_vm12 = vmmov %vm5821_vm2 }
 0x201   : > { %v2897_v60 = vsel %vm5836_vm12, %v2891_v52, 0  ;;  %vm5837_vm11 = vmmov %vm5835_vm0 }
 0x202   : > { %vm5838_vm7 = vmmov %vm5821_vm2 }
 0x203   : > { %3364 = vmatmul.mubr.msk.bf16.vlgmr.msra.gmra.mrb[56].mxu1 %vm5830_vm1, %v3362_v48  ;;  %v2975_v63 = vsel %vm5838_vm7, %v2969_v8, 0  ;;  %vm5839_vm10 = vmmov %vm5821_vm2 }
 0x204   : > { %2747 = vmatpush1.bf16.msra.mxu1 %v2741_v3  ;;  %2778 = vmatprep.mubr.bf16.mxu1 %v5603_v34  ;;  %vm5840_vm5 = vmmov %vm5835_vm0 }
 0x205   : > { %3367 = vmatmul.mubr.msk.bf16.vlgmr.msra.gmra.mrb[60].mxu0 %vm5831_vm6, %v3365_v15  ;;  %3375 = vmatprep.subr.msk.bf16.mxu1 %vm5833_vm3, %v2892_v24  ;;  %vm5841_vm15 = vmmov %vm5821_vm2  ;;  %v1188_v24 = vpop.permute.xlu0 %1187 }
 0x206   : > { %2825 = vmatpush1.bf16.msra.mxu0 %v2819_v11  ;;  %2856 = vmatprep.mubr.bf16.mxu0 %v5603_v34  ;;  %v3157_v57 = vsel %vm5841_vm15, %v3145_v23, 0  ;;  %vm5842_vm14 = vmmov %vm5835_vm0 }
 0x207   : > { %3378 = vmatprep.subr.msk.bf16.mxu0 %vm5834_vm8, %v2970_v38  ;;  %vm5843_vm9 = vmmov %vm5835_vm0 }
 0x20b   : > { %3370 = vmatmul.mubr.msk.bf16.vlgmr.msra.gmra.mrb[60].mxu1 %vm5835_vm0, %v3368_v16 }
 0x20c   : > { %2903 = vmatpush1.bf16.msra.mxu1 %v2897_v60  ;;  %2934 = vmatprep.mubr.bf16.mxu1 %v5603_v34 }
 0x20d   : > { %3373 = vmatmul.mubr.msk.bf16.vlgmr.msra.gmra.mrb[64].mxu0 %vm5837_vm11, %v3371_v21  ;;  %3380 = vmatprep.subr.msk.bf16.mxu1 %vm5839_vm10, %v3146_v50 }
 0x20e   : > { %2981 = vmatpush1.bf16.msra.mxu0 %v2975_v63  ;;  %3012 = vmatprep.mubr.bf16.mxu0 %v5603_v34 }
 0x213   : > { %3376 = vmatmul.mubr.msk.bf16.vlgmr.msra.gmra.mrb[64].mxu1 %vm5840_vm5, %v3374_v13 }
 0x214   : > { %3163 = vmatpush1.bf16.msra.mxu1 %v3157_v57  ;;  %3194 = vmatprep.mubr.bf16.mxu1 %v5603_v34 }
 0x215   : > { %3379 = vmatmul.mubr.msk.bf16.vlgmr.msra.gmra.mrb[68].mxu0 %vm5842_vm14, %v3377_v40 }
 0x21b   : > { %3381 = vmatmul.mubr.msk.bf16.vlgmr.msra.gmra.mrb[68].mxu1 %vm5843_vm9, %v3141_v58 }
 0x24e   : > { %v630_v53 = vpop.f32.mrb[4].mxu0 }
 0x24f   : > { %v580_v22 = vpop.f32.mrb[0].mxu1  ;;  %v632_v1 = vpop.f32.mrb[5].mxu0 }
 0x250   : > { %v631_v42 = vadd.f32 %v630_v53, %v580_v22  ;;  %v582_v18 = vpop.f32.mrb[1].mxu1  ;;  %v634_v56 = vpop.f32.mrb[6].mxu0 }
 0x251   : > { %v633_v28 = vadd.f32 %v632_v1, %v582_v18  ;;  %v584_v20 = vpop.f32.mrb[2].mxu1  ;;  %v635_v46 = vpop.f32.mrb[7].mxu0 }
 0x252   : > { %v585_v47 = vpop.f32.mrb[3].mxu1 }
 0x259   : > { %v708_v29 = vpop.f32.mrb[4].mxu1 }
 0x25a   : > { %v715_v61 = vadd.f32 %v708_v29, %v631_v42  ;;  %v710_v34 = vpop.f32.mrb[5].mxu1 }
 0x25b   : > { %v789_v45 = vpop.f32.mrb[8].mxu0  ;;  %v716_v25 = vadd.f32 %v710_v34, %v633_v28  ;;  %v712_v4 = vpop.f32.mrb[6].mxu1 }
 0x25c   : > { %v791_v10 = vpop.f32.mrb[9].mxu0  ;;  %v796_v19 = vadd.f32 %v789_v45, %v715_v61  ;;  %v713_v37 = vpop.f32.mrb[7].mxu1 }
 0x25d   : > { %v793_v51 = vpop.f32.mrb[10].mxu0  ;;  %v797_v49 = vadd.f32 %v791_v10, %v716_v25 }
 0x25e   : > { %v794_v17 = vpop.f32.mrb[11].mxu0 }
 0x264   : > { %v860_v6 = vpop.f32.mrb[8].mxu1 }
 0x265   : > { %v867_v35 = vadd.f32 %v860_v6, %v796_v19  ;;  %v862_v32 = vpop.f32.mrb[9].mxu1 }
 0x266   : > { %v938_v43 = vpop.f32.mrb[12].mxu0  ;;  %v868_v31 = vadd.f32 %v862_v32, %v797_v49  ;;  %v864_v39 = vpop.f32.mrb[10].mxu1 }
 0x267   : > { %v940_v2 = vpop.f32.mrb[13].mxu0  ;;  %v945_v5 = vadd.f32 %v938_v43, %v867_v35  ;;  %v865_v26 = vpop.f32.mrb[11].mxu1 }
 0x268   : > { %v942_v54 = vpop.f32.mrb[14].mxu0  ;;  %v946_v0 = vadd.f32 %v940_v2, %v868_v31 }
 0x269   : > { %v943_v27 = vpop.f32.mrb[15].mxu0 }
 0x26f   : > { %v1019_v36 = vpop.f32.mrb[12].mxu1 }
 0x270   : > { %v1097_v7 = vpop.f32.mrb[16].mxu0  ;;  %v1026_v14 = vadd.f32 %v1019_v36, %v945_v5  ;;  %v1021_v9 = vpop.f32.mrb[13].mxu1 }
 0x271   : > { %v1099_v41 = vpop.f32.mrb[17].mxu0  ;;  %v1027_v48 = vadd.f32 %v1021_v9, %v946_v0  ;;  %v1023_v59 = vpop.f32.mrb[14].mxu1 }
 0x272   : > { %v1101_v12 = vpop.f32.mrb[18].mxu0  ;;  %v1104_v33 = vadd.f32 %v1097_v7, %v1026_v14  ;;  %v1024_v15 = vpop.f32.mrb[15].mxu1 }
 0x273   : > { %v1102_v44 = vpop.f32.mrb[19].mxu0  ;;  %v1105_v3 = vadd.f32 %v1099_v41, %v1027_v48 }
 0x279   : > { %v1175_v11 = vpop.f32.mrb[16].mxu1 }
 0x27a   : > { %v1299_v38 = vpop.f32.mrb[20].mxu0  ;;  %v1182_v55 = vadd.f32 %v1175_v11, %v1104_v33  ;;  %v1177_v30 = vpop.f32.mrb[17].mxu1 }
 0x27b   : > { %v1301_v52 = vpop.f32.mrb[21].mxu0  ;;  %v1183_v62 = vadd.f32 %v1177_v30, %v1105_v3  ;;  %v1179_v16 = vpop.f32.mrb[18].mxu1 }
 0x27c   : > { %v1303_v8 = vpop.f32.mrb[22].mxu0  ;;  %v1190_v21 = vadd.f32 %v1188_v24, %v1182_v55  ;;  %v1180_v60 = vpop.f32.mrb[19].mxu1 }
 0x27d   : > { %v1304_v50 = vpop.f32.mrb[23].mxu0  ;;  %v1191_v63 = vadd.f32 %v1188_v24, %v1183_v62 }
 0x27e   : > { %v1192_v23 = vmax.f32 %v1190_v21, 0.0 }
 0x27f   : > { %v1193_v13 = vmax.f32 %v1191_v63, 0.0 }
 0x280   : > { %3207 = vst [vmem:[%s5089_s24 + $0x10] sm:$0xff] %v1192_v23 }
 0x281   : > { %3208 = vst [vmem:[%s5089_s24 + $0x18] sm:$0xff] %v1193_v13 }
 0x285   : > { %v1349_v40 = vpop.f32.mrb[20].mxu1 }
 0x286   : > { %v1425_v57 = vpop.f32.mrb[24].mxu0  ;;  %v1350_v58 = vadd.f32 %v1349_v40, %v1299_v38  ;;  %v1351_v22 = vpop.f32.mrb[21].mxu1 }
 0x287   : > { %v1427_v53 = vpop.f32.mrb[25].mxu0  ;;  %v1352_v42 = vadd.f32 %v1351_v22, %v1301_v52  ;;  %v1353_v18 = vpop.f32.mrb[22].mxu1 }
 0x288   : > { %v1429_v1 = vpop.f32.mrb[26].mxu0  ;;  %v1432_v28 = vadd.f32 %v1425_v57, %v1350_v58  ;;  %v1354_v20 = vpop.f32.mrb[23].mxu1 }
 0x289   : > { %v1430_v56 = vpop.f32.mrb[27].mxu0  ;;  %v1433_v47 = vadd.f32 %v1427_v53, %v1352_v42 }
 0x291   : > { %v1503_v46 = vpop.f32.mrb[24].mxu1 }
 0x292   : > { %v1510_v29 = vadd.f32 %v1503_v46, %v1432_v28  ;;  %v1505_v45 = vpop.f32.mrb[25].mxu1 }
 0x293   : > { %v1511_v34 = vadd.f32 %v1505_v45, %v1433_v47  ;;  %v1507_v10 = vpop.f32.mrb[26].mxu1 }
 0x294   : > { %v1583_v61 = vpop.f32.mrb[28].mxu0  ;;  %v1508_v51 = vpop.f32.mrb[27].mxu1 }
 0x295   : > { %v1585_v25 = vpop.f32.mrb[29].mxu0  ;;  %v1590_v4 = vadd.f32 %v1583_v61, %v1510_v29 }
 0x296   : > { %v1587_v19 = vpop.f32.mrb[30].mxu0  ;;  %v1591_v37 = vadd.f32 %v1585_v25, %v1511_v34 }
 0x297   : > { %v1588_v17 = vpop.f32.mrb[31].mxu0 }
 0x29b   : > { %v1661_v49 = vpop.f32.mrb[28].mxu1 }
 0x29c   : > { %v1668_v6 = vadd.f32 %v1661_v49, %v1590_v4  ;;  %v1663_v43 = vpop.f32.mrb[29].mxu1 }
 0x29d   : > { %v1725_v35 = vpop.f32.mrb[32].mxu0  ;;  %v1669_v32 = vadd.f32 %v1663_v43, %v1591_v37  ;;  %v1665_v2 = vpop.f32.mrb[30].mxu1 }
 0x29e   : > { %v1727_v31 = vpop.f32.mrb[33].mxu0  ;;  %v1732_v39 = vadd.f32 %v1725_v35, %v1668_v6  ;;  %v1666_v54 = vpop.f32.mrb[31].mxu1 }
 0x29f   : > { %v1729_v5 = vpop.f32.mrb[34].mxu0  ;;  %v1733_v26 = vadd.f32 %v1727_v31, %v1669_v32 }
 0x2a0   : > { %v1730_v27 = vpop.f32.mrb[35].mxu0 }
 0x2a6   : > { %v1789_v0 = vpop.f32.mrb[32].mxu1 }
 0x2a7   : > { %v1796_v36 = vadd.f32 %v1789_v0, %v1732_v39  ;;  %v1791_v7 = vpop.f32.mrb[33].mxu1 }
 0x2a8   : > { %v1853_v14 = vpop.f32.mrb[36].mxu0  ;;  %v1797_v9 = vadd.f32 %v1791_v7, %v1733_v26  ;;  %v1793_v41 = vpop.f32.mrb[34].mxu1 }
 0x2a9   : > { %v1855_v48 = vpop.f32.mrb[37].mxu0  ;;  %v1860_v59 = vadd.f32 %v1853_v14, %v1796_v36  ;;  %v1794_v12 = vpop.f32.mrb[35].mxu1 }
 0x2aa   : > { %v1857_v33 = vpop.f32.mrb[38].mxu0  ;;  %v1861_v15 = vadd.f32 %v1855_v48, %v1797_v9 }
 0x2ab   : > { %v1858_v44 = vpop.f32.mrb[39].mxu0 }
 0x2ae   : > { %v1931_v3 = vpop.f32.mrb[36].mxu1 }
 0x2af   : > { %v1938_v24 = vadd.f32 %v1931_v3, %v1860_v59  ;;  %v1933_v11 = vpop.f32.mrb[37].mxu1 }
 0x2b0   : > { %v2009_v38 = vpop.f32.mrb[40].mxu0  ;;  %v1939_v55 = vadd.f32 %v1933_v11, %v1861_v15  ;;  %v1935_v30 = vpop.f32.mrb[38].mxu1 }
 0x2b1   : > { %v2011_v52 = vpop.f32.mrb[41].mxu0  ;;  %v2016_v62 = vadd.f32 %v2009_v38, %v1938_v24  ;;  %v1936_v16 = vpop.f32.mrb[39].mxu1 }
 0x2b2   : > { %v2013_v8 = vpop.f32.mrb[42].mxu0  ;;  %v2017_v21 = vadd.f32 %v2011_v52, %v1939_v55 }
 0x2b3   : > { %v2014_v60 = vpop.f32.mrb[43].mxu0 }
 0x2b6   : > { %v2073_v50 = vpop.f32.mrb[40].mxu1 }
 0x2b7   : > { %v2080_v63 = vadd.f32 %v2073_v50, %v2016_v62  ;;  %v2075_v23 = vpop.f32.mrb[41].mxu1 }
 0x2b8   : > { %v2131_v13 = vpop.f32.mrb[44].mxu0  ;;  %v2081_v40 = vadd.f32 %v2075_v23, %v2017_v21  ;;  %v2077_v57 = vpop.f32.mrb[42].mxu1 }
 0x2b9   : > { %v2133_v58 = vpop.f32.mrb[45].mxu0  ;;  %v2138_v22 = vadd.f32 %v2131_v13, %v2080_v63  ;;  %v2078_v53 = vpop.f32.mrb[43].mxu1 }
 0x2ba   : > { %v2135_v42 = vpop.f32.mrb[46].mxu0  ;;  %v2139_v18 = vadd.f32 %v2133_v58, %v2081_v40 }
 0x2bb   : > { %v2136_v1 = vpop.f32.mrb[47].mxu0  ;;  %v3027_v42 = vpop.permute.xlu1 %3026 }
 0x2be   : > { %v2195_v28 = vpop.f32.mrb[44].mxu1 }
 0x2bf   : > { %v2202_v20 = vadd.f32 %v2195_v28, %v2138_v22  ;;  %v2197_v56 = vpop.f32.mrb[45].mxu1 }
 0x2c0   : > { %v2273_v47 = vpop.f32.mrb[48].mxu0  ;;  %v2203_v46 = vadd.f32 %v2197_v56, %v2139_v18  ;;  %v2199_v29 = vpop.f32.mrb[46].mxu1 }
 0x2c1   : > { %v2275_v45 = vpop.f32.mrb[49].mxu0  ;;  %v2280_v61 = vadd.f32 %v2273_v47, %v2202_v20  ;;  %v2200_v34 = vpop.f32.mrb[47].mxu1 }
 0x2c2   : > { %v2277_v10 = vpop.f32.mrb[50].mxu0  ;;  %v2281_v25 = vadd.f32 %v2275_v45, %v2203_v46 }
 0x2c3   : > { %v2278_v4 = vpop.f32.mrb[51].mxu0 }
 0x2c6   : > { %v2351_v51 = vpop.f32.mrb[48].mxu1 }
 0x2c7   : > { %v2358_v19 = vadd.f32 %v2351_v51, %v2280_v61  ;;  %v2353_v37 = vpop.f32.mrb[49].mxu1  ;;  %v3151_v51 = vpop.permute.xlu0 %3150 }
 0x2c8   : > { %v2415_v17 = vpop.f32.mrb[52].mxu0  ;;  %v2359_v49 = vadd.f32 %v2353_v37, %v2281_v25  ;;  %v2355_v6 = vpop.f32.mrb[50].mxu1 }
 0x2c9   : > { %v2417_v43 = vpop.f32.mrb[53].mxu0  ;;  %v2422_v35 = vadd.f32 %v2415_v17, %v2358_v19  ;;  %v2356_v32 = vpop.f32.mrb[51].mxu1 }
 0x2ca   : > { %v2419_v2 = vpop.f32.mrb[54].mxu0  ;;  %v2423_v31 = vadd.f32 %v2417_v43, %v2359_v49 }
 0x2cb   : > { %v2420_v39 = vpop.f32.mrb[55].mxu0 }
 0x2ce   : > { %v2479_v54 = vpop.f32.mrb[52].mxu1 }
 0x2cf   : > { %v2486_v5 = vadd.f32 %v2479_v54, %v2422_v35  ;;  %v2481_v26 = vpop.f32.mrb[53].mxu1 }
 0x2d0   : > { %v2543_v27 = vpop.f32.mrb[56].mxu0  ;;  %v2487_v0 = vadd.f32 %v2481_v26, %v2423_v31  ;;  %v2483_v36 = vpop.f32.mrb[54].mxu1 }
 0x2d1   : > { %v2545_v7 = vpop.f32.mrb[57].mxu0  ;;  %v2550_v14 = vadd.f32 %v2543_v27, %v2486_v5  ;;  %v2484_v9 = vpop.f32.mrb[55].mxu1 }
 0x2d2   : > { %v2547_v41 = vpop.f32.mrb[58].mxu0  ;;  %v2551_v48 = vadd.f32 %v2545_v7, %v2487_v0 }
 0x2d3   : > { %v2548_v59 = vpop.f32.mrb[59].mxu0 }
 0x2d6   : > { %v2621_v12 = vpop.f32.mrb[56].mxu1 }
 0x2d7   : > { %v2628_v33 = vadd.f32 %v2621_v12, %v2550_v14  ;;  %v2623_v15 = vpop.f32.mrb[57].mxu1 }
 0x2d8   : > { %v2702_v44 = vpop.f32.mrb[60].mxu0  ;;  %v2629_v3 = vadd.f32 %v2623_v15, %v2551_v48  ;;  %v2625_v24 = vpop.f32.mrb[58].mxu1 }
 0x2d9   : > { %v2704_v11 = vpop.f32.mrb[61].mxu0  ;;  %v2709_v38 = vadd.f32 %v2702_v44, %v2628_v33  ;;  %v2626_v55 = vpop.f32.mrb[59].mxu1 }
 0x2da   : > { %v2706_v30 = vpop.f32.mrb[62].mxu0  ;;  %v2710_v52 = vadd.f32 %v2704_v11, %v2629_v3 }
 0x2db   : > { %v2707_v62 = vpop.f32.mrb[63].mxu0 }
 0x2de   : > { %v2780_v16 = vpop.f32.mrb[60].mxu1 }
 0x2df   : > { %v2787_v8 = vadd.f32 %v2780_v16, %v2709_v38  ;;  %v2782_v21 = vpop.f32.mrb[61].mxu1 }
 0x2e0   : > { %v2858_v60 = vpop.f32.mrb[64].mxu0  ;;  %v2788_v50 = vadd.f32 %v2782_v21, %v2710_v52  ;;  %v2784_v63 = vpop.f32.mrb[62].mxu1 }
 0x2e1   : > { %v2860_v23 = vpop.f32.mrb[65].mxu0  ;;  %v2865_v13 = vadd.f32 %v2858_v60, %v2787_v8  ;;  %v2785_v40 = vpop.f32.mrb[63].mxu1 }
 0x2e2   : > { %v2862_v57 = vpop.f32.mrb[66].mxu0  ;;  %v2866_v58 = vadd.f32 %v2860_v23, %v2788_v50 }
 0x2e3   : > { %v2863_v22 = vpop.f32.mrb[67].mxu0 }
 0x2e6   : > { %v2936_v53 = vpop.f32.mrb[64].mxu1 }
 0x2e7   : > { %v2943_v18 = vadd.f32 %v2936_v53, %v2865_v13  ;;  %v2938_v1 = vpop.f32.mrb[65].mxu1 }
 0x2e8   : > { %v3014_v28 = vpop.f32.mrb[68].mxu0  ;;  %v2944_v20 = vadd.f32 %v2938_v1, %v2866_v58  ;;  %v2940_v56 = vpop.f32.mrb[66].mxu1 }
 0x2e9   : > { %v3016_v47 = vpop.f32.mrb[69].mxu0  ;;  %v3021_v46 = vadd.f32 %v3014_v28, %v2943_v18  ;;  %v2941_v29 = vpop.f32.mrb[67].mxu1 }
 0x2ea   : > { %v3018_v45 = vpop.f32.mrb[70].mxu0  ;;  %v3022_v61 = vadd.f32 %v3016_v47, %v2944_v20 }
 0x2eb   : > { %v3019_v34 = vpop.f32.mrb[71].mxu0  ;;  %v3029_v10 = vadd.f32 %v3027_v42, %v3021_v46 }
 0x2ec   : > { %v3030_v25 = vadd.f32 %v3027_v42, %v3022_v61 }
 0x2ed   : > { %v3031_v4 = vmax.f32 %v3029_v10, 0.0 }
 0x2ee   : > { %v3032_v19 = vmax.f32 %v3030_v25, 0.0  ;;  %v3196_v37 = vpop.f32.mrb[68].mxu1 }
 0x2ef   : > { %3209 = vst [vmem:[%s5089_s24 + $0x20] sm:$0xff] %v3031_v4  ;;  %v3197_v17 = vadd.f32 %v3196_v37, %v3151_v51  ;;  %v3198_v49 = vpop.f32.mrb[69].mxu1 }
 0x2f0   : > { %3210 = vst [vmem:[%s5089_s24 + $0x28] sm:$0xff] %v3032_v19  ;;  %v3199_v6 = vadd.f32 %v3198_v49, %v3151_v51  ;;  %v3200_v43 = vpop.f32.mrb[70].mxu1 }
 0x2f1   : > { %v3203_v35 = vmax.f32 %v3197_v17, 0.0  ;;  %v3201_v32 = vpop.f32.mrb[71].mxu1 }
 0x2f2   : > { %v3204_v2 = vmax.f32 %v3199_v6, 0.0 }
 0x2f3   : > { %3211 = vst [vmem:[%s5089_s24 + $0x30] sm:$0xff] %v3203_v35 }
 0x2f4   : > { %3212 = vst [vmem:[%s5089_s24 + $0x38] sm:$0xff] %v3204_v2 }
 0x2f5 PF: > { %s21_s17 = sadd.s32 1, %s3629_s17  }
 0x2f6   : > { %p18_p4 = scmp.ge.s32.totalorder %s21_s17, 4  }
 0x2f8   :  { %20 = sbr.rel (!%p18_p4) target bundleno = 1 (0x1), region = 126 }

</bundles_post_ra>
